<compile_context>
chip_gen: v5e
topology: v5e:2x2
jax: 0.10.0
libtpu: 0.0.40
codegen_flags: <defaults>
</compile_context>

<pallas_src>
import functools

import jax
import jax.numpy as jnp
from jax.experimental import pallas as pl
from jax.experimental.pallas import tpu as pltpu

EPS = 1e-5
NEG_SLOPE = 0.01  # nn.LeakyReLU default


def _round_up(v, m):
    return ((v + m - 1) // m) * m


# ---------------------------------------------------------------------------
# Fused conv (27-tap accumulation) + bias + LeakyReLU kernel
# ---------------------------------------------------------------------------
def _ssconv_kernel(w_ref, b_ref, x_ref, o_ref, *, m_out, offsets):
    # w_ref: [K^3, C_out, C]   per-tap weights (resident across the grid)
    # b_ref: [C_out, 1]        bias            (resident across the grid)
    # x_ref: [1, C, Mg]        one sample's padded, normalized, margined volume
    # o_ref: [1, C_out, Mout]  lane-dense output in padded coordinate space
    c_out = w_ref.shape[1]
    acc = jnp.zeros((c_out, m_out), jnp.float32)
    for t, off in enumerate(offsets):               # statically unrolled (27 taps)
        acc = acc + jnp.dot(w_ref[t], x_ref[0, :, off:off + m_out],
                            preferred_element_type=jnp.float32)
    acc = acc + b_ref[...]                          # [C_out, 1] lane-broadcast
    o_ref[0] = jnp.where(acc > 0, acc, NEG_SLOPE * acc).astype(o_ref.dtype)


# ---------------------------------------------------------------------------
# Host wrapper
# ---------------------------------------------------------------------------
@functools.partial(jax.jit, static_argnames=("kernel_size",))
def ssconv_forward(x, conv_w, conv_b, gamma, beta, kernel_size=3):
    """x: [N, C_in, D, H, W] f32; conv_w: [C_out, C_in, K, K, K]."""
    N, C, D, H, W = x.shape
    C_out = conv_w.shape[0]
    K = kernel_size
    P = K // 2
    Dp, Hp, Wp = D + 2 * P, H + 2 * P, W + 2 * P
    Mp = Dp * Hp * Wp                                   # padded voxels / sample

    # ---- BatchNorm (training-mode batch statistics, biased variance) ----
    mean = jnp.mean(x, axis=(0, 2, 3, 4))                               # [C]
    var = jnp.mean((x - mean.reshape(1, C, 1, 1, 1)) ** 2, axis=(0, 2, 3, 4))
    scale = gamma * jax.lax.rsqrt(var + EPS)                            # [C]
    shift = beta - mean * scale                                         # [C]

    # ---- normalize + zero-pad spatially (single fused pass over x) ----
    y = x * scale.reshape(1, C, 1, 1, 1) + shift.reshape(1, C, 1, 1, 1)
    y_pad = jnp.pad(y, ((0, 0), (0, 0), (P, P), (P, P), (P, P)))
    y_flat = y_pad.reshape(N, C, Mp)                    # contiguous reshape (free)

    # ---- flattened padded-coordinate layout with zero margins ----
    # tap (kd,kh,kw) == constant offset (kd-P)*Hp*Wp + (kh-P)*Wp + (kw-P);
    # a margin of G zeros on both sides keeps every shifted window in bounds.
    # Valid output voxels never read the margin; border/pad outputs are
    # garbage and sliced off afterwards.
    G = P * (Hp * Wp + Wp + 1)
    Mout = _round_up(Mp, 128)                           # lane-dense output width
    Mg = _round_up(Mout + 2 * G, 128)
    y_marg = jnp.pad(y_flat, ((0, 0), (0, 0), (G, Mg - G - Mp)))

    # ---- per-tap weights [K^3, C_out, C] and bias column (tiny) ----
    w_taps = jnp.transpose(conv_w, (2, 3, 4, 0, 1)).reshape(K ** 3, C_out, C)
    b_col = conv_b.reshape(C_out, 1)

    offsets = tuple(
        G + (kd - P) * Hp * Wp + (kh - P) * Wp + (kw - P)
        for kd in range(K) for kh in range(K) for kw in range(K))

    kernel = functools.partial(_ssconv_kernel, m_out=Mout, offsets=offsets)

    out_flat = pl.pallas_call(
        kernel,
        out_shape=jax.ShapeDtypeStruct((N, C_out, Mout), jnp.float32),
        grid=(N,),
        in_specs=[
            pl.BlockSpec((K ** 3, C_out, C), lambda n: (0, 0, 0)),  # weights (resident)
            pl.BlockSpec((C_out, 1), lambda n: (0, 0)),             # bias (resident)
            pl.BlockSpec((1, C, Mg), lambda n: (n, 0, 0)),          # one padded sample
        ],
        out_specs=pl.BlockSpec((1, C_out, Mout), lambda n: (n, 0, 0)),
        compiler_params=pltpu.CompilerParams(
            dimension_semantics=("parallel",),
            vmem_limit_bytes=32 * 1024 * 1024),
    )(w_taps, b_col, y_marg)

    # ---- un-flatten padded coordinates, keep interior voxels (already NC...) ----
    out = out_flat[:, :, :Mp].reshape(N, C_out, Dp, Hp, Wp)
    return out[:, :, P:P + D, P:P + H, P:P + W]         # [N, C_out, D, H, W]


# ---------------------------------------------------------------------------
# Pure-JAX reference (correctness check only)
# ---------------------------------------------------------------------------
def ssconv_reference(x, conv_w, conv_b, gamma, beta):
    mean = x.mean(axis=(0, 2, 3, 4), keepdims=True)
    var = ((x - mean) ** 2).mean(axis=(0, 2, 3, 4), keepdims=True)
    y = (x - mean) / jnp.sqrt(var + EPS)
    y = y * gamma.reshape(1, -1, 1, 1, 1) + beta.reshape(1, -1, 1, 1, 1)
    out = jax.lax.conv_general_dilated(
        y, conv_w, window_strides=(1, 1, 1), padding="SAME",
        dimension_numbers=("NCDHW", "OIDHW", "NCDHW"))
    out = out + conv_b.reshape(1, -1, 1, 1, 1)
    return jnp.where(out > 0, out, NEG_SLOPE * out)


if __name__ == "__main__":
    # Small shapes consistent with the module: batch=2, in_ch=3, out_ch=4, D=H=W=8
    N, C_in, C_out, D, H, W, K = 2, 3, 4, 8, 8, 8, 3

    key = jax.random.PRNGKey(0)
    k_x, k_w, k_b, k_g, k_be = jax.random.split(key, 5)
    x = jax.random.normal(k_x, (N, C_in, D, H, W), dtype=jnp.float32)
    conv_w = 0.1 * jax.random.normal(k_w, (C_out, C_in, K, K, K), dtype=jnp.float32)
    conv_b = 0.1 * jax.random.normal(k_b, (C_out,), dtype=jnp.float32)
    gamma = 1.0 + 0.1 * jax.random.normal(k_g, (C_in,), dtype=jnp.float32)
    beta = 0.1 * jax.random.normal(k_be, (C_in,), dtype=jnp.float32)

    out = ssconv_forward(x, conv_w, conv_b, gamma, beta, kernel_size=K)
    out = jax.block_until_ready(out)

    ref = ssconv_reference(x, conv_w, conv_b, gamma, beta)
    assert out.shape == (N, C_out, D, H, W), out.shape
    err = float(jnp.abs(out - ref).max())
    assert jnp.allclose(out, ref, atol=2e-3, rtol=2e-3), err

    print("KERNEL_OK")
</pallas_src>

<mosaic_0001>
module attributes {stable_mosaic.version = 11 : i64} {
  func.func @_ssconv_kernel(%arg0: i32, %arg1: memref<27x4x3xf32, #tpu.memory_space<vmem>>, %arg2: memref<4x1xf32, #tpu.memory_space<vmem>>, %arg3: memref<1x3x1280xf32, #tpu.memory_space<vmem>>, %arg4: memref<1x4x1024xf32, #tpu.memory_space<vmem>>) attributes {dimension_semantics = [#tpu.dimension_semantics<parallel>], iteration_bounds = array<i64: 2>, scalar_prefetch = 0 : i64, scratch_operands = 0 : i64, tpu.core_type = #tpu.core_type<tc>, window_params = [{pipeline_mode = #tpu.pipeline_mode<synchronous>, transform_indices = @transform_0, window_bounds = array<i64: 27, 4, 3>}, {pipeline_mode = #tpu.pipeline_mode<synchronous>, transform_indices = @transform_1, window_bounds = array<i64: 4, 1>}, {transform_indices = @transform_2, window_bounds = array<i64: 1, 3, 1280>}, {transform_indices = @transform_3, window_bounds = array<i64: 1, 4, 1024>}]} {
    %cst = arith.constant 0.000000e+00 : f32
    %0 = vector.broadcast %cst : f32 to vector<4x1024xf32>
    %c0 = arith.constant 0 : index
    %c0_0 = arith.constant 0 : index
    %c0_1 = arith.constant 0 : index
    %1 = vector.load %arg1[%c0, %c0_0, %c0_1] : memref<27x4x3xf32, #tpu.memory_space<vmem>>, vector<1x4x3xf32>
    %2 = vector.shape_cast %1 : vector<1x4x3xf32> to vector<4x3xf32>
    %c0_2 = arith.constant 0 : index
    %c0_3 = arith.constant 0 : index
    %c0_4 = arith.constant 0 : index
    %3 = vector.load %arg3[%c0_2, %c0_3, %c0_4] : memref<1x3x1280xf32, #tpu.memory_space<vmem>>, vector<1x3x1024xf32>
    %4 = vector.shape_cast %3 : vector<1x3x1024xf32> to vector<3x1024xf32>
    %cst_5 = arith.constant dense<0.000000e+00> : vector<4x1024xf32>
    %5 = tpu.matmul %2, %4, %cst_5 {dimension_numbers = #tpu.dot_dimension_numbers<[1], [0], [0], [1], [0, 0, 1, 1], [], []>} : vector<4x3xf32>, vector<3x1024xf32>, vector<4x1024xf32> -> vector<4x1024xf32>
    %6 = arith.addf %0, %5 : vector<4x1024xf32>
    %c1 = arith.constant 1 : index
    %c0_6 = arith.constant 0 : index
    %c0_7 = arith.constant 0 : index
    %7 = vector.load %arg1[%c1, %c0_6, %c0_7] : memref<27x4x3xf32, #tpu.memory_space<vmem>>, vector<1x4x3xf32>
    %8 = vector.shape_cast %7 : vector<1x4x3xf32> to vector<4x3xf32>
    %c0_8 = arith.constant 0 : index
    %c0_9 = arith.constant 0 : index
    %c1_10 = arith.constant 1 : index
    %9 = vector.load %arg3[%c0_8, %c0_9, %c1_10] : memref<1x3x1280xf32, #tpu.memory_space<vmem>>, vector<1x3x1024xf32>
    %10 = vector.shape_cast %9 : vector<1x3x1024xf32> to vector<3x1024xf32>
    %cst_11 = arith.constant dense<0.000000e+00> : vector<4x1024xf32>
    %11 = tpu.matmul %8, %10, %cst_11 {dimension_numbers = #tpu.dot_dimension_numbers<[1], [0], [0], [1], [0, 0, 1, 1], [], []>} : vector<4x3xf32>, vector<3x1024xf32>, vector<4x1024xf32> -> vector<4x1024xf32>
    %12 = arith.addf %6, %11 : vector<4x1024xf32>
    %c2 = arith.constant 2 : index
    %c0_12 = arith.constant 0 : index
    %c0_13 = arith.constant 0 : index
    %13 = vector.load %arg1[%c2, %c0_12, %c0_13] : memref<27x4x3xf32, #tpu.memory_space<vmem>>, vector<1x4x3xf32>
    %14 = vector.shape_cast %13 : vector<1x4x3xf32> to vector<4x3xf32>
    %c0_14 = arith.constant 0 : index
    %c0_15 = arith.constant 0 : index
    %c2_16 = arith.constant 2 : index
    %15 = vector.load %arg3[%c0_14, %c0_15, %c2_16] : memref<1x3x1280xf32, #tpu.memory_space<vmem>>, vector<1x3x1024xf32>
    %16 = vector.shape_cast %15 : vector<1x3x1024xf32> to vector<3x1024xf32>
    %cst_17 = arith.constant dense<0.000000e+00> : vector<4x1024xf32>
    %17 = tpu.matmul %14, %16, %cst_17 {dimension_numbers = #tpu.dot_dimension_numbers<[1], [0], [0], [1], [0, 0, 1, 1], [], []>} : vector<4x3xf32>, vector<3x1024xf32>, vector<4x1024xf32> -> vector<4x1024xf32>
    %18 = arith.addf %12, %17 : vector<4x1024xf32>
    %c3 = arith.constant 3 : index
    %c0_18 = arith.constant 0 : index
    %c0_19 = arith.constant 0 : index
    %19 = vector.load %arg1[%c3, %c0_18, %c0_19] : memref<27x4x3xf32, #tpu.memory_space<vmem>>, vector<1x4x3xf32>
    %20 = vector.shape_cast %19 : vector<1x4x3xf32> to vector<4x3xf32>
    %c0_20 = arith.constant 0 : index
    %c0_21 = arith.constant 0 : index
    %c10 = arith.constant 10 : index
    %21 = vector.load %arg3[%c0_20, %c0_21, %c10] : memref<1x3x1280xf32, #tpu.memory_space<vmem>>, vector<1x3x1024xf32>
    %22 = vector.shape_cast %21 : vector<1x3x1024xf32> to vector<3x1024xf32>
    %cst_22 = arith.constant dense<0.000000e+00> : vector<4x1024xf32>
    %23 = tpu.matmul %20, %22, %cst_22 {dimension_numbers = #tpu.dot_dimension_numbers<[1], [0], [0], [1], [0, 0, 1, 1], [], []>} : vector<4x3xf32>, vector<3x1024xf32>, vector<4x1024xf32> -> vector<4x1024xf32>
    %24 = arith.addf %18, %23 : vector<4x1024xf32>
    %c4 = arith.constant 4 : index
    %c0_23 = arith.constant 0 : index
    %c0_24 = arith.constant 0 : index
    %25 = vector.load %arg1[%c4, %c0_23, %c0_24] : memref<27x4x3xf32, #tpu.memory_space<vmem>>, vector<1x4x3xf32>
    %26 = vector.shape_cast %25 : vector<1x4x3xf32> to vector<4x3xf32>
    %c0_25 = arith.constant 0 : index
    %c0_26 = arith.constant 0 : index
    %c11 = arith.constant 11 : index
    %27 = vector.load %arg3[%c0_25, %c0_26, %c11] : memref<1x3x1280xf32, #tpu.memory_space<vmem>>, vector<1x3x1024xf32>
    %28 = vector.shape_cast %27 : vector<1x3x1024xf32> to vector<3x1024xf32>
    %cst_27 = arith.constant dense<0.000000e+00> : vector<4x1024xf32>
    %29 = tpu.matmul %26, %28, %cst_27 {dimension_numbers = #tpu.dot_dimension_numbers<[1], [0], [0], [1], [0, 0, 1, 1], [], []>} : vector<4x3xf32>, vector<3x1024xf32>, vector<4x1024xf32> -> vector<4x1024xf32>
    %30 = arith.addf %24, %29 : vector<4x1024xf32>
    %c5 = arith.constant 5 : index
    %c0_28 = arith.constant 0 : index
    %c0_29 = arith.constant 0 : index
    %31 = vector.load %arg1[%c5, %c0_28, %c0_29] : memref<27x4x3xf32, #tpu.memory_space<vmem>>, vector<1x4x3xf32>
    %32 = vector.shape_cast %31 : vector<1x4x3xf32> to vector<4x3xf32>
    %c0_30 = arith.constant 0 : index
    %c0_31 = arith.constant 0 : index
    %c12 = arith.constant 12 : index
    %33 = vector.load %arg3[%c0_30, %c0_31, %c12] : memref<1x3x1280xf32, #tpu.memory_space<vmem>>, vector<1x3x1024xf32>
    %34 = vector.shape_cast %33 : vector<1x3x1024xf32> to vector<3x1024xf32>
    %cst_32 = arith.constant dense<0.000000e+00> : vector<4x1024xf32>
    %35 = tpu.matmul %32, %34, %cst_32 {dimension_numbers = #tpu.dot_dimension_numbers<[1], [0], [0], [1], [0, 0, 1, 1], [], []>} : vector<4x3xf32>, vector<3x1024xf32>, vector<4x1024xf32> -> vector<4x1024xf32>
    %36 = arith.addf %30, %35 : vector<4x1024xf32>
    %c6 = arith.constant 6 : index
    %c0_33 = arith.constant 0 : index
    %c0_34 = arith.constant 0 : index
    %37 = vector.load %arg1[%c6, %c0_33, %c0_34] : memref<27x4x3xf32, #tpu.memory_space<vmem>>, vector<1x4x3xf32>
    %38 = vector.shape_cast %37 : vector<1x4x3xf32> to vector<4x3xf32>
    %c0_35 = arith.constant 0 : index
    %c0_36 = arith.constant 0 : index
    %c20 = arith.constant 20 : index
    %39 = vector.load %arg3[%c0_35, %c0_36, %c20] : memref<1x3x1280xf32, #tpu.memory_space<vmem>>, vector<1x3x1024xf32>
    %40 = vector.shape_cast %39 : vector<1x3x1024xf32> to vector<3x1024xf32>
    %cst_37 = arith.constant dense<0.000000e+00> : vector<4x1024xf32>
    %41 = tpu.matmul %38, %40, %cst_37 {dimension_numbers = #tpu.dot_dimension_numbers<[1], [0], [0], [1], [0, 0, 1, 1], [], []>} : vector<4x3xf32>, vector<3x1024xf32>, vector<4x1024xf32> -> vector<4x1024xf32>
    %42 = arith.addf %36, %41 : vector<4x1024xf32>
    %c7 = arith.constant 7 : index
    %c0_38 = arith.constant 0 : index
    %c0_39 = arith.constant 0 : index
    %43 = vector.load %arg1[%c7, %c0_38, %c0_39] : memref<27x4x3xf32, #tpu.memory_space<vmem>>, vector<1x4x3xf32>
    %44 = vector.shape_cast %43 : vector<1x4x3xf32> to vector<4x3xf32>
    %c0_40 = arith.constant 0 : index
    %c0_41 = arith.constant 0 : index
    %c21 = arith.constant 21 : index
    %45 = vector.load %arg3[%c0_40, %c0_41, %c21] : memref<1x3x1280xf32, #tpu.memory_space<vmem>>, vector<1x3x1024xf32>
    %46 = vector.shape_cast %45 : vector<1x3x1024xf32> to vector<3x1024xf32>
    %cst_42 = arith.constant dense<0.000000e+00> : vector<4x1024xf32>
    %47 = tpu.matmul %44, %46, %cst_42 {dimension_numbers = #tpu.dot_dimension_numbers<[1], [0], [0], [1], [0, 0, 1, 1], [], []>} : vector<4x3xf32>, vector<3x1024xf32>, vector<4x1024xf32> -> vector<4x1024xf32>
    %48 = arith.addf %42, %47 : vector<4x1024xf32>
    %c8 = arith.constant 8 : index
    %c0_43 = arith.constant 0 : index
    %c0_44 = arith.constant 0 : index
    %49 = vector.load %arg1[%c8, %c0_43, %c0_44] : memref<27x4x3xf32, #tpu.memory_space<vmem>>, vector<1x4x3xf32>
    %50 = vector.shape_cast %49 : vector<1x4x3xf32> to vector<4x3xf32>
    %c0_45 = arith.constant 0 : index
    %c0_46 = arith.constant 0 : index
    %c22 = arith.constant 22 : index
    %51 = vector.load %arg3[%c0_45, %c0_46, %c22] : memref<1x3x1280xf32, #tpu.memory_space<vmem>>, vector<1x3x1024xf32>
    %52 = vector.shape_cast %51 : vector<1x3x1024xf32> to vector<3x1024xf32>
    %cst_47 = arith.constant dense<0.000000e+00> : vector<4x1024xf32>
    %53 = tpu.matmul %50, %52, %cst_47 {dimension_numbers = #tpu.dot_dimension_numbers<[1], [0], [0], [1], [0, 0, 1, 1], [], []>} : vector<4x3xf32>, vector<3x1024xf32>, vector<4x1024xf32> -> vector<4x1024xf32>
    %54 = arith.addf %48, %53 : vector<4x1024xf32>
    %c9 = arith.constant 9 : index
    %c0_48 = arith.constant 0 : index
    %c0_49 = arith.constant 0 : index
    %55 = vector.load %arg1[%c9, %c0_48, %c0_49] : memref<27x4x3xf32, #tpu.memory_space<vmem>>, vector<1x4x3xf32>
    %56 = vector.shape_cast %55 : vector<1x4x3xf32> to vector<4x3xf32>
    %c0_50 = arith.constant 0 : index
    %c0_51 = arith.constant 0 : index
    %c100 = arith.constant 100 : index
    %57 = vector.load %arg3[%c0_50, %c0_51, %c100] : memref<1x3x1280xf32, #tpu.memory_space<vmem>>, vector<1x3x1024xf32>
    %58 = vector.shape_cast %57 : vector<1x3x1024xf32> to vector<3x1024xf32>
    %cst_52 = arith.constant dense<0.000000e+00> : vector<4x1024xf32>
    %59 = tpu.matmul %56, %58, %cst_52 {dimension_numbers = #tpu.dot_dimension_numbers<[1], [0], [0], [1], [0, 0, 1, 1], [], []>} : vector<4x3xf32>, vector<3x1024xf32>, vector<4x1024xf32> -> vector<4x1024xf32>
    %60 = arith.addf %54, %59 : vector<4x1024xf32>
    %c10_53 = arith.constant 10 : index
    %c0_54 = arith.constant 0 : index
    %c0_55 = arith.constant 0 : index
    %61 = vector.load %arg1[%c10_53, %c0_54, %c0_55] : memref<27x4x3xf32, #tpu.memory_space<vmem>>, vector<1x4x3xf32>
    %62 = vector.shape_cast %61 : vector<1x4x3xf32> to vector<4x3xf32>
    %c0_56 = arith.constant 0 : index
    %c0_57 = arith.constant 0 : index
    %c101 = arith.constant 101 : index
    %63 = vector.load %arg3[%c0_56, %c0_57, %c101] : memref<1x3x1280xf32, #tpu.memory_space<vmem>>, vector<1x3x1024xf32>
    %64 = vector.shape_cast %63 : vector<1x3x1024xf32> to vector<3x1024xf32>
    %cst_58 = arith.constant dense<0.000000e+00> : vector<4x1024xf32>
    %65 = tpu.matmul %62, %64, %cst_58 {dimension_numbers = #tpu.dot_dimension_numbers<[1], [0], [0], [1], [0, 0, 1, 1], [], []>} : vector<4x3xf32>, vector<3x1024xf32>, vector<4x1024xf32> -> vector<4x1024xf32>
    %66 = arith.addf %60, %65 : vector<4x1024xf32>
    %c11_59 = arith.constant 11 : index
    %c0_60 = arith.constant 0 : index
    %c0_61 = arith.constant 0 : index
    %67 = vector.load %arg1[%c11_59, %c0_60, %c0_61] : memref<27x4x3xf32, #tpu.memory_space<vmem>>, vector<1x4x3xf32>
    %68 = vector.shape_cast %67 : vector<1x4x3xf32> to vector<4x3xf32>
    %c0_62 = arith.constant 0 : index
    %c0_63 = arith.constant 0 : index
    %c102 = arith.constant 102 : index
    %69 = vector.load %arg3[%c0_62, %c0_63, %c102] : memref<1x3x1280xf32, #tpu.memory_space<vmem>>, vector<1x3x1024xf32>
    %70 = vector.shape_cast %69 : vector<1x3x1024xf32> to vector<3x1024xf32>
    %cst_64 = arith.constant dense<0.000000e+00> : vector<4x1024xf32>
    %71 = tpu.matmul %68, %70, %cst_64 {dimension_numbers = #tpu.dot_dimension_numbers<[1], [0], [0], [1], [0, 0, 1, 1], [], []>} : vector<4x3xf32>, vector<3x1024xf32>, vector<4x1024xf32> -> vector<4x1024xf32>
    %72 = arith.addf %66, %71 : vector<4x1024xf32>
    %c12_65 = arith.constant 12 : index
    %c0_66 = arith.constant 0 : index
    %c0_67 = arith.constant 0 : index
    %73 = vector.load %arg1[%c12_65, %c0_66, %c0_67] : memref<27x4x3xf32, #tpu.memory_space<vmem>>, vector<1x4x3xf32>
    %74 = vector.shape_cast %73 : vector<1x4x3xf32> to vector<4x3xf32>
    %c0_68 = arith.constant 0 : index
    %c0_69 = arith.constant 0 : index
    %c110 = arith.constant 110 : index
    %75 = vector.load %arg3[%c0_68, %c0_69, %c110] : memref<1x3x1280xf32, #tpu.memory_space<vmem>>, vector<1x3x1024xf32>
    %76 = vector.shape_cast %75 : vector<1x3x1024xf32> to vector<3x1024xf32>
    %cst_70 = arith.constant dense<0.000000e+00> : vector<4x1024xf32>
    %77 = tpu.matmul %74, %76, %cst_70 {dimension_numbers = #tpu.dot_dimension_numbers<[1], [0], [0], [1], [0, 0, 1, 1], [], []>} : vector<4x3xf32>, vector<3x1024xf32>, vector<4x1024xf32> -> vector<4x1024xf32>
    %78 = arith.addf %72, %77 : vector<4x1024xf32>
    %c13 = arith.constant 13 : index
    %c0_71 = arith.constant 0 : index
    %c0_72 = arith.constant 0 : index
    %79 = vector.load %arg1[%c13, %c0_71, %c0_72] : memref<27x4x3xf32, #tpu.memory_space<vmem>>, vector<1x4x3xf32>
    %80 = vector.shape_cast %79 : vector<1x4x3xf32> to vector<4x3xf32>
    %c0_73 = arith.constant 0 : index
    %c0_74 = arith.constant 0 : index
    %c111 = arith.constant 111 : index
    %81 = vector.load %arg3[%c0_73, %c0_74, %c111] : memref<1x3x1280xf32, #tpu.memory_space<vmem>>, vector<1x3x1024xf32>
    %82 = vector.shape_cast %81 : vector<1x3x1024xf32> to vector<3x1024xf32>
    %cst_75 = arith.constant dense<0.000000e+00> : vector<4x1024xf32>
    %83 = tpu.matmul %80, %82, %cst_75 {dimension_numbers = #tpu.dot_dimension_numbers<[1], [0], [0], [1], [0, 0, 1, 1], [], []>} : vector<4x3xf32>, vector<3x1024xf32>, vector<4x1024xf32> -> vector<4x1024xf32>
    %84 = arith.addf %78, %83 : vector<4x1024xf32>
    %c14 = arith.constant 14 : index
    %c0_76 = arith.constant 0 : index
    %c0_77 = arith.constant 0 : index
    %85 = vector.load %arg1[%c14, %c0_76, %c0_77] : memref<27x4x3xf32, #tpu.memory_space<vmem>>, vector<1x4x3xf32>
    %86 = vector.shape_cast %85 : vector<1x4x3xf32> to vector<4x3xf32>
    %c0_78 = arith.constant 0 : index
    %c0_79 = arith.constant 0 : index
    %c112 = arith.constant 112 : index
    %87 = vector.load %arg3[%c0_78, %c0_79, %c112] : memref<1x3x1280xf32, #tpu.memory_space<vmem>>, vector<1x3x1024xf32>
    %88 = vector.shape_cast %87 : vector<1x3x1024xf32> to vector<3x1024xf32>
    %cst_80 = arith.constant dense<0.000000e+00> : vector<4x1024xf32>
    %89 = tpu.matmul %86, %88, %cst_80 {dimension_numbers = #tpu.dot_dimension_numbers<[1], [0], [0], [1], [0, 0, 1, 1], [], []>} : vector<4x3xf32>, vector<3x1024xf32>, vector<4x1024xf32> -> vector<4x1024xf32>
    %90 = arith.addf %84, %89 : vector<4x1024xf32>
    %c15 = arith.constant 15 : index
    %c0_81 = arith.constant 0 : index
    %c0_82 = arith.constant 0 : index
    %91 = vector.load %arg1[%c15, %c0_81, %c0_82] : memref<27x4x3xf32, #tpu.memory_space<vmem>>, vector<1x4x3xf32>
    %92 = vector.shape_cast %91 : vector<1x4x3xf32> to vector<4x3xf32>
    %c0_83 = arith.constant 0 : index
    %c0_84 = arith.constant 0 : index
    %c120 = arith.constant 120 : index
    %93 = vector.load %arg3[%c0_83, %c0_84, %c120] : memref<1x3x1280xf32, #tpu.memory_space<vmem>>, vector<1x3x1024xf32>
    %94 = vector.shape_cast %93 : vector<1x3x1024xf32> to vector<3x1024xf32>
    %cst_85 = arith.constant dense<0.000000e+00> : vector<4x1024xf32>
    %95 = tpu.matmul %92, %94, %cst_85 {dimension_numbers = #tpu.dot_dimension_numbers<[1], [0], [0], [1], [0, 0, 1, 1], [], []>} : vector<4x3xf32>, vector<3x1024xf32>, vector<4x1024xf32> -> vector<4x1024xf32>
    %96 = arith.addf %90, %95 : vector<4x1024xf32>
    %c16 = arith.constant 16 : index
    %c0_86 = arith.constant 0 : index
    %c0_87 = arith.constant 0 : index
    %97 = vector.load %arg1[%c16, %c0_86, %c0_87] : memref<27x4x3xf32, #tpu.memory_space<vmem>>, vector<1x4x3xf32>
    %98 = vector.shape_cast %97 : vector<1x4x3xf32> to vector<4x3xf32>
    %c0_88 = arith.constant 0 : index
    %c0_89 = arith.constant 0 : index
    %c121 = arith.constant 121 : index
    %99 = vector.load %arg3[%c0_88, %c0_89, %c121] : memref<1x3x1280xf32, #tpu.memory_space<vmem>>, vector<1x3x1024xf32>
    %100 = vector.shape_cast %99 : vector<1x3x1024xf32> to vector<3x1024xf32>
    %cst_90 = arith.constant dense<0.000000e+00> : vector<4x1024xf32>
    %101 = tpu.matmul %98, %100, %cst_90 {dimension_numbers = #tpu.dot_dimension_numbers<[1], [0], [0], [1], [0, 0, 1, 1], [], []>} : vector<4x3xf32>, vector<3x1024xf32>, vector<4x1024xf32> -> vector<4x1024xf32>
    %102 = arith.addf %96, %101 : vector<4x1024xf32>
    %c17 = arith.constant 17 : index
    %c0_91 = arith.constant 0 : index
    %c0_92 = arith.constant 0 : index
    %103 = vector.load %arg1[%c17, %c0_91, %c0_92] : memref<27x4x3xf32, #tpu.memory_space<vmem>>, vector<1x4x3xf32>
    %104 = vector.shape_cast %103 : vector<1x4x3xf32> to vector<4x3xf32>
    %c0_93 = arith.constant 0 : index
    %c0_94 = arith.constant 0 : index
    %c122 = arith.constant 122 : index
    %105 = vector.load %arg3[%c0_93, %c0_94, %c122] : memref<1x3x1280xf32, #tpu.memory_space<vmem>>, vector<1x3x1024xf32>
    %106 = vector.shape_cast %105 : vector<1x3x1024xf32> to vector<3x1024xf32>
    %cst_95 = arith.constant dense<0.000000e+00> : vector<4x1024xf32>
    %107 = tpu.matmul %104, %106, %cst_95 {dimension_numbers = #tpu.dot_dimension_numbers<[1], [0], [0], [1], [0, 0, 1, 1], [], []>} : vector<4x3xf32>, vector<3x1024xf32>, vector<4x1024xf32> -> vector<4x1024xf32>
    %108 = arith.addf %102, %107 : vector<4x1024xf32>
    %c18 = arith.constant 18 : index
    %c0_96 = arith.constant 0 : index
    %c0_97 = arith.constant 0 : index
    %109 = vector.load %arg1[%c18, %c0_96, %c0_97] : memref<27x4x3xf32, #tpu.memory_space<vmem>>, vector<1x4x3xf32>
    %110 = vector.shape_cast %109 : vector<1x4x3xf32> to vector<4x3xf32>
    %c0_98 = arith.constant 0 : index
    %c0_99 = arith.constant 0 : index
    %c200 = arith.constant 200 : index
    %111 = vector.load %arg3[%c0_98, %c0_99, %c200] : memref<1x3x1280xf32, #tpu.memory_space<vmem>>, vector<1x3x1024xf32>
    %112 = vector.shape_cast %111 : vector<1x3x1024xf32> to vector<3x1024xf32>
    %cst_100 = arith.constant dense<0.000000e+00> : vector<4x1024xf32>
    %113 = tpu.matmul %110, %112, %cst_100 {dimension_numbers = #tpu.dot_dimension_numbers<[1], [0], [0], [1], [0, 0, 1, 1], [], []>} : vector<4x3xf32>, vector<3x1024xf32>, vector<4x1024xf32> -> vector<4x1024xf32>
    %114 = arith.addf %108, %113 : vector<4x1024xf32>
    %c19 = arith.constant 19 : index
    %c0_101 = arith.constant 0 : index
    %c0_102 = arith.constant 0 : index
    %115 = vector.load %arg1[%c19, %c0_101, %c0_102] : memref<27x4x3xf32, #tpu.memory_space<vmem>>, vector<1x4x3xf32>
    %116 = vector.shape_cast %115 : vector<1x4x3xf32> to vector<4x3xf32>
    %c0_103 = arith.constant 0 : index
    %c0_104 = arith.constant 0 : index
    %c201 = arith.constant 201 : index
    %117 = vector.load %arg3[%c0_103, %c0_104, %c201] : memref<1x3x1280xf32, #tpu.memory_space<vmem>>, vector<1x3x1024xf32>
    %118 = vector.shape_cast %117 : vector<1x3x1024xf32> to vector<3x1024xf32>
    %cst_105 = arith.constant dense<0.000000e+00> : vector<4x1024xf32>
    %119 = tpu.matmul %116, %118, %cst_105 {dimension_numbers = #tpu.dot_dimension_numbers<[1], [0], [0], [1], [0, 0, 1, 1], [], []>} : vector<4x3xf32>, vector<3x1024xf32>, vector<4x1024xf32> -> vector<4x1024xf32>
    %120 = arith.addf %114, %119 : vector<4x1024xf32>
    %c20_106 = arith.constant 20 : index
    %c0_107 = arith.constant 0 : index
    %c0_108 = arith.constant 0 : index
    %121 = vector.load %arg1[%c20_106, %c0_107, %c0_108] : memref<27x4x3xf32, #tpu.memory_space<vmem>>, vector<1x4x3xf32>
    %122 = vector.shape_cast %121 : vector<1x4x3xf32> to vector<4x3xf32>
    %c0_109 = arith.constant 0 : index
    %c0_110 = arith.constant 0 : index
    %c202 = arith.constant 202 : index
    %123 = vector.load %arg3[%c0_109, %c0_110, %c202] : memref<1x3x1280xf32, #tpu.memory_space<vmem>>, vector<1x3x1024xf32>
    %124 = vector.shape_cast %123 : vector<1x3x1024xf32> to vector<3x1024xf32>
    %cst_111 = arith.constant dense<0.000000e+00> : vector<4x1024xf32>
    %125 = tpu.matmul %122, %124, %cst_111 {dimension_numbers = #tpu.dot_dimension_numbers<[1], [0], [0], [1], [0, 0, 1, 1], [], []>} : vector<4x3xf32>, vector<3x1024xf32>, vector<4x1024xf32> -> vector<4x1024xf32>
    %126 = arith.addf %120, %125 : vector<4x1024xf32>
    %c21_112 = arith.constant 21 : index
    %c0_113 = arith.constant 0 : index
    %c0_114 = arith.constant 0 : index
    %127 = vector.load %arg1[%c21_112, %c0_113, %c0_114] : memref<27x4x3xf32, #tpu.memory_space<vmem>>, vector<1x4x3xf32>
    %128 = vector.shape_cast %127 : vector<1x4x3xf32> to vector<4x3xf32>
    %c0_115 = arith.constant 0 : index
    %c0_116 = arith.constant 0 : index
    %c210 = arith.constant 210 : index
    %129 = vector.load %arg3[%c0_115, %c0_116, %c210] : memref<1x3x1280xf32, #tpu.memory_space<vmem>>, vector<1x3x1024xf32>
    %130 = vector.shape_cast %129 : vector<1x3x1024xf32> to vector<3x1024xf32>
    %cst_117 = arith.constant dense<0.000000e+00> : vector<4x1024xf32>
    %131 = tpu.matmul %128, %130, %cst_117 {dimension_numbers = #tpu.dot_dimension_numbers<[1], [0], [0], [1], [0, 0, 1, 1], [], []>} : vector<4x3xf32>, vector<3x1024xf32>, vector<4x1024xf32> -> vector<4x1024xf32>
    %132 = arith.addf %126, %131 : vector<4x1024xf32>
    %c22_118 = arith.constant 22 : index
    %c0_119 = arith.constant 0 : index
    %c0_120 = arith.constant 0 : index
    %133 = vector.load %arg1[%c22_118, %c0_119, %c0_120] : memref<27x4x3xf32, #tpu.memory_space<vmem>>, vector<1x4x3xf32>
    %134 = vector.shape_cast %133 : vector<1x4x3xf32> to vector<4x3xf32>
    %c0_121 = arith.constant 0 : index
    %c0_122 = arith.constant 0 : index
    %c211 = arith.constant 211 : index
    %135 = vector.load %arg3[%c0_121, %c0_122, %c211] : memref<1x3x1280xf32, #tpu.memory_space<vmem>>, vector<1x3x1024xf32>
    %136 = vector.shape_cast %135 : vector<1x3x1024xf32> to vector<3x1024xf32>
    %cst_123 = arith.constant dense<0.000000e+00> : vector<4x1024xf32>
    %137 = tpu.matmul %134, %136, %cst_123 {dimension_numbers = #tpu.dot_dimension_numbers<[1], [0], [0], [1], [0, 0, 1, 1], [], []>} : vector<4x3xf32>, vector<3x1024xf32>, vector<4x1024xf32> -> vector<4x1024xf32>
    %138 = arith.addf %132, %137 : vector<4x1024xf32>
    %c23 = arith.constant 23 : index
    %c0_124 = arith.constant 0 : index
    %c0_125 = arith.constant 0 : index
    %139 = vector.load %arg1[%c23, %c0_124, %c0_125] : memref<27x4x3xf32, #tpu.memory_space<vmem>>, vector<1x4x3xf32>
    %140 = vector.shape_cast %139 : vector<1x4x3xf32> to vector<4x3xf32>
    %c0_126 = arith.constant 0 : index
    %c0_127 = arith.constant 0 : index
    %c212 = arith.constant 212 : index
    %141 = vector.load %arg3[%c0_126, %c0_127, %c212] : memref<1x3x1280xf32, #tpu.memory_space<vmem>>, vector<1x3x1024xf32>
    %142 = vector.shape_cast %141 : vector<1x3x1024xf32> to vector<3x1024xf32>
    %cst_128 = arith.constant dense<0.000000e+00> : vector<4x1024xf32>
    %143 = tpu.matmul %140, %142, %cst_128 {dimension_numbers = #tpu.dot_dimension_numbers<[1], [0], [0], [1], [0, 0, 1, 1], [], []>} : vector<4x3xf32>, vector<3x1024xf32>, vector<4x1024xf32> -> vector<4x1024xf32>
    %144 = arith.addf %138, %143 : vector<4x1024xf32>
    %c24 = arith.constant 24 : index
    %c0_129 = arith.constant 0 : index
    %c0_130 = arith.constant 0 : index
    %145 = vector.load %arg1[%c24, %c0_129, %c0_130] : memref<27x4x3xf32, #tpu.memory_space<vmem>>, vector<1x4x3xf32>
    %146 = vector.shape_cast %145 : vector<1x4x3xf32> to vector<4x3xf32>
    %c0_131 = arith.constant 0 : index
    %c0_132 = arith.constant 0 : index
    %c220 = arith.constant 220 : index
    %147 = vector.load %arg3[%c0_131, %c0_132, %c220] : memref<1x3x1280xf32, #tpu.memory_space<vmem>>, vector<1x3x1024xf32>
    %148 = vector.shape_cast %147 : vector<1x3x1024xf32> to vector<3x1024xf32>
    %cst_133 = arith.constant dense<0.000000e+00> : vector<4x1024xf32>
    %149 = tpu.matmul %146, %148, %cst_133 {dimension_numbers = #tpu.dot_dimension_numbers<[1], [0], [0], [1], [0, 0, 1, 1], [], []>} : vector<4x3xf32>, vector<3x1024xf32>, vector<4x1024xf32> -> vector<4x1024xf32>
    %150 = arith.addf %144, %149 : vector<4x1024xf32>
    %c25 = arith.constant 25 : index
    %c0_134 = arith.constant 0 : index
    %c0_135 = arith.constant 0 : index
    %151 = vector.load %arg1[%c25, %c0_134, %c0_135] : memref<27x4x3xf32, #tpu.memory_space<vmem>>, vector<1x4x3xf32>
    %152 = vector.shape_cast %151 : vector<1x4x3xf32> to vector<4x3xf32>
    %c0_136 = arith.constant 0 : index
    %c0_137 = arith.constant 0 : index
    %c221 = arith.constant 221 : index
    %153 = vector.load %arg3[%c0_136, %c0_137, %c221] : memref<1x3x1280xf32, #tpu.memory_space<vmem>>, vector<1x3x1024xf32>
    %154 = vector.shape_cast %153 : vector<1x3x1024xf32> to vector<3x1024xf32>
    %cst_138 = arith.constant dense<0.000000e+00> : vector<4x1024xf32>
    %155 = tpu.matmul %152, %154, %cst_138 {dimension_numbers = #tpu.dot_dimension_numbers<[1], [0], [0], [1], [0, 0, 1, 1], [], []>} : vector<4x3xf32>, vector<3x1024xf32>, vector<4x1024xf32> -> vector<4x1024xf32>
    %156 = arith.addf %150, %155 : vector<4x1024xf32>
    %c26 = arith.constant 26 : index
    %c0_139 = arith.constant 0 : index
    %c0_140 = arith.constant 0 : index
    %157 = vector.load %arg1[%c26, %c0_139, %c0_140] : memref<27x4x3xf32, #tpu.memory_space<vmem>>, vector<1x4x3xf32>
    %158 = vector.shape_cast %157 : vector<1x4x3xf32> to vector<4x3xf32>
    %c0_141 = arith.constant 0 : index
    %c0_142 = arith.constant 0 : index
    %c222 = arith.constant 222 : index
    %159 = vector.load %arg3[%c0_141, %c0_142, %c222] : memref<1x3x1280xf32, #tpu.memory_space<vmem>>, vector<1x3x1024xf32>
    %160 = vector.shape_cast %159 : vector<1x3x1024xf32> to vector<3x1024xf32>
    %cst_143 = arith.constant dense<0.000000e+00> : vector<4x1024xf32>
    %161 = tpu.matmul %158, %160, %cst_143 {dimension_numbers = #tpu.dot_dimension_numbers<[1], [0], [0], [1], [0, 0, 1, 1], [], []>} : vector<4x3xf32>, vector<3x1024xf32>, vector<4x1024xf32> -> vector<4x1024xf32>
    %162 = arith.addf %156, %161 : vector<4x1024xf32>
    %c0_144 = arith.constant 0 : index
    %c0_145 = arith.constant 0 : index
    %163 = vector.load %arg2[%c0_144, %c0_145] : memref<4x1xf32, #tpu.memory_space<vmem>>, vector<4x1xf32>
    %164 = vector.broadcast %163 : vector<4x1xf32> to vector<4x1024xf32>
    %165 = arith.addf %162, %164 : vector<4x1024xf32>
    %cst_146 = arith.constant 0.000000e+00 : f32
    %166 = vector.broadcast %cst_146 : f32 to vector<4x1024xf32>
    %167 = arith.cmpf ogt, %165, %166 : vector<4x1024xf32>
    %cst_147 = arith.constant 0.00999999977 : f32
    %168 = vector.broadcast %cst_147 : f32 to vector<4x1024xf32>
    %169 = arith.mulf %168, %165 : vector<4x1024xf32>
    %170 = arith.select %167, %165, %169 : vector<4x1024xi1>, vector<4x1024xf32>
    %c0_148 = arith.constant 0 : index
    %c0_149 = arith.constant 0 : index
    %c0_150 = arith.constant 0 : index
    %171 = vector.load %arg4[%c0_148, %c0_149, %c0_150] : memref<1x4x1024xf32, #tpu.memory_space<vmem>>, vector<1x4x1024xf32>
    %172 = vector.shape_cast %171 : vector<1x4x1024xf32> to vector<4x1024xf32>
    %173 = vector.shape_cast %170 : vector<4x1024xf32> to vector<1x4x1024xf32>
    tpu.vector_store %arg4[%c0_148, %c0_149, %c0_150], %173 {strides = array<i32>} : memref<1x4x1024xf32, #tpu.memory_space<vmem>>, vector<1x4x1024xf32>,
    return
  }
  func.func @transform_0(%arg0: i32) -> (i32, i32, i32) {
    %c0_i32 = arith.constant 0 : i32
    %c0_i32_0 = arith.constant 0 : i32
    %c0_i32_1 = arith.constant 0 : i32
    %c0_i32_2 = arith.constant 0 : i32
    return %c0_i32, %c0_i32_0, %c0_i32_1 : i32, i32, i32
  }
  func.func @transform_1(%arg0: i32) -> (i32, i32) {
    %c0_i32 = arith.constant 0 : i32
    %c0_i32_0 = arith.constant 0 : i32
    %c0_i32_1 = arith.constant 0 : i32
    return %c0_i32, %c0_i32_0 : i32, i32
  }
  func.func @transform_2(%arg0: i32) -> (i32, i32, i32) {
    %c0_i32 = arith.constant 0 : i32
    %c0_i32_0 = arith.constant 0 : i32
    %c0_i32_1 = arith.constant 0 : i32
    return %arg0, %c0_i32, %c0_i32_0 : i32, i32, i32
  }
  func.func @transform_3(%arg0: i32) -> (i32, i32, i32) {
    %c0_i32 = arith.constant 0 : i32
    %c0_i32_0 = arith.constant 0 : i32
    %c0_i32_1 = arith.constant 0 : i32
    return %arg0, %c0_i32, %c0_i32_0 : i32, i32, i32
  }
}

</mosaic_0001>

<bundles_post_ra>
// kernel: ssconv_forward.1
= control target key start
LH: loop header
LB: loop body
LE: loop exit
PB: predicated region body
PF: predicated region fallthrough
CT: control target
= control target key end

     0   :  { %s7357_s12 = smov 0   ;;  %s9437_s0 = inlined_call_operand.vmem [shape: f32[27,4,3], index: 0, kind: input, shape index: {}]   ;;  %s9438_s1 = inlined_call_operand.vmem [shape: f32[4,1], index: 1, kind: input, shape index: {}]   ;;  %s9439_s2 = inlined_call_operand.vmem [shape: f32[2,3,1280], index: 2, kind: input, shape index: {}]   ;;  %s9440_s3 = inlined_call_operand.vmem [shape: f32[2,4,1024], index: 3, kind: output, shape index: {}]  }
   0x1 LB: > { %s6796_s13 = sadd.s32 4294967295, %s7308_s12   ;;  %p6800_p0 = scmp.ge.s32.totalorder %s7308_s12, 1  ;;  %s7308_s12 = sphi %s7357_s12, %s13_s12  }
   0x2   : > { %p137_p1 = scmp.lt.s32.totalorder %s7308_s12, 3 }
   0x4   : > { %p138_p2 = pnand %p6800_p0, %p137_p1 }
   0x6   : > { %141 = sbr.rel (%p138_p2) target bundleno = 904 (0x388), region = 32 }
   0xb   : > { %p161_p3 = scmp.lt.s32.totalorder %s6796_s13, 1  ;;  %s7310_s18 = smov 127   ;;  %vm232_vm0 = vcmask 1042432   ;;  %vm219_vm1 = vcmask 1039360   ;;  %vm228_vm2 = vcmask 23552   ;;  %vm650_vm3 = vcmask 1031168  }
   0xc   : > { %s7311_s19 = smov 126   ;;  %s7312_s20 = smov 118   ;;  %vm893_vm4 = vcmask 965632   ;;  %vm1136_vm5 = vcmask 957440   ;;  %vm1379_vm6 = vcmask 949248   ;;  %vm1622_vm7 = vcmask 883712  }
   0xd   : > { %s9578_s13 = smov (!%p161_p3, %s6796_s13), 1  ;;  %s7313_s21 = smov 117   ;;  %vm1865_vm8 = vcmask 875520   ;;  %vm2108_vm9 = vcmask 867328   ;;  %vm2351_vm10 = vcmask 228352   ;;  %vm2594_vm11 = vcmask 220160  }
   0xe   : > { %s7265_s14 = smul.u32 40, %s9578_s13  ;;  %s7314_s22 = smov 116   ;;  %vm2837_vm12 = vcmask 211968   ;;  %vm3080_vm13 = vcmask 146432   ;;  %vm3323_vm14 = vcmask 138240   ;;  %vm3566_vm15 = vcmask 130048  }
   0xf   : > { %s7315_s23 = smov 108   ;;  %s7316_s28 = smov 107  }
  0x10   : > { %s7371_s17 = scalar_lea.vmem %s9439_s2, %s7265_s14  ;;  %s7317_s4 = smov 106  }
  0x11   : > { %v173_v0 = vld [vmem:[%s7371_s17 + $0x8] sm:$0x77]  ;;  %v172_v1 = vld [vmem:[%s7371_s17] sm:$0x77]  ;;  %v174_v2 = vld [vmem:[%s7371_s17 + $0x10] sm:$0x77] }
  0x12   : > { %186 = vst [vmem:[#allocation1 + $0x10] ss:$2 sm:$0xff] %v173_v0  ;;  %v175_v3 = vld [vmem:[%s7371_s17 + $0x18] sm:$0x77]  ;;  %v178_v8 = vld [vmem:[%s7371_s17 + $0x20] sm:$0x7] }
  0x13   : > { %184 = vst [vmem:[#allocation1] ss:$2 sm:$0xff] %v172_v1  ;;  %v606_v13 = vld [vmem:[%s7371_s17 + $0x8] sm:$0x77]  ;;  %v607_v16 = vld [vmem:[%s7371_s17 + $0x10] sm:$0x77] }
  0x14   : > { %188 = vst [vmem:[#allocation1 + $0x20] ss:$2 sm:$0xff] %v174_v2  ;;  %v608_v17 = vld [vmem:[%s7371_s17 + $0x18] sm:$0x77]  ;;  %v849_v23 = vld [vmem:[%s7371_s17 + $0x8] sm:$0x77] }
  0x15   : > { %190 = vst [vmem:[#allocation1 + $0x30] ss:$2 sm:$0xff] %v175_v3  ;;  %v605_v26 = vld [vmem:[%s7371_s17] sm:$0x77]  ;;  %v850_v28 = vld [vmem:[%s7371_s17 + $0x10] sm:$0x77] }
  0x16   : > { %v851_v34 = vld [vmem:[%s7371_s17 + $0x18] sm:$0x77]  ;;  %v609_v35 = vld [vmem:[%s7371_s17 + $0x20] sm:$0x7]  ;;  %v1093_v43 = vld [vmem:[%s7371_s17 + $0x10] sm:$0x77] }
  0x17   : > { %v848_v38 = vld [vmem:[%s7371_s17] sm:$0x77]  ;;  %v1092_v44 = vld [vmem:[%s7371_s17 + $0x8] sm:$0x77]  ;;  %v1094_v49 = vld [vmem:[%s7371_s17 + $0x18] sm:$0x77] }
  0x18   : > { %v852_v46 = vld [vmem:[%s7371_s17 + $0x20] sm:$0x7]  ;;  %v1336_v60 = vld [vmem:[%s7371_s17 + $0x10] sm:$0x77]  ;;  %v1335_v61 = vld [vmem:[%s7371_s17 + $0x8] sm:$0x77] }
  0x19   : > { %v193_v4 = vld.sshfl [vmem:[#allocation1 + $0x10] sm:$0xff pattern:$0x75316420]  ;;  %v194_v5 = vld.sshfl [vmem:[#allocation1 + $0x18] sm:$0xff pattern:$0x75316420] }
  0x1a   : > { %205 = vrot.lane.b32.xlu1 %v193_v4, %s7310_s18  ;;  %v191_v6 = vld.sshfl [vmem:[#allocation1] sm:$0xff pattern:$0x75316420]  ;;  %411 = vst [vmem:[#allocation1 + $0x10] ss:$2 sm:$0xff] %v173_v0  ;;  %s7318_s9 = smov 28  }
  0x1b   : > { %201 = vrot.lane.b32.xlu0 %v191_v6, %s7310_s18  ;;  %v195_v7 = vld.sshfl [vmem:[#allocation1 + $0x20] sm:$0xff pattern:$0x75316420]  ;;  %v196_v11 = vld.sshfl [vmem:[#allocation1 + $0x28] sm:$0xff pattern:$0x75316420] }
  0x1c   : > { %209 = vrot.lane.b32.xlu2 %v195_v7, %s7310_s18  ;;  %v198_v9 = vld.sshfl [vmem:[#allocation1 + $0x38] sm:$0xff pattern:$0x75316420]  ;;  %v197_v10 = vld.sshfl [vmem:[#allocation1 + $0x30] sm:$0xff pattern:$0x75316420] }
  0x1d   : > { %415 = vst [vmem:[#allocation1 + $0x30] ss:$2 sm:$0xff] %v175_v3  ;;  %v192_v12 = vld.sshfl [vmem:[#allocation1 + $0x8] sm:$0xff pattern:$0x75316420]  ;;  %s7319_s14 = smov 27  }
  0x1e   : > { %413 = vst [vmem:[#allocation1 + $0x20] ss:$2 sm:$0xff] %v174_v2  ;;  %v1091_v52 = vld [vmem:[%s7371_s17] sm:$0x77]  ;;  %s7322_s24 = smov 17   ;;  %s7323_s27 = smov 16  }
  0x1f   : > { %199 = vst [vmem:[#allocation1] ss:$2 sm:$0xff] %v178_v8  ;;  %v1095_v54 = vld [vmem:[%s7371_s17 + $0x20] sm:$0x7]  ;;  %s7324_s30 = smov 8   ;;  %s7325_s6 = smov 7  }
  0x20   : > { %v1334_v63 = vld [vmem:[%s7371_s17] sm:$0x77]  ;;  %s7335_s11 = smov 34  }
  0x21   : > { %v7382_v14 = vld.sshfl [vmem:[#allocation1 + $0x10] sm:$0xff pattern:$0x75316420]  ;;  %v7384_v15 = vld.sshfl [vmem:[#allocation1 + $0x18] sm:$0xff pattern:$0x75316420] }
  0x22   : > { %207 = vrot.lane.b32.xlu1 %v194_v5, %s7310_s18  ;;  %617 = vst [vmem:[#allocation1 + $0x10] ss:$2 sm:$0xff] %v606_v13  ;;  %v1338_v4 = vld [vmem:[%s7371_s17 + $0x20] sm:$0x7]  ;;  %v1578_v13 = vld [vmem:[%s7371_s17 + $0x8] sm:$0x77] }
  0x23   : > { %203 = vrot.lane.b32.xlu0 %v192_v12, %s7310_s18  ;;  %v1577_v7 = vld [vmem:[%s7371_s17] sm:$0x77]  ;;  %v1579_v12 = vld [vmem:[%s7371_s17 + $0x10] sm:$0x77] }
  0x24   : > { %211 = vrot.lane.b32.xlu2 %v196_v11, %s7310_s18  ;;  %v7391_v18 = vld.sshfl [vmem:[#allocation1 + $0x30] sm:$0xff pattern:$0x75316420]  ;;  %v7393_v19 = vld.sshfl [vmem:[#allocation1 + $0x38] sm:$0xff pattern:$0x75316420] }
  0x25   : > { %v7395_v20 = vld.sshfl [vmem:[#allocation1 + $0x20] sm:$0xff pattern:$0x75316420]  ;;  %v7397_v21 = vld.sshfl [vmem:[#allocation1 + $0x28] sm:$0xff pattern:$0x75316420] }
  0x26   : > { %619 = vst [vmem:[#allocation1 + $0x20] ss:$2 sm:$0xff] %v607_v16  ;;  %v200_v22 = vld.sshfl [vmem:[#allocation1] sm:$0xff pattern:$0x75316420] }
  0x27   : > { %409 = vst [vmem:[#allocation1] ss:$2 sm:$0xff] %v172_v1  ;;  %v1337_v1 = vld [vmem:[%s7371_s17 + $0x18] sm:$0x77] }
  0x28   : > { %621 = vst [vmem:[#allocation1 + $0x30] ss:$2 sm:$0xff] %v608_v17 }
  0x29   : > { %v625_v24 = vld.sshfl [vmem:[#allocation1 + $0x18] sm:$0xff pattern:$0x75316420]  ;;  %v624_v25 = vld.sshfl [vmem:[#allocation1 + $0x10] sm:$0xff pattern:$0x75316420] }
  0x2a   : > { %215 = vrot.lane.b32.xlu1 %v198_v9, %s7310_s18  ;;  %860 = vst [vmem:[#allocation1 + $0x10] ss:$2 sm:$0xff] %v849_v23 }
  0x2b   : > { %213 = vrot.lane.b32.xlu0 %v197_v10, %s7310_s18 }
  0x2c   : > { %217 = vrot.lane.b32.xlu2 %v200_v22, %s7310_s18  ;;  %s7320_s18 = smov 26  }
  0x2d   : > { %v627_v27 = vld.sshfl [vmem:[#allocation1 + $0x28] sm:$0xff pattern:$0x75316420]  ;;  %v626_v31 = vld.sshfl [vmem:[#allocation1 + $0x20] sm:$0xff pattern:$0x75316420] }
  0x2e   : > { %v7405_v29 = vld.sshfl [vmem:[#allocation1] sm:$0xff pattern:$0x75316420]  ;;  %v7407_v30 = vld.sshfl [vmem:[#allocation1 + $0x8] sm:$0xff pattern:$0x75316420] }
  0x2f   : > { %615 = vst [vmem:[#allocation1] ss:$2 sm:$0xff] %v605_v26  ;;  %v629_v32 = vld.sshfl [vmem:[#allocation1 + $0x38] sm:$0xff pattern:$0x75316420] }
  0x30   : > { %862 = vst [vmem:[#allocation1 + $0x20] ss:$2 sm:$0xff] %v850_v28  ;;  %v628_v33 = vld.sshfl [vmem:[#allocation1 + $0x30] sm:$0xff pattern:$0x75316420] }
  0x31   : > { %864 = vst [vmem:[#allocation1 + $0x30] ss:$2 sm:$0xff] %v851_v34  ;;  %v867_v40 = vld.sshfl [vmem:[#allocation1 + $0x10] sm:$0xff pattern:$0x75316420] }
  0x32   : > { %640 = vrot.lane.b32.xlu1 %v626_v31, %s7311_s19  ;;  %v868_v45 = vld.sshfl [vmem:[#allocation1 + $0x18] sm:$0xff pattern:$0x75316420]  ;;  %v1820_v31 = vld [vmem:[%s7371_s17] sm:$0x77] }
  0x33   : > { %638 = vrot.lane.b32.xlu0 %v625_v24, %s7311_s19  ;;  %1103 = vst [vmem:[#allocation1 + $0x10] ss:$2 sm:$0xff] %v1092_v44  ;;  %v1580_v24 = vld [vmem:[%s7371_s17 + $0x18] sm:$0x77]  ;;  %v6804_v44 = vld [vmem:[%s9437_s0 + $0x4] sm:$0xf] }
  0x34   : > { %636 = vrot.lane.b32.xlu2 %v624_v25, %s7311_s19 }
  0x36   : > { %v623_v36 = vld.sshfl [vmem:[#allocation1 + $0x8] sm:$0xff pattern:$0x75316420]  ;;  %v622_v37 = vld.sshfl [vmem:[#allocation1] sm:$0xff pattern:$0x75316420] }
  0x37   : > { %630 = vst [vmem:[#allocation1] ss:$2 sm:$0xff] %v609_v35  ;;  %v869_v41 = vld.sshfl [vmem:[#allocation1 + $0x20] sm:$0xff pattern:$0x75316420] }
  0x38   : > { %v870_v42 = vld.sshfl [vmem:[#allocation1 + $0x28] sm:$0xff pattern:$0x75316420]  ;;  %v872_v50 = vld.sshfl [vmem:[#allocation1 + $0x38] sm:$0xff pattern:$0x75316420] }
  0x39   : > { %1105 = vst [vmem:[#allocation1 + $0x20] ss:$2 sm:$0xff] %v1093_v43  ;;  %v871_v51 = vld.sshfl [vmem:[#allocation1 + $0x30] sm:$0xff pattern:$0x75316420] }
  0x3a   : > { %646 = vrot.lane.b32.xlu1 %v629_v32, %s7311_s19  ;;  %1107 = vst [vmem:[#allocation1 + $0x30] ss:$2 sm:$0xff] %v1094_v49  ;;  %v1111_v58 = vld.sshfl [vmem:[#allocation1 + $0x18] sm:$0xff pattern:$0x75316420] }
  0x3b   : > { %644 = vrot.lane.b32.xlu0 %v628_v33, %s7311_s19  ;;  %v1110_v62 = vld.sshfl [vmem:[#allocation1 + $0x10] sm:$0xff pattern:$0x75316420] }
  0x3c   : > { %642 = vrot.lane.b32.xlu2 %v627_v27, %s7311_s19  ;;  %1346 = vst [vmem:[#allocation1 + $0x10] ss:$2 sm:$0xff] %v1335_v61  ;;  %v1581_v27 = vld [vmem:[%s7371_s17 + $0x20] sm:$0x7] }
  0x3e   : > { %v631_v39 = vld.sshfl [vmem:[#allocation1] sm:$0xff pattern:$0x75316420] }
  0x3f   : > { %858 = vst [vmem:[#allocation1] ss:$2 sm:$0xff] %v848_v38 }
  0x40   : > { %v1112_v57 = vld.sshfl [vmem:[#allocation1 + $0x20] sm:$0xff pattern:$0x75316420]  ;;  %v1113_v59 = vld.sshfl [vmem:[#allocation1 + $0x28] sm:$0xff pattern:$0x75316420] }
  0x41   : > { %1348 = vst [vmem:[#allocation1 + $0x20] ss:$2 sm:$0xff] %v1336_v60  ;;  %v1115_v2 = vld.sshfl [vmem:[#allocation1 + $0x38] sm:$0xff pattern:$0x75316420] }
  0x42   : > { %634 = vrot.lane.b32.xlu1 %v623_v36, %s7311_s19  ;;  %v1114_v3 = vld.sshfl [vmem:[#allocation1 + $0x30] sm:$0xff pattern:$0x75316420] }
  0x43   : > { %632 = vrot.lane.b32.xlu0 %v622_v37, %s7311_s19  ;;  %1350 = vst [vmem:[#allocation1 + $0x30] ss:$2 sm:$0xff] %v1337_v1  ;;  %v1354_v10 = vld.sshfl [vmem:[#allocation1 + $0x18] sm:$0xff pattern:$0x75316420] }
  0x44   : > { %879 = vrot.lane.b32.xlu2 %v867_v40, %s7312_s20  ;;  %v1353_v16 = vld.sshfl [vmem:[#allocation1 + $0x10] sm:$0xff pattern:$0x75316420]  ;;  %v1821_v37 = vld [vmem:[%s7371_s17 + $0x8] sm:$0x77] }
  0x45   : > { %1589 = vst [vmem:[#allocation1 + $0x10] ss:$2 sm:$0xff] %v1578_v13  ;;  %v1822_v36 = vld [vmem:[%s7371_s17 + $0x10] sm:$0x77] }
  0x46   : > { %v866_v47 = vld.sshfl [vmem:[#allocation1 + $0x8] sm:$0xff pattern:$0x75316420]  ;;  %v865_v48 = vld.sshfl [vmem:[#allocation1] sm:$0xff pattern:$0x75316420] }
  0x47   : > { %873 = vst [vmem:[#allocation1] ss:$2 sm:$0xff] %v852_v46  ;;  %v1823_v46 = vld [vmem:[%s7371_s17 + $0x18] sm:$0x77] }
  0x48   : > { %v1355_v9 = vld.sshfl [vmem:[#allocation1 + $0x20] sm:$0xff pattern:$0x75316420]  ;;  %v1356_v11 = vld.sshfl [vmem:[#allocation1 + $0x28] sm:$0xff pattern:$0x75316420] }
  0x49   : > { %1591 = vst [vmem:[#allocation1 + $0x20] ss:$2 sm:$0xff] %v1579_v12 }
  0x4a   : > { %883 = vrot.lane.b32.xlu1 %v869_v41, %s7312_s20  ;;  %v1358_v22 = vld.sshfl [vmem:[#allocation1 + $0x38] sm:$0xff pattern:$0x75316420]  ;;  %v1357_v23 = vld.sshfl [vmem:[#allocation1 + $0x30] sm:$0xff pattern:$0x75316420] }
  0x4b   : > { %881 = vrot.lane.b32.xlu0 %v868_v45, %s7312_s20  ;;  %1593 = vst [vmem:[#allocation1 + $0x30] ss:$2 sm:$0xff] %v1580_v24  ;;  %v2306_v24 = vld [vmem:[%s7371_s17] sm:$0x77] }
  0x4c   : > { %648 = vrot.lane.b32.xlu2 %v631_v39, %s7311_s19  ;;  %v1597_v40 = vld.sshfl [vmem:[#allocation1 + $0x18] sm:$0xff pattern:$0x75316420]  ;;  %v1596_v41 = vld.sshfl [vmem:[#allocation1 + $0x10] sm:$0xff pattern:$0x75316420] }
  0x4d   : > { %1832 = vst [vmem:[#allocation1 + $0x10] ss:$2 sm:$0xff] %v1821_v37  ;;  %v2308_v37 = vld [vmem:[%s7371_s17 + $0x10] sm:$0x77] }
  0x4e   : > { %v874_v53 = vld.sshfl [vmem:[#allocation1] sm:$0xff pattern:$0x75316420] }
  0x4f   : > { %1101 = vst [vmem:[#allocation1] ss:$2 sm:$0xff] %v1091_v52 }
  0x50   : > { %v1598_v34 = vld.sshfl [vmem:[#allocation1 + $0x20] sm:$0xff pattern:$0x75316420]  ;;  %v1599_v35 = vld.sshfl [vmem:[#allocation1 + $0x28] sm:$0xff pattern:$0x75316420] }
  0x51   : > { %1834 = vst [vmem:[#allocation1 + $0x20] ss:$2 sm:$0xff] %v1822_v36 }
  0x52   : > { %877 = vrot.lane.b32.xlu1 %v866_v47, %s7312_s20  ;;  %v1601_v43 = vld.sshfl [vmem:[#allocation1 + $0x38] sm:$0xff pattern:$0x75316420]  ;;  %v1600_v45 = vld.sshfl [vmem:[#allocation1 + $0x30] sm:$0xff pattern:$0x75316420] }
  0x53   : > { %875 = vrot.lane.b32.xlu0 %v865_v48, %s7312_s20  ;;  %1836 = vst [vmem:[#allocation1 + $0x30] ss:$2 sm:$0xff] %v1823_v46  ;;  %v1824_v48 = vld [vmem:[%s7371_s17 + $0x20] sm:$0x7] }
  0x54   : > { %885 = vrot.lane.b32.xlu2 %v870_v42, %s7312_s20 }
  0x56   : > { %v1109_v55 = vld.sshfl [vmem:[#allocation1 + $0x8] sm:$0xff pattern:$0x75316420]  ;;  %v1108_v56 = vld.sshfl [vmem:[#allocation1] sm:$0xff pattern:$0x75316420] }
  0x57   : > { %1116 = vst [vmem:[#allocation1] ss:$2 sm:$0xff] %v1095_v54 }
  0x5a   : > { %889 = vrot.lane.b32.xlu1 %v872_v50, %s7312_s20 }
  0x5b   : > { %887 = vrot.lane.b32.xlu0 %v871_v51, %s7312_s20 }
  0x5c   : > { %891 = vrot.lane.b32.xlu2 %v874_v53, %s7312_s20 }
  0x5e   : > { %v1117_v0 = vld.sshfl [vmem:[#allocation1] sm:$0xff pattern:$0x75316420] }
  0x5f   : > { %1344 = vst [vmem:[#allocation1] ss:$2 sm:$0xff] %v1334_v63 }
  0x62   : > { %1120 = vrot.lane.b32.xlu1 %v1109_v55, %s7313_s21 }
  0x63   : > { %1118 = vrot.lane.b32.xlu0 %v1108_v56, %s7313_s21 }
  0x64   : > { %1122 = vrot.lane.b32.xlu2 %v1110_v62, %s7313_s21 }
  0x66   : > { %v1352_v5 = vld.sshfl [vmem:[#allocation1 + $0x8] sm:$0xff pattern:$0x75316420]  ;;  %v1351_v6 = vld.sshfl [vmem:[#allocation1] sm:$0xff pattern:$0x75316420] }
  0x67   : > { %1359 = vst [vmem:[#allocation1] ss:$2 sm:$0xff] %v1338_v4  ;;  %v2064_v4 = vld [vmem:[%s7371_s17 + $0x8] sm:$0x77] }
  0x6a   : > { %1126 = vrot.lane.b32.xlu1 %v1112_v57, %s7313_s21 }
  0x6b   : > { %1124 = vrot.lane.b32.xlu0 %v1111_v58, %s7313_s21 }
  0x6c   : > { %1128 = vrot.lane.b32.xlu2 %v1113_v59, %s7313_s21  ;;  %v2063_v59 = vld [vmem:[%s7371_s17] sm:$0x77] }
  0x6e   : > { %v1360_v8 = vld.sshfl [vmem:[#allocation1] sm:$0xff pattern:$0x75316420] }
  0x6f   : > { %1587 = vst [vmem:[#allocation1] ss:$2 sm:$0xff] %v1577_v7 }
  0x72   : > { %1132 = vrot.lane.b32.xlu1 %v1115_v2, %s7313_s21  ;;  %v1842_v2 = vld.sshfl [vmem:[#allocation1 + $0x28] sm:$0xff pattern:$0x75316420] }
  0x73   : > { %1130 = vrot.lane.b32.xlu0 %v1114_v3, %s7313_s21  ;;  %v2065_v3 = vld [vmem:[%s7371_s17 + $0x10] sm:$0x77] }
  0x74   : > { %1134 = vrot.lane.b32.xlu2 %v1117_v0, %s7313_s21  ;;  %s7321_s21 = smov 18  }
  0x76   : > { %v7444_v17 = vpop.permute.xlu2 %209  ;;  %v1595_v25 = vld.sshfl [vmem:[#allocation1 + $0x8] sm:$0xff pattern:$0x75316420]  ;;  %v1594_v26 = vld.sshfl [vmem:[#allocation1] sm:$0xff pattern:$0x75316420] }
  0x77   : > { %1602 = vst [vmem:[#allocation1] ss:$2 sm:$0xff] %v1581_v27  ;;  %v6837_v27 = vld [vmem:[%s9437_s0 + $0x8] sm:$0xf] }
  0x7a   : > { %1363 = vrot.lane.b32.xlu1 %v1352_v5, %s7314_s22 }
  0x7b   : > { %1361 = vrot.lane.b32.xlu0 %v1351_v6, %s7314_s22 }
  0x7c   : > { %1365 = vrot.lane.b32.xlu2 %v1353_v16, %s7314_s22 }
  0x7e   : > { %v7448_v28 = vpop.permute.xlu2 %211  ;;  %v7451_v32 = vld.sshfl [vmem:[#allocation1] sm:$0xff pattern:$0x75316420] }
  0x7f   : > { %1830 = vst [vmem:[#allocation1] ss:$2 sm:$0xff] %v1820_v31  ;;  %v224_v57 = vsel %vm219_vm1, %v7444_v17, %v7448_v28 }
  0x82   : > { %1369 = vrot.lane.b32.xlu1 %v1355_v9, %s7314_s22 }
  0x83   : > { %1367 = vrot.lane.b32.xlu0 %v1354_v10, %s7314_s22  ;;  %v2067_v10 = vld [vmem:[%s7371_s17 + $0x20] sm:$0x7] }
  0x84   : > { %1371 = vrot.lane.b32.xlu2 %v1356_v11, %s7314_s22 }
  0x86   : > { %v218_v33 = vpop.permute.xlu2 %217  ;;  %v7468_v52 = vld.sshfl [vmem:[#allocation1 + $0x8] sm:$0xff pattern:$0x75316420]  ;;  %v7470_v53 = vld.sshfl [vmem:[#allocation1] sm:$0xff pattern:$0x75316420] }
  0x87   : > { %1845 = vst [vmem:[#allocation1] ss:$2 sm:$0xff] %v1824_v48  ;;  %v2309_v48 = vld [vmem:[%s7371_s17 + $0x18] sm:$0x77] }
  0x8a   : > { %1375 = vrot.lane.b32.xlu1 %v1358_v22, %s7314_s22 }
  0x8b   : > { %1373 = vrot.lane.b32.xlu0 %v1357_v23, %s7314_s22 }
  0x8c   : > { %v206_v38 = vpop.permute.xlu1 %205  ;;  %1377 = vrot.lane.b32.xlu2 %v1360_v8, %s7314_s22 }
  0x8d   : > { %v202_v39 = vpop.permute.xlu0 %201 }
  0x8e   : > { %v7455_v42 = vpop.permute.xlu2 %636  ;;  %v7495_v62 = vld.sshfl [vmem:[#allocation1] sm:$0xff pattern:$0x75316420] }
  0x8f   : > { %2073 = vst [vmem:[#allocation1] ss:$2 sm:$0xff] %v2063_v59 }
  0x92   : > { %1606 = vrot.lane.b32.xlu1 %v1595_v25, %s7315_s23 }
  0x93   : > { %1604 = vrot.lane.b32.xlu0 %v1594_v26, %s7315_s23 }
  0x94   : > { %v208_v47 = vpop.permute.xlu1 %207  ;;  %1608 = vrot.lane.b32.xlu2 %v1596_v41, %s7315_s23 }
  0x95   : > { %v204_v49 = vpop.permute.xlu0 %203  ;;  %v222_v50 = vsel %vm219_vm1, %v206_v38, %v208_v47  ;;  %v223_v51 = vsel %vm219_vm1, %v208_v47, %v7444_v17 }
  0x96   : > { %v220_v54 = vsel %vm219_vm1, %v202_v39, %v204_v49  ;;  %v221_v55 = vsel %vm219_vm1, %v204_v49, %v206_v38  ;;  %6809 = vmatpush.msk.msra.mxu2 %vm232_vm0, %v222_v50  ;;  %6811 = vmatpush.msk.msra.mxu3 %vm232_vm0, %v223_v51  ;;  %v7476_v56 = vpop.permute.xlu2 %642  ;;  %v2081_v12 = vld.sshfl [vmem:[#allocation1 + $0x8] sm:$0xff pattern:$0x75316420]  ;;  %v2080_v13 = vld.sshfl [vmem:[#allocation1] sm:$0xff pattern:$0x75316420] }
  0x97   : > { %6805 = vmatpush.msk.msra.mxu0 %vm232_vm0, %v220_v54  ;;  %6807 = vmatpush.msk.msra.mxu1 %vm232_vm0, %v221_v55  ;;  %2088 = vst [vmem:[#allocation1] ss:$2 sm:$0xff] %v2067_v10  ;;  %v2307_v38 = vld [vmem:[%s7371_s17 + $0x8] sm:$0x77]  ;;  %v2310_v50 = vld [vmem:[%s7371_s17 + $0x20] sm:$0x7] }
  0x98   : > { %6810 = vmatmul.msk.f32.vlgmr.msra.gmra.mxu2 %vm228_vm2, %v6804_v44  ;;  %6812 = vmatmul.msk.f32.vlgmr.msra.gmra.mxu3 %vm228_vm2, %v6804_v44 }
  0x99   : > { %6813 = vmatpush.msk.msrb.mxu0 %vm232_vm0, %v224_v57  ;;  %6808 = vmatmul.msk.f32.vlgmr.msra.gmra.mxu1 %vm228_vm2, %v6804_v44 }
  0x9a   : > { %1612 = vrot.lane.b32.xlu1 %v1598_v34, %s7315_s23  ;;  %6806 = vmatmul.msk.f32.vlgmr.msra.gmra.mxu0 %vm228_vm2, %v6804_v44 }
  0x9b   : > { %1610 = vrot.lane.b32.xlu0 %v1597_v40, %s7315_s23  ;;  %6821 = vmatpush.msk.msra.mxu0 %vm232_vm0, %v7405_v29  ;;  %v1841_v29 = vld.sshfl [vmem:[#allocation1 + $0x20] sm:$0xff pattern:$0x75316420] }
  0x9c   : > { %v216_v58 = vpop.permute.xlu1 %215  ;;  %1614 = vrot.lane.b32.xlu2 %v1599_v35, %s7315_s23  ;;  %2077 = vst [vmem:[#allocation1 + $0x20] ss:$2 sm:$0xff] %v2065_v3 }
  0x9d   : > { %v214_v60 = vpop.permute.xlu0 %213  ;;  %v227_v61 = vsel %vm219_vm1, %v216_v58, %v218_v33 }
  0x9e   : > { %v225_v63 = vsel %vm219_vm1, %v7448_v28, %v214_v60  ;;  %v226_v0 = vsel %vm219_vm1, %v214_v60, %v216_v58  ;;  %6819 = vmatpush.msk.msrb.mxu3 %vm232_vm0, %v227_v61  ;;  %v7501_v1 = vpop.permute.xlu2 %879  ;;  %v7567_v28 = vld.sshfl [vmem:[#allocation1] sm:$0xff pattern:$0x75316420]  ;;  %v6854_v58 = vld [vmem:[%s9437_s0 + $0xc] sm:$0xf]  ;;  %vm3809_vm1 = vcmask 64512  }
  0x9f   : > { %6815 = vmatpush.msk.msrb.mxu1 %vm232_vm0, %v225_v63  ;;  %6817 = vmatpush.msk.msrb.mxu2 %vm232_vm0, %v226_v0  ;;  %2316 = vst [vmem:[#allocation1] ss:$2 sm:$0xff] %v2306_v24  ;;  %v2549_v60 = vld [vmem:[%s7371_s17] sm:$0x77] }
  0xa0   : > { %6818 = vmatmul.msk.f32.vlgmr.msrb.gmra.mxu2 %vm228_vm2, %v6804_v44  ;;  %6820 = vmatmul.msk.f32.vlgmr.msrb.gmra.mxu3 %vm228_vm2, %v6804_v44 }
  0xa1   : > { %6825 = vmatpush.msk.msra.mxu2 %vm232_vm0, %v7382_v14  ;;  %6827 = vmatpush.msk.msra.mxu3 %vm232_vm0, %v7384_v15  ;;  %v171_v14 = vld [vmem:[%s9437_s0] sm:$0xf] }
  0xa2   : > { %1618 = vrot.lane.b32.xlu1 %v1601_v43, %s7315_s23  ;;  %6814 = vmatmul.msk.f32.vlgmr.msrb.gmra.mxu0 %vm228_vm2, %v6804_v44 }
  0xa3   : > { %6833 = vmatpush.msk.msrb.mxu2 %vm232_vm0, %v7391_v18  ;;  %1616 = vrot.lane.b32.xlu0 %v1600_v45, %s7315_s23  ;;  %v1840_v18 = vld.sshfl [vmem:[#allocation1 + $0x18] sm:$0xff pattern:$0x75316420]  ;;  %v2084_v35 = vld.sshfl [vmem:[#allocation1 + $0x20] sm:$0xff pattern:$0x75316420] }
  0xa4   : > { %6835 = vmatpush.msk.msrb.mxu3 %vm232_vm0, %v7393_v19  ;;  %v641_v5 = vpop.permute.xlu1 %640  ;;  %6816 = vmatmul.msk.f32.vlgmr.msrb.gmra.mxu1 %vm228_vm2, %v6804_v44  ;;  %v1839_v19 = vld.sshfl [vmem:[#allocation1 + $0x10] sm:$0xff pattern:$0x75316420]  ;;  %v2085_v36 = vld.sshfl [vmem:[#allocation1 + $0x28] sm:$0xff pattern:$0x75316420] }
  0xa5   : > { %v639_v15 = vpop.permute.xlu0 %638  ;;  %1620 = vrot.lane.b32.xlu2 %v7451_v32, %s7315_s23  ;;  %6823 = vmatpush.msk.msra.mxu1 %vm232_vm0, %v7407_v30  ;;  %2075 = vst [vmem:[#allocation1 + $0x10] ss:$2 sm:$0xff] %v2064_v4  ;;  %v1844_v30 = vld.sshfl [vmem:[#allocation1 + $0x38] sm:$0xff pattern:$0x75316420]  ;;  %v655_v34 = vsel %vm650_vm3, %v641_v5, %v7476_v56 }
  0xa6   : > { %v653_v6 = vsel %vm650_vm3, %v7455_v42, %v639_v15  ;;  %v654_v7 = vsel %vm650_vm3, %v639_v15, %v641_v5  ;;  %v649_v8 = vpop.permute.xlu2 %648  ;;  %6829 = vmatpush.msk.msrb.mxu0 %vm232_vm0, %v7395_v20  ;;  %v1843_v20 = vld.sshfl [vmem:[#allocation1 + $0x30] sm:$0xff pattern:$0x75316420]  ;;  %2320 = vst [vmem:[#allocation1 + $0x20] ss:$2 sm:$0xff] %v2308_v37 }
  0xa7   : > { %6831 = vmatpush.msk.msrb.mxu1 %vm232_vm0, %v7397_v21  ;;  %v2066_v21 = vld [vmem:[%s7371_s17 + $0x18] sm:$0x77]  ;;  %v2323_v54 = vld.sshfl [vmem:[#allocation1] sm:$0xff pattern:$0x75316420] }
  0xa8   : > { %6826 = vmatmul.msk.f32.vlgmr.msra.gmra.mxu2 %vm228_vm2, %v171_v14  ;;  %6828 = vmatmul.msk.f32.vlgmr.msra.gmra.mxu3 %vm228_vm2, %v171_v14  ;;  %2079 = vst [vmem:[#allocation1 + $0x30] ss:$2 sm:$0xff] %v2066_v21  ;;  %v2551_v4 = vld [vmem:[%s7371_s17 + $0x10] sm:$0x77]  ;;  %v2550_v5 = vld [vmem:[%s7371_s17 + $0x8] sm:$0x77] }
  0xa9   : > { %6842 = vmatpush.msk.msra.mxu2 %vm232_vm0, %v653_v6  ;;  %6844 = vmatpush.msk.msra.mxu3 %vm232_vm0, %v654_v7  ;;  %v2794_v37 = vld [vmem:[%s7371_s17 + $0x10] sm:$0x77] }
  0xaa   : > { %1849 = vrot.lane.b32.xlu1 %v7468_v52, %s7316_s28  ;;  %6822 = vmatmul.msk.f32.vlgmr.msra.gmra.mxu0 %vm228_vm2, %v171_v14 }
  0xab   : > { %1847 = vrot.lane.b32.xlu0 %v7470_v53, %s7316_s28  ;;  %v2324_v53 = vld.sshfl [vmem:[#allocation1 + $0x8] sm:$0xff pattern:$0x75316420] }
  0xac   : > { %v647_v9 = vpop.permute.xlu1 %646  ;;  %6824 = vmatmul.msk.f32.vlgmr.msra.gmra.mxu1 %vm228_vm2, %v171_v14  ;;  %v2083_v41 = vld.sshfl [vmem:[#allocation1 + $0x18] sm:$0xff pattern:$0x75316420]  ;;  %2331 = vst [vmem:[#allocation1] ss:$2 sm:$0xff] %v2310_v50 }
  0xad   : > { %v645_v11 = vpop.permute.xlu0 %644  ;;  %1851 = vrot.lane.b32.xlu2 %v1839_v19, %s7316_s28  ;;  %v658_v17 = vsel %vm650_vm3, %v647_v9, %v649_v8  ;;  %v2328_v3 = vld.sshfl [vmem:[#allocation1 + $0x28] sm:$0xff pattern:$0x75316420]  ;;  %v2796_v50 = vld [vmem:[%s7371_s17 + $0x20] sm:$0x7] }
  0xae   : > { %v657_v16 = vsel %vm650_vm3, %v645_v11, %v647_v9  ;;  %v7550_v22 = vpop.permute.xlu2 %885  ;;  %v656_v31 = vsel %vm650_vm3, %v7476_v56, %v645_v11  ;;  %v2552_v9 = vld [vmem:[%s7371_s17 + $0x18] sm:$0x77]  ;;  %v2553_v11 = vld [vmem:[%s7371_s17 + $0x20] sm:$0x7] }
  0xaf   : > { %v2087_v46 = vld.sshfl [vmem:[#allocation1 + $0x38] sm:$0xff pattern:$0x75316420]  ;;  %v2086_v47 = vld.sshfl [vmem:[#allocation1 + $0x30] sm:$0xff pattern:$0x75316420] }
  0xb0   : > { %6834 = vmatmul.msk.f32.vlgmr.msrb.gmra.mxu2 %vm228_vm2, %v171_v14  ;;  %6836 = vmatmul.msk.f32.vlgmr.msrb.gmra.mxu3 %vm228_vm2, %v171_v14  ;;  %2322 = vst [vmem:[#allocation1 + $0x30] ss:$2 sm:$0xff] %v2309_v48 }
  0xb1   : > { %6850 = vmatpush.msk.msrb.mxu2 %vm232_vm0, %v657_v16  ;;  %6852 = vmatpush.msk.msrb.mxu3 %vm232_vm0, %v658_v17 }
  0xb2   : > { %1855 = vrot.lane.b32.xlu1 %v1841_v29, %s7316_s28  ;;  %6830 = vmatmul.msk.f32.vlgmr.msrb.gmra.mxu0 %vm228_vm2, %v171_v14 }
  0xb3   : > { %1853 = vrot.lane.b32.xlu0 %v1840_v18, %s7316_s28  ;;  %v7629_v63 = vld.sshfl [vmem:[#allocation1] sm:$0xff pattern:$0x75316420] }
  0xb4   : > { %v635_v23 = vpop.permute.xlu1 %634  ;;  %6832 = vmatmul.msk.f32.vlgmr.msrb.gmra.mxu1 %vm228_vm2, %v171_v14  ;;  %2559 = vst [vmem:[#allocation1] ss:$2 sm:$0xff] %v2549_v60 }
  0xb5   : > { %v652_v25 = vsel %vm650_vm3, %v635_v23, %v7455_v42  ;;  %v633_v26 = vpop.permute.xlu0 %632  ;;  %1857 = vrot.lane.b32.xlu2 %v1842_v2, %s7316_s28  ;;  %v2082_v42 = vld.sshfl [vmem:[#allocation1 + $0x10] sm:$0xff pattern:$0x75316420]  ;;  %v2327_v2 = vld.sshfl [vmem:[#allocation1 + $0x20] sm:$0xff pattern:$0x75316420] }
  0xb6   : > { %v651_v32 = vsel %vm650_vm3, %v633_v26, %v635_v23  ;;  %6840 = vmatpush.msk.msra.mxu1 %vm232_vm0, %v652_v25  ;;  %v7573_v33 = vpop.permute.xlu2 %891  ;;  %2318 = vst [vmem:[#allocation1 + $0x10] ss:$2 sm:$0xff] %v2307_v38  ;;  %v2792_v26 = vld [vmem:[%s7371_s17] sm:$0x77]  ;;  %v2793_v38 = vld [vmem:[%s7371_s17 + $0x8] sm:$0x77] }
  0xb7   : > { %6838 = vmatpush.msk.msra.mxu0 %vm232_vm0, %v651_v32  ;;  %2563 = vst [vmem:[#allocation1 + $0x20] ss:$2 sm:$0xff] %v2551_v4  ;;  %v2329_v21 = vld.sshfl [vmem:[#allocation1 + $0x30] sm:$0xff pattern:$0x75316420]  ;;  %vm4052_vm3 = vcmask 56320  }
  0xb8   : > { %6848 = vmatpush.msk.msrb.mxu1 %vm232_vm0, %v656_v31  ;;  %6843 = vmatmul.msk.f32.vlgmr.msra.gmra.mxu2 %vm228_vm2, %v6837_v27 }
  0xb9   : > { %6846 = vmatpush.msk.msrb.mxu0 %vm232_vm0, %v655_v34  ;;  %6845 = vmatmul.msk.f32.vlgmr.msra.gmra.mxu3 %vm228_vm2, %v6837_v27 }
  0xba   : > { %1861 = vrot.lane.b32.xlu1 %v1844_v30, %s7316_s28  ;;  %6839 = vmatmul.msk.f32.vlgmr.msra.gmra.mxu0 %vm228_vm2, %v6837_v27  ;;  %v6871_v30 = vld [vmem:[%s9437_s0 + $0x10] sm:$0xf] }
  0xbb   : > { %1859 = vrot.lane.b32.xlu0 %v1843_v20, %s7316_s28  ;;  %v2330_v20 = vld.sshfl [vmem:[#allocation1 + $0x38] sm:$0xff pattern:$0x75316420]  ;;  %v2567_v16 = vld.sshfl [vmem:[#allocation1 + $0x8] sm:$0xff pattern:$0x75316420] }
  0xbc   : > { %v884_v39 = vpop.permute.xlu1 %883  ;;  %6841 = vmatmul.msk.f32.vlgmr.msra.gmra.mxu1 %vm228_vm2, %v6837_v27  ;;  %2565 = vst [vmem:[#allocation1 + $0x30] ss:$2 sm:$0xff] %v2552_v9  ;;  %v2566_v17 = vld.sshfl [vmem:[#allocation1] sm:$0xff pattern:$0x75316420] }
  0xbd   : > { %v882_v40 = vpop.permute.xlu0 %881  ;;  %1863 = vrot.lane.b32.xlu2 %v7495_v62, %s7316_s28  ;;  %v898_v57 = vsel %vm893_vm4, %v884_v39, %v7550_v22  ;;  %v2326_v19 = vld.sshfl [vmem:[#allocation1 + $0x18] sm:$0xff pattern:$0x75316420]  ;;  %v2325_v6 = vld.sshfl [vmem:[#allocation1 + $0x10] sm:$0xff pattern:$0x75316420] }
  0xbe   : > { %v896_v43 = vsel %vm893_vm4, %v7501_v1, %v882_v40  ;;  %v897_v44 = vsel %vm893_vm4, %v882_v40, %v884_v39  ;;  %v7593_v45 = vpop.permute.xlu2 %1122  ;;  %2561 = vst [vmem:[#allocation1 + $0x10] ss:$2 sm:$0xff] %v2550_v5  ;;  %v3038_v9 = vld [vmem:[%s7371_s17 + $0x18] sm:$0x77] }
  0xbf   : > { %6859 = vmatpush.msk.msra.mxu2 %vm232_vm0, %v896_v43  ;;  %6861 = vmatpush.msk.msra.mxu3 %vm232_vm0, %v897_v44  ;;  %2574 = vst [vmem:[#allocation1] ss:$2 sm:$0xff] %v2553_v11  ;;  %v6888_v44 = vld [vmem:[%s9437_s0 + $0x14] sm:$0xf] }
  0xc0   : > { %6851 = vmatmul.msk.f32.vlgmr.msrb.gmra.mxu2 %vm228_vm2, %v6837_v27 }
  0xc1   : > { %6853 = vmatmul.msk.f32.vlgmr.msrb.gmra.mxu3 %vm228_vm2, %v6837_v27 }
  0xc2   : > { %2092 = vrot.lane.b32.xlu1 %v2081_v12, %s7317_s4  ;;  %6847 = vmatmul.msk.f32.vlgmr.msrb.gmra.mxu0 %vm228_vm2, %v6837_v27 }
  0xc3   : > { %2090 = vrot.lane.b32.xlu0 %v2080_v13, %s7317_s4 }
  0xc4   : > { %v878_v49 = vpop.permute.xlu1 %877  ;;  %6849 = vmatmul.msk.f32.vlgmr.msrb.gmra.mxu1 %vm228_vm2, %v6837_v27 }
  0xc5   : > { %v895_v51 = vsel %vm893_vm4, %v878_v49, %v7501_v1  ;;  %v876_v52 = vpop.permute.xlu0 %875  ;;  %2094 = vrot.lane.b32.xlu2 %v2082_v42, %s7317_s4  ;;  %v2569_v40 = vld.sshfl [vmem:[#allocation1 + $0x18] sm:$0xff pattern:$0x75316420]  ;;  %v2568_v43 = vld.sshfl [vmem:[#allocation1 + $0x10] sm:$0xff pattern:$0x75316420] }
  0xc6   : > { %v894_v55 = vsel %vm893_vm4, %v876_v52, %v878_v49  ;;  %6857 = vmatpush.msk.msra.mxu1 %vm232_vm0, %v895_v51  ;;  %v7610_v56 = vpop.permute.xlu2 %1128  ;;  %v7682_v31 = vld.sshfl [vmem:[#allocation1] sm:$0xff pattern:$0x75316420]  ;;  %2804 = vst [vmem:[#allocation1 + $0x10] ss:$2 sm:$0xff] %v2793_v38 }
  0xc7   : > { %6855 = vmatpush.msk.msra.mxu0 %vm232_vm0, %v894_v55  ;;  %2802 = vst [vmem:[#allocation1] ss:$2 sm:$0xff] %v2792_v26  ;;  %v2795_v49 = vld [vmem:[%s7371_s17 + $0x18] sm:$0x77] }
  0xc8   : > { %6860 = vmatmul.msk.f32.vlgmr.msra.gmra.mxu2 %vm228_vm2, %v6854_v58 }
  0xc9   : > { %6863 = vmatpush.msk.msrb.mxu0 %vm232_vm0, %v898_v57  ;;  %6862 = vmatmul.msk.f32.vlgmr.msra.gmra.mxu3 %vm228_vm2, %v6854_v58 }
  0xca   : > { %2098 = vrot.lane.b32.xlu1 %v2084_v35, %s7317_s4  ;;  %6856 = vmatmul.msk.f32.vlgmr.msra.gmra.mxu0 %vm228_vm2, %v6854_v58  ;;  %v2570_v35 = vld.sshfl [vmem:[#allocation1 + $0x20] sm:$0xff pattern:$0x75316420] }
  0xcb   : > { %2096 = vrot.lane.b32.xlu0 %v2083_v41, %s7317_s4 }
  0xcc   : > { %v890_v59 = vpop.permute.xlu1 %889  ;;  %6858 = vmatmul.msk.f32.vlgmr.msra.gmra.mxu1 %vm228_vm2, %v6854_v58 }
  0xcd   : > { %v901_v61 = vsel %vm893_vm4, %v890_v59, %v7573_v33  ;;  %v888_v62 = vpop.permute.xlu0 %887  ;;  %2100 = vrot.lane.b32.xlu2 %v2085_v36, %s7317_s4  ;;  %v2571_v36 = vld.sshfl [vmem:[#allocation1 + $0x28] sm:$0xff pattern:$0x75316420]  ;;  %v2811_v4 = vld.sshfl [vmem:[#allocation1 + $0x10] sm:$0xff pattern:$0x75316420] }
  0xce   : > { %v899_v0 = vsel %vm893_vm4, %v7550_v22, %v888_v62  ;;  %v900_v1 = vsel %vm893_vm4, %v888_v62, %v890_v59  ;;  %6869 = vmatpush.msk.msrb.mxu3 %vm232_vm0, %v901_v61  ;;  %v1135_v29 = vpop.permute.xlu2 %1134  ;;  %2806 = vst [vmem:[#allocation1 + $0x20] ss:$2 sm:$0xff] %v2794_v37  ;;  %v3037_v61 = vld [vmem:[%s7371_s17 + $0x10] sm:$0x77]  ;;  %vm4295_vm4 = vcmask 48128  }
  0xcf   : > { %6865 = vmatpush.msk.msrb.mxu1 %vm232_vm0, %v899_v0  ;;  %6867 = vmatpush.msk.msrb.mxu2 %vm232_vm0, %v900_v1 }
  0xd0   : > { %6868 = vmatmul.msk.f32.vlgmr.msrb.gmra.mxu2 %vm228_vm2, %v6854_v58 }
  0xd1   : > { %6870 = vmatmul.msk.f32.vlgmr.msrb.gmra.mxu3 %vm228_vm2, %v6854_v58 }
  0xd2   : > { %2104 = vrot.lane.b32.xlu1 %v2087_v46, %s7317_s4  ;;  %6864 = vmatmul.msk.f32.vlgmr.msrb.gmra.mxu0 %vm228_vm2, %v6854_v58 }
  0xd3   : > { %2102 = vrot.lane.b32.xlu0 %v2086_v47, %s7317_s4  ;;  %v2573_v47 = vld.sshfl [vmem:[#allocation1 + $0x38] sm:$0xff pattern:$0x75316420] }
  0xd4   : > { %v1121_v14 = vpop.permute.xlu1 %1120  ;;  %6866 = vmatmul.msk.f32.vlgmr.msrb.gmra.mxu1 %vm228_vm2, %v6854_v58  ;;  %v2809_v58 = vld.sshfl [vmem:[#allocation1] sm:$0xff pattern:$0x75316420] }
  0xd5   : > { %v1138_v15 = vsel %vm1136_vm5, %v1121_v14, %v7593_v45  ;;  %v1119_v18 = vpop.permute.xlu0 %1118  ;;  %2106 = vrot.lane.b32.xlu2 %v7567_v28, %s7317_s4  ;;  %v7729_v59 = vld.sshfl [vmem:[#allocation1 + $0x28] sm:$0xff pattern:$0x75316420]  ;;  %v2813_v60 = vld.sshfl [vmem:[#allocation1 + $0x20] sm:$0xff pattern:$0x75316420] }
  0xd6   : > { %v1137_v7 = vsel %vm1136_vm5, %v1119_v18, %v1121_v14  ;;  %6874 = vmatpush.msk.msra.mxu1 %vm232_vm0, %v1138_v15  ;;  %v7651_v8 = vpop.permute.xlu2 %1365  ;;  %3049 = vst [vmem:[#allocation1 + $0x20] ss:$2 sm:$0xff] %v3037_v61  ;;  %v3035_v18 = vld [vmem:[%s7371_s17] sm:$0x77]  ;;  %v3523_v61 = vld [vmem:[%s7371_s17 + $0x10] sm:$0x77] }
  0xd7   : > { %6872 = vmatpush.msk.msra.mxu0 %vm232_vm0, %v1137_v7  ;;  %v6905_v7 = vld [vmem:[%s9437_s0 + $0x18] sm:$0xf] }
  0xda   : > { %2335 = vrot.lane.b32.xlu1 %v2324_v53, %s7318_s9  ;;  %6873 = vmatmul.msk.f32.vlgmr.msra.gmra.mxu0 %vm228_vm2, %v6871_v30  ;;  %v2572_v53 = vld.sshfl [vmem:[#allocation1 + $0x30] sm:$0xff pattern:$0x75316420] }
  0xdb   : > { %2333 = vrot.lane.b32.xlu0 %v2323_v54, %s7318_s9  ;;  %v2810_v54 = vld.sshfl [vmem:[#allocation1 + $0x8] sm:$0xff pattern:$0x75316420]  ;;  %2808 = vst [vmem:[#allocation1 + $0x30] ss:$2 sm:$0xff] %v2795_v49 }
  0xdc   : > { %v1127_v10 = vpop.permute.xlu1 %1126  ;;  %6875 = vmatmul.msk.f32.vlgmr.msra.gmra.mxu1 %vm228_vm2, %v6871_v30  ;;  %2817 = vst [vmem:[#allocation1] ss:$2 sm:$0xff] %v2796_v50  ;;  %v3281_v49 = vld [vmem:[%s7371_s17 + $0x18] sm:$0x77]  ;;  %v3282_v50 = vld [vmem:[%s7371_s17 + $0x20] sm:$0x7] }
  0xdd   : > { %v1141_v12 = vsel %vm1136_vm5, %v1127_v10, %v7610_v56  ;;  %v1125_v13 = vpop.permute.xlu0 %1124  ;;  %2337 = vrot.lane.b32.xlu2 %v2325_v6, %s7318_s9  ;;  %v3056_v26 = vld.sshfl [vmem:[#allocation1 + $0x20] sm:$0xff pattern:$0x75316420] }
  0xde   : > { %v1139_v22 = vsel %vm1136_vm5, %v7593_v45, %v1125_v13  ;;  %v1140_v23 = vsel %vm1136_vm5, %v1125_v13, %v1127_v10  ;;  %6880 = vmatpush.msk.msrb.mxu0 %vm232_vm0, %v1141_v12  ;;  %v7670_v24 = vpop.permute.xlu2 %1371  ;;  %v3039_v10 = vld [vmem:[%s7371_s17 + $0x20] sm:$0x7] }
  0xdf   : > { %6876 = vmatpush.msk.msra.mxu2 %vm232_vm0, %v1139_v22  ;;  %6878 = vmatpush.msk.msra.mxu3 %vm232_vm0, %v1140_v23 }
  0xe0   : > { %6877 = vmatmul.msk.f32.vlgmr.msra.gmra.mxu2 %vm228_vm2, %v6871_v30  ;;  %6879 = vmatmul.msk.f32.vlgmr.msra.gmra.mxu3 %vm228_vm2, %v6871_v30 }
  0xe2   : > { %2341 = vrot.lane.b32.xlu1 %v2327_v2, %s7318_s9  ;;  %6881 = vmatmul.msk.f32.vlgmr.msrb.gmra.mxu0 %vm228_vm2, %v6871_v30 }
  0xe3   : > { %2339 = vrot.lane.b32.xlu0 %v2326_v19, %s7318_s9  ;;  %v2818_v15 = vld.sshfl [vmem:[#allocation1] sm:$0xff pattern:$0x75316420] }
  0xe4   : > { %v1133_v25 = vpop.permute.xlu1 %1132  ;;  %3045 = vst [vmem:[#allocation1] ss:$2 sm:$0xff] %v3035_v18  ;;  %v3521_v18 = vld [vmem:[%s7371_s17] sm:$0x77] }
  0xe5   : > { %v1144_v27 = vsel %vm1136_vm5, %v1133_v25, %v1135_v29  ;;  %v1131_v28 = vpop.permute.xlu0 %1130  ;;  %2343 = vrot.lane.b32.xlu2 %v2328_v3, %s7318_s9  ;;  %v2812_v3 = vld.sshfl [vmem:[#allocation1 + $0x18] sm:$0xff pattern:$0x75316420] }
  0xe6   : > { %v1142_v32 = vsel %vm1136_vm5, %v7610_v56, %v1131_v28  ;;  %v1143_v33 = vsel %vm1136_vm5, %v1131_v28, %v1133_v25  ;;  %6886 = vmatpush.msk.msrb.mxu3 %vm232_vm0, %v1144_v27  ;;  %v1378_v34 = vpop.permute.xlu2 %1377  ;;  %v7784_v25 = vld.sshfl [vmem:[#allocation1 + $0x28] sm:$0xff pattern:$0x75316420]  ;;  %v3280_v27 = vld [vmem:[%s7371_s17 + $0x10] sm:$0x77]  ;;  %vm4538_vm5 = vcmask 457728  }
  0xe7   : > { %6882 = vmatpush.msk.msrb.mxu1 %vm232_vm0, %v1142_v32  ;;  %6884 = vmatpush.msk.msrb.mxu2 %vm232_vm0, %v1143_v33  ;;  %v3279_v28 = vld [vmem:[%s7371_s17 + $0x8] sm:$0x77]  ;;  %3292 = vst [vmem:[#allocation1 + $0x20] ss:$2 sm:$0xff] %v3280_v27  ;;  %v3766_v27 = vld [vmem:[%s7371_s17 + $0x10] sm:$0x77] }
  0xe8   : > { %6883 = vmatmul.msk.f32.vlgmr.msrb.gmra.mxu1 %vm228_vm2, %v6871_v30  ;;  %6885 = vmatmul.msk.f32.vlgmr.msrb.gmra.mxu2 %vm228_vm2, %v6871_v30 }
  0xe9   : > { %6887 = vmatmul.msk.f32.vlgmr.msrb.gmra.mxu3 %vm228_vm2, %v6871_v30 }
  0xea   : > { %2347 = vrot.lane.b32.xlu1 %v2330_v20, %s7318_s9  ;;  %v2815_v20 = vld.sshfl [vmem:[#allocation1 + $0x30] sm:$0xff pattern:$0x75316420] }
  0xeb   : > { %2345 = vrot.lane.b32.xlu0 %v2329_v21, %s7318_s9  ;;  %v2816_v21 = vld.sshfl [vmem:[#allocation1 + $0x38] sm:$0xff pattern:$0x75316420]  ;;  %v7767_v12 = vld.sshfl [vmem:[#allocation1 + $0x8] sm:$0xff pattern:$0x75316420] }
  0xec   : > { %v1364_v39 = vpop.permute.xlu1 %1363  ;;  %v7769_v13 = vld.sshfl [vmem:[#allocation1] sm:$0xff pattern:$0x75316420]  ;;  %3051 = vst [vmem:[#allocation1 + $0x30] ss:$2 sm:$0xff] %v3038_v9 }
  0xed   : > { %v1381_v41 = vsel %vm1379_vm6, %v1364_v39, %v7651_v8  ;;  %v1362_v42 = vpop.permute.xlu0 %1361  ;;  %2349 = vrot.lane.b32.xlu2 %v7629_v63, %s7318_s9  ;;  %v3036_v63 = vld [vmem:[%s7371_s17 + $0x8] sm:$0x77]  ;;  %3060 = vst [vmem:[#allocation1] ss:$2 sm:$0xff] %v3039_v10  ;;  %v3524_v9 = vld [vmem:[%s7371_s17 + $0x18] sm:$0x77] }
  0xee   : > { %v1380_v45 = vsel %vm1379_vm6, %v1362_v42, %v1364_v39  ;;  %6891 = vmatpush.msk.msra.mxu1 %vm232_vm0, %v1381_v41  ;;  %v7706_v46 = vpop.permute.xlu2 %1608  ;;  %3047 = vst [vmem:[#allocation1 + $0x10] ss:$2 sm:$0xff] %v3036_v63  ;;  %v3278_v41 = vld [vmem:[%s7371_s17] sm:$0x77]  ;;  %s7326_s9 = smov 6  }
  0xef   : > { %6889 = vmatpush.msk.msra.mxu0 %vm232_vm0, %v1380_v45  ;;  %v3525_v10 = vld [vmem:[%s7371_s17 + $0x20] sm:$0x7] }
  0xf0   : > { %6890 = vmatmul.msk.f32.vlgmr.msra.gmra.mxu0 %vm228_vm2, %v6888_v44  ;;  %6892 = vmatmul.msk.f32.vlgmr.msra.gmra.mxu1 %vm228_vm2, %v6888_v44 }
  0xf2   : > { %2578 = vrot.lane.b32.xlu1 %v2567_v16, %s7319_s14 }
  0xf3   : > { %2576 = vrot.lane.b32.xlu0 %v2566_v17, %s7319_s14 }
  0xf4   : > { %v1370_v48 = vpop.permute.xlu1 %1369 }
  0xf5   : > { %v1384_v51 = vsel %vm1379_vm6, %v1370_v48, %v7670_v24  ;;  %v1368_v52 = vpop.permute.xlu0 %1367  ;;  %2580 = vrot.lane.b32.xlu2 %v2568_v43, %s7319_s14 }
  0xf6   : > { %v1382_v55 = vsel %vm1379_vm6, %v7651_v8, %v1368_v52  ;;  %v1383_v56 = vsel %vm1379_vm6, %v1368_v52, %v1370_v48  ;;  %6897 = vmatpush.msk.msrb.mxu0 %vm232_vm0, %v1384_v51  ;;  %v7722_v57 = vpop.permute.xlu2 %1614  ;;  %v3059_v48 = vld.sshfl [vmem:[#allocation1 + $0x38] sm:$0xff pattern:$0x75316420] }
  0xf7   : > { %6893 = vmatpush.msk.msra.mxu2 %vm232_vm0, %v1382_v55  ;;  %6895 = vmatpush.msk.msra.mxu3 %vm232_vm0, %v1383_v56 }
  0xf8   : > { %6894 = vmatmul.msk.f32.vlgmr.msra.gmra.mxu2 %vm228_vm2, %v6888_v44  ;;  %6896 = vmatmul.msk.f32.vlgmr.msra.gmra.mxu3 %vm228_vm2, %v6888_v44 }
  0xf9   : > { %6898 = vmatmul.msk.f32.vlgmr.msrb.gmra.mxu0 %vm228_vm2, %v6888_v44 }
  0xfa   : > { %2584 = vrot.lane.b32.xlu1 %v2570_v35, %s7319_s14  ;;  %v3054_v35 = vld.sshfl [vmem:[#allocation1 + $0x10] sm:$0xff pattern:$0x75316420] }
  0xfb   : > { %2582 = vrot.lane.b32.xlu0 %v2569_v40, %s7319_s14  ;;  %v3061_v40 = vld.sshfl [vmem:[#allocation1] sm:$0xff pattern:$0x75316420] }
  0xfc   : > { %v1376_v62 = vpop.permute.xlu1 %1375  ;;  %3288 = vst [vmem:[#allocation1] ss:$2 sm:$0xff] %v3278_v41 }
  0xfd   : > { %v1387_v0 = vsel %vm1379_vm6, %v1376_v62, %v1378_v34  ;;  %v1374_v1 = vpop.permute.xlu0 %1373  ;;  %2586 = vrot.lane.b32.xlu2 %v2571_v36, %s7319_s14  ;;  %v3055_v34 = vld.sshfl [vmem:[#allocation1 + $0x18] sm:$0xff pattern:$0x75316420] }
  0xfe   : > { %v1385_v29 = vsel %vm1379_vm6, %v7670_v24, %v1374_v1  ;;  %v1386_v2 = vsel %vm1379_vm6, %v1374_v1, %v1376_v62  ;;  %6903 = vmatpush.msk.msrb.mxu3 %vm232_vm0, %v1387_v0  ;;  %3290 = vst [vmem:[#allocation1 + $0x10] ss:$2 sm:$0xff] %v3279_v28  ;;  %v3522_v62 = vld [vmem:[%s7371_s17 + $0x8] sm:$0x77]  ;;  %vm4781_vm6 = vcmask 449536  }
  0xff   : > { %6899 = vmatpush.msk.msrb.mxu1 %vm232_vm0, %v1385_v29  ;;  %6901 = vmatpush.msk.msrb.mxu2 %vm232_vm0, %v1386_v2  ;;  %v1621_v5 = vpop.permute.xlu2 %1620  ;;  %v3765_v28 = vld [vmem:[%s7371_s17 + $0x8] sm:$0x77] }
 0x100   : > { %6900 = vmatmul.msk.f32.vlgmr.msrb.gmra.mxu1 %vm228_vm2, %v6888_v44  ;;  %6902 = vmatmul.msk.f32.vlgmr.msrb.gmra.mxu2 %vm228_vm2, %v6888_v44 }
 0x101   : > { %6904 = vmatmul.msk.f32.vlgmr.msrb.gmra.mxu3 %vm228_vm2, %v6888_v44  ;;  %v6922_v44 = vld [vmem:[%s9437_s0 + $0x1c] sm:$0xf] }
 0x102   : > { %2590 = vrot.lane.b32.xlu1 %v2573_v47, %s7319_s14  ;;  %v3058_v47 = vld.sshfl [vmem:[#allocation1 + $0x30] sm:$0xff pattern:$0x75316420] }
 0x103   : > { %2588 = vrot.lane.b32.xlu0 %v2572_v53, %s7319_s14  ;;  %v7823_v52 = vld.sshfl [vmem:[#allocation1 + $0x8] sm:$0xff pattern:$0x75316420]  ;;  %v7825_v53 = vld.sshfl [vmem:[#allocation1] sm:$0xff pattern:$0x75316420] }
 0x104   : > { %v1607_v14 = vpop.permute.xlu1 %1606  ;;  %3294 = vst [vmem:[#allocation1 + $0x30] ss:$2 sm:$0xff] %v3281_v49 }
 0x105   : > { %v1624_v19 = vsel %vm1622_vm7, %v1607_v14, %v7706_v46  ;;  %v1605_v6 = vpop.permute.xlu0 %1604  ;;  %2592 = vrot.lane.b32.xlu2 %v7682_v31, %s7319_s14  ;;  %3303 = vst [vmem:[#allocation1] ss:$2 sm:$0xff] %v3282_v50  ;;  %v3298_v29 = vld.sshfl [vmem:[#allocation1 + $0x18] sm:$0xff pattern:$0x75316420]  ;;  %s7327_s14 = smov 56  }
 0x106   : > { %v1623_v8 = vsel %vm1622_vm7, %v1605_v6, %v1607_v14  ;;  %6908 = vmatpush.msk.msra.mxu1 %vm232_vm0, %v1624_v19  ;;  %v3297_v2 = vld.sshfl [vmem:[#allocation1 + $0x10] sm:$0xff pattern:$0x75316420] }
 0x107   : > { %6906 = vmatpush.msk.msra.mxu0 %vm232_vm0, %v1623_v8  ;;  %v7759_v30 = vpop.permute.xlu2 %1851  ;;  %3533 = vst [vmem:[#allocation1 + $0x10] ss:$2 sm:$0xff] %v3522_v62 }
 0x108   : > { %6907 = vmatmul.msk.f32.vlgmr.msra.gmra.mxu0 %vm228_vm2, %v6905_v7  ;;  %6909 = vmatmul.msk.f32.vlgmr.msra.gmra.mxu1 %vm228_vm2, %v6905_v7 }
 0x10a   : > { %2821 = vrot.lane.b32.xlu1 %v2810_v54, %s7320_s18 }
 0x10b   : > { %2819 = vrot.lane.b32.xlu0 %v2809_v58, %s7320_s18 }
 0x10c   : > { %v1613_v11 = vpop.permute.xlu1 %1612 }
 0x10d   : > { %v1627_v16 = vsel %vm1622_vm7, %v1613_v11, %v7722_v57  ;;  %v1611_v17 = vpop.permute.xlu0 %1610  ;;  %2823 = vrot.lane.b32.xlu2 %v2811_v4, %s7320_s18 }
 0x10e   : > { %v1625_v22 = vsel %vm1622_vm7, %v7706_v46, %v1611_v17  ;;  %v1626_v23 = vsel %vm1622_vm7, %v1611_v17, %v1613_v11  ;;  %6914 = vmatpush.msk.msrb.mxu0 %vm232_vm0, %v1627_v16 }
 0x10f   : > { %6910 = vmatpush.msk.msra.mxu2 %vm232_vm0, %v1625_v22  ;;  %6912 = vmatpush.msk.msra.mxu3 %vm232_vm0, %v1626_v23  ;;  %v7780_v24 = vpop.permute.xlu2 %1857 }
 0x110   : > { %6911 = vmatmul.msk.f32.vlgmr.msra.gmra.mxu2 %vm228_vm2, %v6905_v7  ;;  %6913 = vmatmul.msk.f32.vlgmr.msra.gmra.mxu3 %vm228_vm2, %v6905_v7 }
 0x111   : > { %6915 = vmatmul.msk.f32.vlgmr.msrb.gmra.mxu0 %vm228_vm2, %v6905_v7 }
 0x112   : > { %2827 = vrot.lane.b32.xlu1 %v2813_v60, %s7320_s18  ;;  %v3299_v60 = vld.sshfl [vmem:[#allocation1 + $0x20] sm:$0xff pattern:$0x75316420] }
 0x113   : > { %2825 = vrot.lane.b32.xlu0 %v2812_v3, %s7320_s18 }
 0x114   : > { %v1619_v31 = vpop.permute.xlu1 %1618 }
 0x115   : > { %v1630_v32 = vsel %vm1622_vm7, %v1619_v31, %v1621_v5  ;;  %v1617_v33 = vpop.permute.xlu0 %1616  ;;  %2833 = vrot.lane.b32.xlu2 %v2816_v21, %s7320_s18  ;;  %v3302_v21 = vld.sshfl [vmem:[#allocation1 + $0x38] sm:$0xff pattern:$0x75316420] }
 0x116   : > { %v1628_v36 = vsel %vm1622_vm7, %v7722_v57, %v1617_v33  ;;  %v1629_v37 = vsel %vm1622_vm7, %v1617_v33, %v1619_v31  ;;  %6920 = vmatpush.msk.msrb.mxu3 %vm232_vm0, %v1630_v32  ;;  %vm5024_vm7 = vcmask 441344  }
 0x117   : > { %6916 = vmatpush.msk.msrb.mxu1 %vm232_vm0, %v1628_v36  ;;  %6918 = vmatpush.msk.msrb.mxu2 %vm232_vm0, %v1629_v37  ;;  %v1864_v38 = vpop.permute.xlu2 %1863  ;;  %v3540_v36 = vld.sshfl [vmem:[#allocation1 + $0x10] sm:$0xff pattern:$0x75316420]  ;;  %v7925_v41 = vpop.f32.mrf.mxu0 }
 0x118   : > { %6917 = vmatmul.msk.f32.vlgmr.msrb.gmra.mxu1 %vm228_vm2, %v6905_v7  ;;  %6919 = vmatmul.msk.f32.vlgmr.msrb.gmra.mxu2 %vm228_vm2, %v6905_v7 }
 0x119   : > { %6921 = vmatmul.msk.f32.vlgmr.msrb.gmra.mxu3 %vm228_vm2, %v6905_v7  ;;  %v6939_v7 = vld [vmem:[%s9437_s0 + $0x20] sm:$0xf] }
 0x11a   : > { %2831 = vrot.lane.b32.xlu1 %v2815_v20, %s7320_s18  ;;  %v3301_v20 = vld.sshfl [vmem:[#allocation1 + $0x30] sm:$0xff pattern:$0x75316420] }
 0x11b   : > { %2835 = vrot.lane.b32.xlu0 %v2818_v15, %s7320_s18  ;;  %v7862_v15 = vld.sshfl [vmem:[#allocation1] sm:$0xff pattern:$0x75316420]  ;;  %3537 = vst [vmem:[#allocation1 + $0x30] ss:$2 sm:$0xff] %v3524_v9 }
 0x11c   : > { %v1850_v39 = vpop.permute.xlu1 %1849  ;;  %3531 = vst [vmem:[#allocation1] ss:$2 sm:$0xff] %v3521_v18 }
 0x11d   : > { %v1867_v42 = vsel %vm1865_vm8, %v1850_v39, %v7759_v30  ;;  %v1848_v43 = vpop.permute.xlu0 %1847  ;;  %2829 = vrot.lane.b32.xlu2 %v7729_v59, %s7320_s18  ;;  %v7840_v59 = vld.sshfl [vmem:[#allocation1 + $0x28] sm:$0xff pattern:$0x75316420]  ;;  %s7328_s18 = smov 55  }
 0x11e   : > { %v1866_v45 = vsel %vm1865_vm8, %v1848_v43, %v1850_v39  ;;  %6925 = vmatpush.msk.msra.mxu1 %vm232_vm0, %v1867_v42  ;;  %3535 = vst [vmem:[#allocation1 + $0x20] ss:$2 sm:$0xff] %v3523_v61  ;;  %v7917_v39 = vpop.f32.mrf.mxu3  ;;  %v7929_v42 = vpop.f32.mrf.mxu1 }
 0x11f   : > { %6923 = vmatpush.msk.msra.mxu0 %vm232_vm0, %v1866_v45  ;;  %v7815_v46 = vpop.permute.xlu2 %2094  ;;  %v3764_v45 = vld [vmem:[%s7371_s17] sm:$0x77] }
 0x120   : > { %6924 = vmatmul.msk.f32.vlgmr.msra.gmra.mxu0 %vm228_vm2, %v6922_v44  ;;  %6926 = vmatmul.msk.f32.vlgmr.msra.gmra.mxu1 %vm228_vm2, %v6922_v44 }
 0x122   : > { %3070 = vrot.lane.b32.xlu1 %v3056_v26, %s7321_s21 }
 0x123   : > { %3068 = vrot.lane.b32.xlu0 %v3055_v34, %s7321_s21  ;;  %v7911_v34 = vpop.f32.mrf.mxu2 }
 0x124   : > { %v1856_v51 = vpop.permute.xlu1 %1855 }
 0x125   : > { %v1870_v54 = vsel %vm1865_vm8, %v1856_v51, %v7780_v24  ;;  %v1854_v55 = vpop.permute.xlu0 %1853  ;;  %3066 = vrot.lane.b32.xlu2 %v3054_v35, %s7321_s21  ;;  %v3542_v26 = vld.sshfl [vmem:[#allocation1 + $0x20] sm:$0xff pattern:$0x75316420]  ;;  %v3541_v35 = vld.sshfl [vmem:[#allocation1 + $0x18] sm:$0xff pattern:$0x75316420] }
 0x126   : > { %v1868_v56 = vsel %vm1865_vm8, %v7759_v30, %v1854_v55  ;;  %v1869_v57 = vsel %vm1865_vm8, %v1854_v55, %v1856_v51  ;;  %6931 = vmatpush.msk.msrb.mxu0 %vm232_vm0, %v1870_v54  ;;  %3776 = vst [vmem:[#allocation1 + $0x10] ss:$2 sm:$0xff] %v3765_v28  ;;  %v3545_v54 = vld.sshfl [vmem:[#allocation1 + $0x38] sm:$0xff pattern:$0x75316420]  ;;  %v7962_v61 = vpop.f32.mrf.mxu1 }
 0x127   : > { %6927 = vmatpush.msk.msra.mxu2 %vm232_vm0, %v1868_v56  ;;  %6929 = vmatpush.msk.msra.mxu3 %vm232_vm0, %v1869_v57  ;;  %v7836_v58 = vpop.permute.xlu2 %2100  ;;  %v3767_v55 = vld [vmem:[%s7371_s17 + $0x18] sm:$0x77]  ;;  %v3768_v56 = vld [vmem:[%s7371_s17 + $0x20] sm:$0x7]  ;;  %v7956_v57 = vpop.f32.mrf.mxu0 }
 0x128   : > { %6928 = vmatmul.msk.f32.vlgmr.msra.gmra.mxu2 %vm228_vm2, %v6922_v44  ;;  %6930 = vmatmul.msk.f32.vlgmr.msra.gmra.mxu3 %vm228_vm2, %v6922_v44 }
 0x129   : > { %6932 = vmatmul.msk.f32.vlgmr.msrb.gmra.mxu0 %vm228_vm2, %v6922_v44 }
 0x12a   : > { %3062 = vrot.lane.b32.xlu1 %v7769_v13, %s7321_s21  ;;  %v7885_v13 = vld.sshfl [vmem:[#allocation1] sm:$0xff pattern:$0x75316420] }
 0x12b   : > { %3064 = vrot.lane.b32.xlu0 %v7767_v12, %s7321_s21  ;;  %v7883_v12 = vld.sshfl [vmem:[#allocation1 + $0x8] sm:$0xff pattern:$0x75316420]  ;;  %v7946_v51 = vpop.f32.mrf.mxu2 }
 0x12c   : > { %v1862_v63 = vpop.permute.xlu1 %1861  ;;  %3546 = vst [vmem:[#allocation1] ss:$2 sm:$0xff] %v3525_v10 }
 0x12d   : > { %v1873_v0 = vsel %vm1865_vm8, %v1862_v63, %v1864_v38  ;;  %v1860_v1 = vpop.permute.xlu0 %1859  ;;  %3076 = vrot.lane.b32.xlu2 %v3059_v48, %s7321_s21  ;;  %v6956_v48 = vld [vmem:[%s9437_s0 + $0x24] sm:$0xf] }
 0x12e   : > { %v1871_v3 = vsel %vm1865_vm8, %v7780_v24, %v1860_v1  ;;  %v1872_v4 = vsel %vm1865_vm8, %v1860_v1, %v1862_v63  ;;  %6937 = vmatpush.msk.msrb.mxu3 %vm232_vm0, %v1873_v0  ;;  %v7998_v9 = vpop.f32.mrf.mxu1  ;;  %vm5267_vm8 = vcmask 375808  }
 0x12f   : > { %6933 = vmatpush.msk.msrb.mxu1 %vm232_vm0, %v1871_v3  ;;  %6935 = vmatpush.msk.msrb.mxu2 %vm232_vm0, %v1872_v4  ;;  %v2107_v5 = vpop.permute.xlu2 %2106 }
 0x130   : > { %6934 = vmatmul.msk.f32.vlgmr.msrb.gmra.mxu1 %vm228_vm2, %v6922_v44  ;;  %6936 = vmatmul.msk.f32.vlgmr.msrb.gmra.mxu2 %vm228_vm2, %v6922_v44 }
 0x131   : > { %6938 = vmatmul.msk.f32.vlgmr.msrb.gmra.mxu3 %vm228_vm2, %v6922_v44 }
 0x132   : > { %3074 = vrot.lane.b32.xlu1 %v3058_v47, %s7321_s21 }
 0x133   : > { %3078 = vrot.lane.b32.xlu0 %v3061_v40, %s7321_s21  ;;  %v7931_v44 = vld.sshfl [vmem:[#allocation1] sm:$0xff pattern:$0x75316420] }
 0x134   : > { %v2093_v14 = vpop.permute.xlu1 %2092  ;;  %3774 = vst [vmem:[#allocation1] ss:$2 sm:$0xff] %v3764_v45 }
 0x135   : > { %v2110_v19 = vsel %vm2108_vm9, %v2093_v14, %v7815_v46  ;;  %v2091_v6 = vpop.permute.xlu0 %2090  ;;  %3072 = vrot.lane.b32.xlu2 %v7784_v25, %s7321_s21  ;;  %v7900_v25 = vld.sshfl [vmem:[#allocation1 + $0x28] sm:$0xff pattern:$0x75316420]  ;;  %s7329_s21 = smov 54  }
 0x136   : > { %v2109_v8 = vsel %vm2108_vm9, %v2091_v6, %v2093_v14  ;;  %6942 = vmatpush.msk.msra.mxu1 %vm232_vm0, %v2110_v19  ;;  %3778 = vst [vmem:[#allocation1 + $0x20] ss:$2 sm:$0xff] %v3766_v27  ;;  %v4008_v14 = vld [vmem:[%s7371_s17 + $0x8] sm:$0x77] }
 0x137   : > { %6940 = vmatpush.msk.msra.mxu0 %vm232_vm0, %v2109_v8  ;;  %v7875_v30 = vpop.permute.xlu2 %2337  ;;  %v3784_v19 = vld.sshfl [vmem:[#allocation1 + $0x18] sm:$0xff pattern:$0x75316420]  ;;  %v3783_v8 = vld.sshfl [vmem:[#allocation1 + $0x10] sm:$0xff pattern:$0x75316420] }
 0x138   : > { %6943 = vmatmul.msk.f32.vlgmr.msra.gmra.mxu1 %vm228_vm2, %v6939_v7  ;;  %6941 = vmatmul.msk.f32.vlgmr.msra.gmra.mxu0 %vm228_vm2, %v6939_v7  ;;  %4019 = vst [vmem:[#allocation1 + $0x10] ss:$2 sm:$0xff] %v4008_v14 }
 0x13a   : > { %3313 = vrot.lane.b32.xlu1 %v3299_v60, %s7322_s24 }
 0x13b   : > { %3311 = vrot.lane.b32.xlu0 %v3298_v29, %s7322_s24  ;;  %v7960_v60 = vld.sshfl [vmem:[#allocation1] sm:$0xff pattern:$0x75316420] }
 0x13c   : > { %v2099_v11 = vpop.permute.xlu1 %2098 }
 0x13d   : > { %v2113_v16 = vsel %vm2108_vm9, %v2099_v11, %v7836_v58  ;;  %v2097_v17 = vpop.permute.xlu0 %2096  ;;  %3309 = vrot.lane.b32.xlu2 %v3297_v2, %s7322_s24  ;;  %v7977_v2 = vpop.f32.mrf.mxu2  ;;  %v7984_v4 = vld.sshfl [vmem:[#allocation1 + $0x28] sm:$0xff pattern:$0x75316420]  ;;  %v3785_v18 = vld.sshfl [vmem:[#allocation1 + $0x20] sm:$0xff pattern:$0x75316420] }
 0x13e   : > { %v2111_v22 = vsel %vm2108_vm9, %v7815_v46, %v2097_v17  ;;  %v2112_v23 = vsel %vm2108_vm9, %v2097_v17, %v2099_v11  ;;  %6948 = vmatpush.msk.msrb.mxu0 %vm232_vm0, %v2113_v16 }
 0x13f   : > { %6944 = vmatpush.msk.msra.mxu2 %vm232_vm0, %v2111_v22  ;;  %6946 = vmatpush.msk.msra.mxu3 %vm232_vm0, %v2112_v23  ;;  %v7896_v24 = vpop.permute.xlu2 %2343 }
 0x140   : > { %6945 = vmatmul.msk.f32.vlgmr.msra.gmra.mxu2 %vm228_vm2, %v6939_v7  ;;  %6947 = vmatmul.msk.f32.vlgmr.msra.gmra.mxu3 %vm228_vm2, %v6939_v7 }
 0x141   : > { %6949 = vmatmul.msk.f32.vlgmr.msrb.gmra.mxu0 %vm228_vm2, %v6939_v7 }
 0x142   : > { %3305 = vrot.lane.b32.xlu1 %v7825_v53, %s7322_s24  ;;  %v3544_v53 = vld.sshfl [vmem:[#allocation1 + $0x30] sm:$0xff pattern:$0x75316420] }
 0x143   : > { %3307 = vrot.lane.b32.xlu0 %v7823_v52, %s7322_s24  ;;  %v7948_v52 = vpop.f32.mrf.mxu3  ;;  %3780 = vst [vmem:[#allocation1 + $0x30] ss:$2 sm:$0xff] %v3767_v55  ;;  %v4251_v55 = vld [vmem:[%s7371_s17 + $0x8] sm:$0x77] }
 0x144   : > { %v2105_v31 = vpop.permute.xlu1 %2104 }
 0x145   : > { %v2116_v32 = vsel %vm2108_vm9, %v2105_v31, %v2107_v5  ;;  %v2103_v33 = vpop.permute.xlu0 %2102  ;;  %3319 = vrot.lane.b32.xlu2 %v3302_v21, %s7322_s24  ;;  %v4009_v5 = vld [vmem:[%s7371_s17 + $0x10] sm:$0x77]  ;;  %v7995_v21 = vpop.f32.mrf.mxu0 }
 0x146   : > { %v2114_v37 = vsel %vm2108_vm9, %v7836_v58, %v2103_v33  ;;  %v2115_v38 = vsel %vm2108_vm9, %v2103_v33, %v2105_v31  ;;  %6954 = vmatpush.msk.msrb.mxu3 %vm232_vm0, %v2116_v32  ;;  %4021 = vst [vmem:[#allocation1 + $0x20] ss:$2 sm:$0xff] %v4009_v5  ;;  %v8008_v11 = vpop.f32.mrf.mxu2  ;;  %v4010_v33 = vld [vmem:[%s7371_s17 + $0x18] sm:$0x77]  ;;  %vm5510_vm9 = vcmask 367616  }
 0x147   : > { %6950 = vmatpush.msk.msrb.mxu1 %vm232_vm0, %v2114_v37  ;;  %6952 = vmatpush.msk.msrb.mxu2 %vm232_vm0, %v2115_v38  ;;  %v2350_v40 = vpop.permute.xlu2 %2349 }
 0x148   : > { %6951 = vmatmul.msk.f32.vlgmr.msrb.gmra.mxu1 %vm228_vm2, %v6939_v7  ;;  %6953 = vmatmul.msk.f32.vlgmr.msrb.gmra.mxu2 %vm228_vm2, %v6939_v7 }
 0x149   : > { %6955 = vmatmul.msk.f32.vlgmr.msrb.gmra.mxu3 %vm228_vm2, %v6939_v7 }
 0x14a   : > { %3317 = vrot.lane.b32.xlu1 %v3301_v20, %s7322_s24  ;;  %v3787_v31 = vld.sshfl [vmem:[#allocation1 + $0x30] sm:$0xff pattern:$0x75316420]  ;;  %v3788_v32 = vld.sshfl [vmem:[#allocation1 + $0x38] sm:$0xff pattern:$0x75316420] }
 0x14b   : > { %3321 = vrot.lane.b32.xlu0 %v7862_v15, %s7322_s24  ;;  %v7982_v3 = vpop.f32.mrf.mxu3  ;;  %4023 = vst [vmem:[#allocation1 + $0x30] ss:$2 sm:$0xff] %v4010_v33 }
 0x14c   : > { %v2336_v43 = vpop.permute.xlu1 %2335 }
 0x14d   : > { %v2353_v46 = vsel %vm2351_vm10, %v2336_v43, %v7875_v30  ;;  %v2334_v47 = vpop.permute.xlu0 %2333  ;;  %3315 = vrot.lane.b32.xlu2 %v7840_v59, %s7322_s24  ;;  %v7958_v59 = vld.sshfl [vmem:[#allocation1 + $0x8] sm:$0xff pattern:$0x75316420]  ;;  %v8027_v28 = vpop.f32.mrf.mxu0  ;;  %s7330_s24 = smov 46  }
 0x14e   : > { %v2352_v49 = vsel %vm2351_vm10, %v2334_v47, %v2336_v43  ;;  %6959 = vmatpush.msk.msra.mxu1 %vm232_vm0, %v2353_v46  ;;  %3789 = vst [vmem:[#allocation1] ss:$2 sm:$0xff] %v3768_v56  ;;  %v8042_v43 = vpop.f32.mrf.mxu2 }
 0x14f   : > { %6957 = vmatpush.msk.msra.mxu0 %vm232_vm0, %v2352_v49  ;;  %v7944_v50 = vpop.permute.xlu2 %2580 }
 0x150   : > { %6960 = vmatmul.msk.f32.vlgmr.msra.gmra.mxu1 %vm228_vm2, %v6956_v48  ;;  %6958 = vmatmul.msk.f32.vlgmr.msra.gmra.mxu0 %vm228_vm2, %v6956_v48 }
 0x152   : > { %3556 = vrot.lane.b32.xlu1 %v3542_v26, %s7323_s27 }
 0x153   : > { %3554 = vrot.lane.b32.xlu0 %v3541_v35, %s7323_s27  ;;  %v8011_v16 = vpop.f32.mrf.mxu3 }
 0x154   : > { %v2342_v58 = vpop.permute.xlu1 %2341 }
 0x155   : > { %v2356_v62 = vsel %vm2351_vm10, %v2342_v58, %v7896_v24  ;;  %v2340_v63 = vpop.permute.xlu0 %2339  ;;  %3552 = vrot.lane.b32.xlu2 %v3540_v36, %s7323_s27  ;;  %v8013_v17 = vld.sshfl [vmem:[#allocation1] sm:$0xff pattern:$0x75316420]  ;;  %v8059_v49 = vpop.f32.mrf.mxu0 }
 0x156   : > { %v2354_v0 = vsel %vm2351_vm10, %v7875_v30, %v2340_v63  ;;  %v2355_v1 = vsel %vm2351_vm10, %v2340_v63, %v2342_v58  ;;  %6965 = vmatpush.msk.msrb.mxu0 %vm232_vm0, %v2356_v62  ;;  %v4028_v58 = vld.sshfl [vmem:[#allocation1 + $0x20] sm:$0xff pattern:$0x75316420]  ;;  %v4027_v62 = vld.sshfl [vmem:[#allocation1 + $0x18] sm:$0xff pattern:$0x75316420] }
 0x157   : > { %6961 = vmatpush.msk.msra.mxu2 %vm232_vm0, %v2354_v0  ;;  %6963 = vmatpush.msk.msra.mxu3 %vm232_vm0, %v2355_v1  ;;  %v7973_v29 = vpop.permute.xlu2 %2586  ;;  %v4026_v1 = vld.sshfl [vmem:[#allocation1 + $0x10] sm:$0xff pattern:$0x75316420] }
 0x158   : > { %6962 = vmatmul.msk.f32.vlgmr.msra.gmra.mxu2 %vm228_vm2, %v6956_v48  ;;  %6964 = vmatmul.msk.f32.vlgmr.msra.gmra.mxu3 %vm228_vm2, %v6956_v48  ;;  %4262 = vst [vmem:[#allocation1 + $0x10] ss:$2 sm:$0xff] %v4251_v55  ;;  %v4495_v55 = vld [vmem:[%s7371_s17 + $0x14] sm:$0x77] }
 0x159   : > { %6966 = vmatmul.msk.f32.vlgmr.msrb.gmra.mxu0 %vm228_vm2, %v6956_v48 }
 0x15a   : > { %3548 = vrot.lane.b32.xlu1 %v7885_v13, %s7323_s27 }
 0x15b   : > { %3550 = vrot.lane.b32.xlu0 %v7883_v12, %s7323_s27  ;;  %v4007_v12 = vld [vmem:[%s7371_s17] sm:$0x77]  ;;  %v8050_v47 = vpop.f32.mrf.mxu3 }
 0x15c   : > { %v2348_v15 = vpop.permute.xlu1 %2347  ;;  %4017 = vst [vmem:[#allocation1] ss:$2 sm:$0xff] %v4007_v12 }
 0x15d   : > { %v2359_v6 = vsel %vm2351_vm10, %v2348_v15, %v2350_v40  ;;  %v2346_v7 = vpop.permute.xlu0 %2345  ;;  %3562 = vrot.lane.b32.xlu2 %v3545_v54, %s7323_s27  ;;  %v4252_v54 = vld [vmem:[%s7371_s17 + $0x10] sm:$0x77] }
 0x15e   : > { %v2357_v30 = vsel %vm2351_vm10, %v7896_v24, %v2346_v7  ;;  %v2358_v20 = vsel %vm2351_vm10, %v2346_v7, %v2348_v15  ;;  %6971 = vmatpush.msk.msrb.mxu3 %vm232_vm0, %v2359_v6  ;;  %v6973_v24 = vld [vmem:[%s9437_s0 + $0x28] sm:$0xf]  ;;  %vm5753_vm10 = vcmask 359424  }
 0x15f   : > { %6967 = vmatpush.msk.msrb.mxu1 %vm232_vm0, %v2357_v30  ;;  %6969 = vmatpush.msk.msrb.mxu2 %vm232_vm0, %v2358_v20  ;;  %v2593_v10 = vpop.permute.xlu2 %2592  ;;  %v6990_v20 = vld [vmem:[%s9437_s0 + $0x2c] sm:$0xf] }
 0x160   : > { %6968 = vmatmul.msk.f32.vlgmr.msrb.gmra.mxu1 %vm228_vm2, %v6956_v48  ;;  %6970 = vmatmul.msk.f32.vlgmr.msrb.gmra.mxu2 %vm228_vm2, %v6956_v48 }
 0x161   : > { %6972 = vmatmul.msk.f32.vlgmr.msrb.gmra.mxu3 %vm228_vm2, %v6956_v48 }
 0x162   : > { %3560 = vrot.lane.b32.xlu1 %v3544_v53, %s7323_s27 }
 0x163   : > { %3564 = vrot.lane.b32.xlu0 %v7931_v44, %s7323_s27  ;;  %v8036_v36 = vld.sshfl [vmem:[#allocation1 + $0x8] sm:$0xff pattern:$0x75316420]  ;;  %v8038_v37 = vld.sshfl [vmem:[#allocation1] sm:$0xff pattern:$0x75316420]  ;;  %v8085_v15 = vpop.f32.mrf.mxu3 }
 0x164   : > { %v2579_v13 = vpop.permute.xlu1 %2578  ;;  %v4011_v44 = vld [vmem:[%s7371_s17 + $0x20] sm:$0x7] }
 0x165   : > { %v2596_v22 = vsel %vm2594_vm11, %v2579_v13, %v7944_v50  ;;  %v2577_v23 = vpop.permute.xlu0 %2576  ;;  %3558 = vrot.lane.b32.xlu2 %v7900_v25, %s7323_s27  ;;  %v8031_v25 = vpop.f32.mrf.mxu1  ;;  %4032 = vst [vmem:[#allocation1] ss:$2 sm:$0xff] %v4011_v44  ;;  %s7331_s27 = smov 45  }
 0x166   : > { %v2595_v26 = vsel %vm2594_vm11, %v2577_v23, %v2579_v13  ;;  %6976 = vmatpush.msk.msra.mxu1 %vm232_vm0, %v2596_v22  ;;  %v4031_v22 = vld.sshfl [vmem:[#allocation1 + $0x38] sm:$0xff pattern:$0x75316420] }
 0x167   : > { %6974 = vmatpush.msk.msra.mxu0 %vm232_vm0, %v2595_v26  ;;  %v8025_v27 = vpop.permute.xlu2 %2823  ;;  %v4253_v23 = vld [vmem:[%s7371_s17 + $0x18] sm:$0x77] }
 0x168   : > { %6977 = vmatmul.msk.f32.vlgmr.msra.gmra.mxu1 %vm228_vm2, %v6973_v24  ;;  %6975 = vmatmul.msk.f32.vlgmr.msra.gmra.mxu0 %vm228_vm2, %v6973_v24 }
 0x16a   : > { %3799 = vrot.lane.b32.xlu1 %v3785_v18, %s7324_s30  ;;  %v8092_v18 = vpop.f32.mrf.mxu0 }
 0x16b   : > { %3797 = vrot.lane.b32.xlu0 %v3784_v19, %s7324_s30 }
 0x16c   : > { %v2585_v35 = vpop.permute.xlu1 %2584  ;;  %v8094_v6 = vld.sshfl [vmem:[#allocation1] sm:$0xff pattern:$0x75316420] }
 0x16d   : > { %v2599_v38 = vsel %vm2594_vm11, %v2585_v35, %v7973_v29  ;;  %v2583_v40 = vpop.permute.xlu0 %2582  ;;  %3795 = vrot.lane.b32.xlu2 %v3783_v8, %s7324_s30  ;;  %v8065_v53 = vpop.f32.mrf.mxu1 }
 0x16e   : > { %v2597_v45 = vsel %vm2594_vm11, %v7944_v50, %v2583_v40  ;;  %v2598_v46 = vsel %vm2594_vm11, %v2583_v40, %v2585_v35  ;;  %6982 = vmatpush.msk.msrb.mxu0 %vm232_vm0, %v2599_v38  ;;  %v8063_v50 = vld.sshfl [vmem:[#allocation1 + $0x28] sm:$0xff pattern:$0x75316420]  ;;  %v4254_v35 = vld [vmem:[%s7371_s17 + $0x20] sm:$0x7] }
 0x16f   : > { %6978 = vmatpush.msk.msra.mxu2 %vm232_vm0, %v2597_v45  ;;  %6980 = vmatpush.msk.msra.mxu3 %vm232_vm0, %v2598_v46  ;;  %v8054_v48 = vpop.permute.xlu2 %2833  ;;  %4264 = vst [vmem:[#allocation1 + $0x20] ss:$2 sm:$0xff] %v4252_v54 }
 0x170   : > { %6979 = vmatmul.msk.f32.vlgmr.msra.gmra.mxu2 %vm228_vm2, %v6973_v24  ;;  %6981 = vmatmul.msk.f32.vlgmr.msra.gmra.mxu3 %vm228_vm2, %v6973_v24 }
 0x171   : > { %6983 = vmatmul.msk.f32.vlgmr.msrb.gmra.mxu0 %vm228_vm2, %v6973_v24 }
 0x172   : > { %3791 = vrot.lane.b32.xlu1 %v7960_v60, %s7324_s30  ;;  %v8127_v38 = vpop.f32.mrf.mxu0 }
 0x173   : > { %3793 = vrot.lane.b32.xlu0 %v7958_v59, %s7324_s30  ;;  %v8079_v59 = vpop.f32.mrf.mxu2 }
 0x174   : > { %v2591_v56 = vpop.permute.xlu1 %2590 }
 0x175   : > { %v2602_v63 = vsel %vm2594_vm11, %v2591_v56, %v2593_v10  ;;  %v2589_v0 = vpop.permute.xlu0 %2588  ;;  %3805 = vrot.lane.b32.xlu2 %v3788_v32, %s7324_s30  ;;  %v8096_v7 = vpop.f32.mrf.mxu1 }
 0x176   : > { %v2600_v60 = vsel %vm2594_vm11, %v7973_v29, %v2589_v0  ;;  %v2601_v5 = vsel %vm2594_vm11, %v2589_v0, %v2591_v56  ;;  %6988 = vmatpush.msk.msrb.mxu3 %vm232_vm0, %v2602_v63  ;;  %v4250_v29 = vld [vmem:[%s7371_s17] sm:$0x77]  ;;  %v4494_v56 = vld [vmem:[%s7371_s17 + $0xc] sm:$0x77]  ;;  %vm5996_vm11 = vcmask 293888  }
 0x177   : > { %6984 = vmatpush.msk.msrb.mxu1 %vm232_vm0, %v2600_v60  ;;  %6986 = vmatpush.msk.msrb.mxu2 %vm232_vm0, %v2601_v5  ;;  %v8081_v14 = vpop.permute.xlu2 %2829  ;;  %4260 = vst [vmem:[#allocation1] ss:$2 sm:$0xff] %v4250_v29  ;;  %v4271_v63 = vld.sshfl [vmem:[#allocation1 + $0x20] sm:$0xff pattern:$0x75316420] }
 0x178   : > { %6985 = vmatmul.msk.f32.vlgmr.msrb.gmra.mxu1 %vm228_vm2, %v6973_v24  ;;  %6987 = vmatmul.msk.f32.vlgmr.msrb.gmra.mxu2 %vm228_vm2, %v6973_v24  ;;  %v4270_v0 = vld.sshfl [vmem:[#allocation1 + $0x18] sm:$0xff pattern:$0x75316420]  ;;  %v4269_v5 = vld.sshfl [vmem:[#allocation1 + $0x10] sm:$0xff pattern:$0x75316420] }
 0x179   : > { %6989 = vmatmul.msk.f32.vlgmr.msrb.gmra.mxu3 %vm228_vm2, %v6973_v24  ;;  %4505 = vst [vmem:[#allocation1 + $0x10] ss:$2 sm:$0xff] %v4494_v56 }
 0x17a   : > { %3803 = vrot.lane.b32.xlu1 %v3787_v31, %s7324_s30  ;;  %v8165_v29 = vpop.f32.mrf.mxu0 }
 0x17b   : > { %3807 = vrot.lane.b32.xlu0 %v8013_v17, %s7324_s30  ;;  %v8112_v13 = vpop.f32.mrf.mxu2  ;;  %v8114_v17 = vpop.f32.mrf.mxu3 }
 0x17c   : > { %v2822_v19 = vpop.permute.xlu1 %2821 }
 0x17d   : > { %v2839_v8 = vsel %vm2837_vm12, %v2822_v19, %v8025_v27  ;;  %v2820_v30 = vpop.permute.xlu0 %2819  ;;  %3801 = vrot.lane.b32.xlu2 %v7984_v4, %s7324_s30  ;;  %v4030_v4 = vld.sshfl [vmem:[#allocation1 + $0x30] sm:$0xff pattern:$0x75316420]  ;;  %v8133_v45 = vpop.f32.mrf.mxu1  ;;  %s7332_s30 = smov 44  }
 0x17e   : > { %v2838_v10 = vsel %vm2837_vm12, %v2820_v30, %v2822_v19  ;;  %6993 = vmatpush.msk.msra.mxu1 %vm232_vm0, %v2839_v8  ;;  %v8119_v26 = vld.sshfl [vmem:[#allocation1 + $0x8] sm:$0xff pattern:$0x75316420]  ;;  %v8121_v31 = vld.sshfl [vmem:[#allocation1] sm:$0xff pattern:$0x75316420] }
 0x17f   : > { %6991 = vmatpush.msk.msra.mxu0 %vm232_vm0, %v2838_v10  ;;  %v8108_v12 = vpop.permute.xlu2 %3066  ;;  %4266 = vst [vmem:[#allocation1 + $0x30] ss:$2 sm:$0xff] %v4253_v23  ;;  %v8182_v23 = vld [vmem:[%s9437_s0 + $0x30] sm:$0xf] }
 0x180   : > { %6992 = vmatmul.msk.f32.vlgmr.msra.gmra.mxu0 %vm228_vm2, %v6990_v20  ;;  %6994 = vmatmul.msk.f32.vlgmr.msra.gmra.mxu1 %vm228_vm2, %v6990_v20  ;;  %4275 = vst [vmem:[#allocation1] ss:$2 sm:$0xff] %v4254_v35 }
 0x182   : > { %4042 = vrot.lane.b32.xlu1 %v4028_v58, %s7325_s6 }
 0x183   : > { %4040 = vrot.lane.b32.xlu0 %v4027_v62, %s7325_s6  ;;  %v8146_v54 = vpop.f32.mrf.mxu2  ;;  %v8152_v58 = vpop.f32.mrf.mxu3 }
 0x184   : > { %v2828_v24 = vpop.permute.xlu1 %2827 }
 0x185   : > { %v2842_v32 = vsel %vm2837_vm12, %v2828_v24, %v8081_v14  ;;  %v2826_v33 = vpop.permute.xlu0 %2825  ;;  %4038 = vrot.lane.b32.xlu2 %v4026_v1, %s7325_s6  ;;  %v8169_v19 = vpop.f32.mrf.mxu1 }
 0x186   : > { %v2840_v40 = vsel %vm2837_vm12, %v8025_v27, %v2826_v33  ;;  %v2841_v44 = vsel %vm2837_vm12, %v2826_v33, %v2828_v24  ;;  %6999 = vmatpush.msk.msrb.mxu0 %vm232_vm0, %v2842_v32  ;;  %v8144_v27 = vld.sshfl [vmem:[#allocation1 + $0x28] sm:$0xff pattern:$0x75316420]  ;;  %v4273_v32 = vld.sshfl [vmem:[#allocation1 + $0x30] sm:$0xff pattern:$0x75316420] }
 0x187   : > { %6995 = vmatpush.msk.msra.mxu2 %vm232_vm0, %v2840_v40  ;;  %6997 = vmatpush.msk.msra.mxu3 %vm232_vm0, %v2841_v44  ;;  %v8137_v46 = vpop.permute.xlu2 %3076  ;;  %4507 = vst [vmem:[#allocation1 + $0x20] ss:$2 sm:$0xff] %v4495_v55  ;;  %v8175_v30 = vld.sshfl [vmem:[#allocation1] sm:$0xff pattern:$0x75316420] }
 0x188   : > { %6996 = vmatmul.msk.f32.vlgmr.msra.gmra.mxu2 %vm228_vm2, %v6990_v20  ;;  %6998 = vmatmul.msk.f32.vlgmr.msra.gmra.mxu3 %vm228_vm2, %v6990_v20  ;;  %v4274_v35 = vld.sshfl [vmem:[#allocation1 + $0x38] sm:$0xff pattern:$0x75316420] }
 0x189   : > { %7000 = vmatmul.msk.f32.vlgmr.msrb.gmra.mxu0 %vm228_vm2, %v6990_v20  ;;  %v4496_v40 = vld [vmem:[%s7371_s17 + $0x1c] sm:$0x77] }
 0x18a   : > { %4034 = vrot.lane.b32.xlu1 %v8038_v37, %s7325_s6  ;;  %4509 = vst [vmem:[#allocation1 + $0x30] ss:$2 sm:$0xff] %v4496_v40  ;;  %v4513_v40 = vld.sshfl [vmem:[#allocation1 + $0x18] sm:$0xff pattern:$0x75316420] }
 0x18b   : > { %4036 = vrot.lane.b32.xlu0 %v8036_v36, %s7325_s6  ;;  %v8177_v10 = vpop.f32.mrf.mxu2 }
 0x18c   : > { %v2832_v62 = vpop.permute.xlu1 %2831 }
 0x18d   : > { %v2843_v1 = vsel %vm2837_vm12, %v8081_v14, %v2832_v62  ;;  %v2844_v37 = vsel %vm2837_vm12, %v2832_v62, %v8054_v48  ;;  %v2836_v60 = vpop.permute.xlu0 %2835  ;;  %4048 = vrot.lane.b32.xlu2 %v4031_v22, %s7325_s6  ;;  %v8202_v33 = vpop.f32.mrf.mxu1 }
 0x18e   : > { %v2845_v36 = vsel %vm2837_vm12, %v8054_v48, %v2836_v60  ;;  %7001 = vmatpush.msk.msrb.mxu1 %vm232_vm0, %v2843_v1  ;;  %7003 = vmatpush.msk.msrb.mxu2 %vm232_vm0, %v2844_v37  ;;  %v4493_v48 = vld [vmem:[%s7371_s17 + $0x4] sm:$0x77]  ;;  %vm6239_vm12 = vcmask 285696  }
 0x18f   : > { %7005 = vmatpush.msk.msrb.mxu3 %vm232_vm0, %v2845_v36  ;;  %7002 = vmatmul.msk.f32.vlgmr.msrb.gmra.mxu1 %vm228_vm2, %v6990_v20  ;;  %v3073_v14 = vpop.permute.xlu2 %3072  ;;  %4503 = vst [vmem:[#allocation1] ss:$2 sm:$0xff] %v4493_v48  ;;  %v4497_v1 = vld [vmem:[%s7371_s17 + $0x24] sm:$0x7]  ;;  %v4738_v48 = vld [vmem:[%s7371_s17 + $0x14] sm:$0x77] }
 0x190   : > { %7004 = vmatmul.msk.f32.vlgmr.msrb.gmra.mxu2 %vm228_vm2, %v6990_v20  ;;  %7006 = vmatmul.msk.f32.vlgmr.msrb.gmra.mxu3 %vm228_vm2, %v6990_v20  ;;  %v8186_v20 = vpop.f32.mrf.mxu3 }
 0x192   : > { %4046 = vrot.lane.b32.xlu1 %v4030_v4, %s7325_s6 }
 0x193   : > { %4050 = vrot.lane.b32.xlu0 %v8094_v6, %s7325_s6 }
 0x194   : > { %v3071_v8 = vpop.permute.xlu1 %3070 }
 0x195   : > { %v3069_v22 = vpop.permute.xlu0 %3068  ;;  %4044 = vrot.lane.b32.xlu2 %v8063_v50, %s7325_s6  ;;  %v8199_v50 = vpop.f32.mrf.mxu0  ;;  %s7333_s6 = smov 36  }
 0x196   : > { %v3083_v6 = vsel %vm3080_vm13, %v8108_v12, %v3069_v22  ;;  %v3084_v4 = vsel %vm3080_vm13, %v3069_v22, %v3071_v8  ;;  %v8206_v55 = vld.sshfl [vmem:[#allocation1 + $0x8] sm:$0xff pattern:$0x75316420]  ;;  %v8208_v56 = vld.sshfl [vmem:[#allocation1] sm:$0xff pattern:$0x75316420] }
 0x197   : > { %7012 = vmatpush.msk.msra.mxu2 %vm232_vm0, %v3083_v6  ;;  %7014 = vmatpush.msk.msra.mxu3 %vm232_vm0, %v3084_v4  ;;  %v8193_v24 = vpop.permute.xlu2 %3309  ;;  %4518 = vst [vmem:[#allocation1] ss:$2 sm:$0xff] %v4497_v1  ;;  %v4514_v4 = vld.sshfl [vmem:[#allocation1 + $0x20] sm:$0xff pattern:$0x75316420] }
 0x198   : > { %7013 = vmatmul.msk.f32.vlgmr.msra.gmra.mxu2 %vm228_vm2, %v8182_v23  ;;  %7015 = vmatmul.msk.f32.vlgmr.msra.gmra.mxu3 %vm228_vm2, %v8182_v23  ;;  %v8222_v36 = vpop.f32.mrf.mxu3 }
 0x199   : > { %9442 = vst [vmem:[#allocation3_spill] sm:$0xff] %v8222_v36 }
 0x19a   : > { %4285 = vrot.lane.b32.xlu1 %v4271_v63, %s7326_s9 }
 0x19b   : > { %4283 = vrot.lane.b32.xlu0 %v4270_v0, %s7326_s9  ;;  %v8215_v0 = vpop.f32.mrf.mxu2 }
 0x19c   : > { %v3063_v44 = vpop.permute.xlu1 %3062  ;;  %9441 = vst [vmem:[#allocation2_spill] sm:$0xff] %v8215_v0 }
 0x19d   : > { %v3065_v62 = vpop.permute.xlu0 %3064  ;;  %4281 = vrot.lane.b32.xlu2 %v4269_v5, %s7326_s9  ;;  %v3085_v5 = vsel %vm3080_vm13, %v3071_v8, %v3073_v14  ;;  %v4737_v8 = vld [vmem:[%s7371_s17 + $0xc] sm:$0x77]  ;;  %v8237_v22 = vpop.f32.mrf.mxu0 }
 0x19e   : > { %v3082_v63 = vsel %vm3080_vm13, %v3065_v62, %v8108_v12  ;;  %v3081_v37 = vsel %vm3080_vm13, %v3063_v44, %v3065_v62  ;;  %v8231_v12 = vld.sshfl [vmem:[#allocation1 + $0x28] sm:$0xff pattern:$0x75316420]  ;;  %9443 = vst [vmem:[#allocation4_spill] sm:$0xff] %v8237_v22  ;;  %v8239_v44 = vpop.f32.mrf.mxu1 }
 0x19f   : > { %7008 = vmatpush.msk.msra.mxu0 %vm232_vm0, %v3081_v37  ;;  %7010 = vmatpush.msk.msra.mxu1 %vm232_vm0, %v3082_v63  ;;  %v8219_v60 = vpop.permute.xlu2 %3319  ;;  %9444 = vst [vmem:[#allocation5_spill] sm:$0xff] %v8239_v44  ;;  %v4512_v63 = vld.sshfl [vmem:[#allocation1 + $0x10] sm:$0xff pattern:$0x75316420]  ;;  %v4736_v37 = vld [vmem:[%s7371_s17 + $0x4] sm:$0x77] }
 0x1a0   : > { %7009 = vmatmul.msk.f32.vlgmr.msra.gmra.mxu0 %vm228_vm2, %v8182_v23  ;;  %7011 = vmatmul.msk.f32.vlgmr.msra.gmra.mxu1 %vm228_vm2, %v8182_v23  ;;  %4750 = vst [vmem:[#allocation1 + $0x20] ss:$2 sm:$0xff] %v4738_v48  ;;  %v8266_v48 = vld.sshfl [vmem:[#allocation1] sm:$0xff pattern:$0x75316420] }
 0x1a1   : > { %7016 = vmatpush.msk.msrb.mxu0 %vm232_vm0, %v3085_v5  ;;  %4748 = vst [vmem:[#allocation1 + $0x10] ss:$2 sm:$0xff] %v4737_v8  ;;  %v4740_v44 = vld [vmem:[%s7371_s17 + $0x24] sm:$0x7] }
 0x1a2   : > { %4277 = vrot.lane.b32.xlu1 %v8121_v31, %s7326_s9  ;;  %4746 = vst [vmem:[#allocation1] ss:$2 sm:$0xff] %v4736_v37  ;;  %v4739_v37 = vld [vmem:[%s7371_s17 + $0x1c] sm:$0x77] }
 0x1a3   : > { %4279 = vrot.lane.b32.xlu0 %v8119_v26, %s7326_s9 }
 0x1a4   : > { %v3075_v6 = vpop.permute.xlu1 %3074 }
 0x1a5   : > { %v3086_v62 = vsel %vm3080_vm13, %v3073_v14, %v3075_v6  ;;  %v3087_v1 = vsel %vm3080_vm13, %v3075_v6, %v8137_v46  ;;  %v3079_v31 = vpop.permute.xlu0 %3078  ;;  %4291 = vrot.lane.b32.xlu2 %v4274_v35, %s7326_s9  ;;  %v8256_v35 = vpop.f32.mrf.mxu2  ;;  %v8271_v6 = vld [vmem:[%s9437_s0 + $0x34] sm:$0xf] }
 0x1a6   : > { %v3088_v26 = vsel %vm3080_vm13, %v8137_v46, %v3079_v31  ;;  %7018 = vmatpush.msk.msrb.mxu1 %vm232_vm0, %v3086_v62  ;;  %7020 = vmatpush.msk.msrb.mxu2 %vm232_vm0, %v3087_v1  ;;  %v8260_v46 = vpop.f32.mrf.mxu3  ;;  %v8280_v62 = vpop.f32.mrf.mxu1  ;;  %vm6482_vm13 = vcmask 277504  }
 0x1a7   : > { %7022 = vmatpush.msk.msrb.mxu3 %vm232_vm0, %v3088_v26  ;;  %7021 = vmatmul.msk.f32.vlgmr.msrb.gmra.mxu2 %vm228_vm2, %v8182_v23  ;;  %v3316_v14 = vpop.permute.xlu2 %3315  ;;  %v4517_v26 = vld.sshfl [vmem:[#allocation1 + $0x38] sm:$0xff pattern:$0x75316420] }
 0x1a8   : > { %7017 = vmatmul.msk.f32.vlgmr.msrb.gmra.mxu0 %vm228_vm2, %v8182_v23  ;;  %7019 = vmatmul.msk.f32.vlgmr.msrb.gmra.mxu1 %vm228_vm2, %v8182_v23 }
 0x1a9   : > { %7023 = vmatmul.msk.f32.vlgmr.msrb.gmra.mxu3 %vm228_vm2, %v8182_v23  ;;  %v8275_v23 = vpop.f32.mrf.mxu0  ;;  %v8299_v36 = vld.sshfl [vmem:[#allocation1] sm:$0xff pattern:$0x75316420] }
 0x1aa   : > { %4289 = vrot.lane.b32.xlu1 %v4273_v32, %s7326_s9 }
 0x1ab   : > { %4293 = vrot.lane.b32.xlu0 %v8175_v30, %s7326_s9 }
 0x1ac   : > { %v3314_v5 = vpop.permute.xlu1 %3313 }
 0x1ad   : > { %v3312_v8 = vpop.permute.xlu0 %3311  ;;  %4287 = vrot.lane.b32.xlu2 %v8144_v27, %s7326_s9  ;;  %v4516_v27 = vld.sshfl [vmem:[#allocation1 + $0x30] sm:$0xff pattern:$0x75316420]  ;;  %v8291_v31 = vpop.f32.mrf.mxu2  ;;  %s7334_s9 = smov 35  }
 0x1ae   : > { %v3326_v30 = vsel %vm3323_vm14, %v8193_v24, %v3312_v8  ;;  %v3327_v32 = vsel %vm3323_vm14, %v3312_v8, %v3314_v5  ;;  %9445 = vst [vmem:[#allocation6_spill] sm:$0xff] %v8291_v31  ;;  %v8295_v8 = vpop.f32.mrf.mxu3 }
 0x1af   : > { %7029 = vmatpush.msk.msra.mxu2 %vm232_vm0, %v3326_v30  ;;  %7031 = vmatpush.msk.msra.mxu3 %vm232_vm0, %v3327_v32  ;;  %v8284_v1 = vpop.permute.xlu2 %3552  ;;  %9446 = vst [vmem:[#allocation7_spill] sm:$0xff] %v8295_v8  ;;  %v8297_v32 = vld.sshfl [vmem:[#allocation1 + $0x8] sm:$0xff pattern:$0x75316420] }
 0x1b0   : > { %7030 = vmatmul.msk.f32.vlgmr.msra.gmra.mxu2 %vm228_vm2, %v8271_v6  ;;  %4752 = vst [vmem:[#allocation1 + $0x30] ss:$2 sm:$0xff] %v4739_v37 }
 0x1b1   : > { %7032 = vmatmul.msk.f32.vlgmr.msra.gmra.mxu3 %vm228_vm2, %v8271_v6  ;;  %4761 = vst [vmem:[#allocation1] ss:$2 sm:$0xff] %v4740_v44  ;;  %v8310_v31 = vpop.f32.mrf.mxu0  ;;  %v4981_v44 = vld [vmem:[%s7371_s17 + $0x14] sm:$0x77] }
 0x1b2   : > { %4528 = vrot.lane.b32.xlu1 %v4514_v4, %s7327_s14  ;;  %9447 = vst [vmem:[#allocation8_spill] sm:$0xff] %v8310_v31 }
 0x1b3   : > { %4526 = vrot.lane.b32.xlu0 %v4513_v40, %s7327_s14 }
 0x1b4   : > { %v3306_v30 = vpop.permute.xlu1 %3305 }
 0x1b5   : > { %v3308_v0 = vpop.permute.xlu0 %3307  ;;  %4524 = vrot.lane.b32.xlu2 %v4512_v63, %s7327_s14  ;;  %v3328_v63 = vsel %vm3323_vm14, %v3314_v5, %v3316_v14  ;;  %v4980_v5 = vld [vmem:[%s7371_s17 + $0xc] sm:$0x77] }
 0x1b6   : > { %v3325_v4 = vsel %vm3323_vm14, %v3308_v0, %v8193_v24  ;;  %v3324_v40 = vsel %vm3323_vm14, %v3306_v30, %v3308_v0  ;;  %v8317_v24 = vpop.f32.mrf.mxu1  ;;  %v8322_v0 = vld.sshfl [vmem:[#allocation1 + $0x28] sm:$0xff pattern:$0x75316420]  ;;  %v4757_v30 = vld.sshfl [vmem:[#allocation1 + $0x20] sm:$0xff pattern:$0x75316420]  ;;  %v8334_v22 = vpop.f32.mrf.mxu3 }
 0x1b7   : > { %7025 = vmatpush.msk.msra.mxu0 %vm232_vm0, %v3324_v40  ;;  %7027 = vmatpush.msk.msra.mxu1 %vm232_vm0, %v3325_v4  ;;  %v8308_v8 = vpop.permute.xlu2 %3562  ;;  %9448 = vst [vmem:[#allocation9_spill] sm:$0xff] %v8317_v24  ;;  %v4756_v4 = vld.sshfl [vmem:[#allocation1 + $0x18] sm:$0xff pattern:$0x75316420]  ;;  %v8328_v40 = vpop.f32.mrf.mxu2 }
 0x1b8   : > { %7026 = vmatmul.msk.f32.vlgmr.msra.gmra.mxu0 %vm228_vm2, %v8271_v6  ;;  %7028 = vmatmul.msk.f32.vlgmr.msra.gmra.mxu1 %vm228_vm2, %v8271_v6  ;;  %9449 = vst [vmem:[#allocation10_spill] sm:$0xff] %v8328_v40  ;;  %v4983_v40 = vld [vmem:[%s7371_s17 + $0x24] sm:$0x7] }
 0x1b9   : > { %7033 = vmatpush.msk.msrb.mxu0 %vm232_vm0, %v3328_v63  ;;  %4993 = vst [vmem:[#allocation1 + $0x20] ss:$2 sm:$0xff] %v4981_v44  ;;  %v8357_v44 = vld.sshfl [vmem:[#allocation1] sm:$0xff pattern:$0x75316420] }
 0x1ba   : > { %4520 = vrot.lane.b32.xlu1 %v8208_v56, %s7327_s14  ;;  %v4755_v56 = vld.sshfl [vmem:[#allocation1 + $0x10] sm:$0xff pattern:$0x75316420]  ;;  %9450 = vst [vmem:[#allocation11_spill] sm:$0xff] %v8334_v22 }
 0x1bb   : > { %4522 = vrot.lane.b32.xlu0 %v8206_v55, %s7327_s14  ;;  %4991 = vst [vmem:[#allocation1 + $0x10] ss:$2 sm:$0xff] %v4980_v5 }
 0x1bc   : > { %v3318_v37 = vpop.permute.xlu1 %3317 }
 0x1bd   : > { %v3329_v31 = vsel %vm3323_vm14, %v3316_v14, %v3318_v37  ;;  %v3330_v63 = vsel %vm3323_vm14, %v3318_v37, %v8219_v60  ;;  %v3322_v24 = vpop.permute.xlu0 %3321  ;;  %4534 = vrot.lane.b32.xlu2 %v4517_v26, %s7327_s14  ;;  %v4979_v26 = vld [vmem:[%s7371_s17 + $0x4] sm:$0x77]  ;;  %v8362_v37 = vld [vmem:[%s9437_s0 + $0x38] sm:$0xf] }
 0x1be   : > { %v3331_v55 = vsel %vm3323_vm14, %v8219_v60, %v3322_v24  ;;  %7035 = vmatpush.msk.msrb.mxu1 %vm232_vm0, %v3329_v31  ;;  %7037 = vmatpush.msk.msrb.mxu2 %vm232_vm0, %v3330_v63  ;;  %v8349_v60 = vpop.f32.mrf.mxu0  ;;  %v8352_v31 = vpop.f32.mrf.mxu1  ;;  %4989 = vst [vmem:[#allocation1] ss:$2 sm:$0xff] %v4979_v26  ;;  %v4760_v26 = vld.sshfl [vmem:[#allocation1 + $0x38] sm:$0xff pattern:$0x75316420] }
 0x1bf   : > { %7039 = vmatpush.msk.msrb.mxu3 %vm232_vm0, %v3331_v55  ;;  %7038 = vmatmul.msk.f32.vlgmr.msrb.gmra.mxu2 %vm228_vm2, %v8271_v6  ;;  %v3559_v14 = vpop.permute.xlu2 %3558  ;;  %9451 = vst [vmem:[#allocation12_spill] sm:$0xff] %v8349_v60  ;;  %v8375_v55 = vpop.f32.mrf.mxu3 }
 0x1c0   : > { %7034 = vmatmul.msk.f32.vlgmr.msrb.gmra.mxu0 %vm228_vm2, %v8271_v6  ;;  %7036 = vmatmul.msk.f32.vlgmr.msrb.gmra.mxu1 %vm228_vm2, %v8271_v6  ;;  %9452 = vst [vmem:[#allocation13_spill] sm:$0xff] %v8352_v31 }
 0x1c1   : > { %7040 = vmatmul.msk.f32.vlgmr.msrb.gmra.mxu3 %vm228_vm2, %v8271_v6  ;;  %9454 = vst [vmem:[#allocation15_spill] sm:$0xff] %v8375_v55 }
 0x1c2   : > { %4532 = vrot.lane.b32.xlu1 %v4516_v27, %s7327_s14  ;;  %v8369_v27 = vpop.f32.mrf.mxu2 }
 0x1c3   : > { %4536 = vrot.lane.b32.xlu0 %v8266_v48, %s7327_s14  ;;  %9453 = vst [vmem:[#allocation14_spill] sm:$0xff] %v8369_v27 }
 0x1c4   : > { %v3557_v24 = vpop.permute.xlu1 %3556 }
 0x1c5   : > { %v3555_v5 = vpop.permute.xlu0 %3554  ;;  %4530 = vrot.lane.b32.xlu2 %v8231_v12, %s7327_s14  ;;  %v4759_v12 = vld.sshfl [vmem:[#allocation1 + $0x30] sm:$0xff pattern:$0x75316420]  ;;  %v8386_v27 = vld.sshfl [vmem:[#allocation1 + $0x8] sm:$0xff pattern:$0x75316420] }
 0x1c6   : > { %v3569_v6 = vsel %vm3566_vm15, %v8284_v1, %v3555_v5  ;;  %v3570_v48 = vsel %vm3566_vm15, %v3555_v5, %v3557_v24  ;;  %v4982_v5 = vld [vmem:[%s7371_s17 + $0x1c] sm:$0x77]  ;;  %v8390_v22 = vpop.f32.mrf.mxu1 }
 0x1c7   : > { %7046 = vmatpush.msk.msra.mxu2 %vm232_vm0, %v3569_v6  ;;  %7048 = vmatpush.msk.msra.mxu3 %vm232_vm0, %v3570_v48  ;;  %v8373_v63 = vpop.permute.xlu2 %3795  ;;  %v8384_v6 = vpop.f32.mrf.mxu0  ;;  %v8388_v55 = vld.sshfl [vmem:[#allocation1] sm:$0xff pattern:$0x75316420]  ;;  %9456 = vst [vmem:[#allocation17_spill] sm:$0xff] %v8390_v22  ;;  %v3571_v22 = vsel %vm3566_vm15, %v3557_v24, %v3559_v14  ;;  %v5224_v24 = vld [vmem:[%s7371_s17 + $0x14] sm:$0x77] }
 0x1c8   : > { %7047 = vmatmul.msk.f32.vlgmr.msra.gmra.mxu2 %vm228_vm2, %v8362_v37  ;;  %9455 = vst [vmem:[#allocation16_spill] sm:$0xff] %v8384_v6 }
 0x1c9   : > { %7049 = vmatmul.msk.f32.vlgmr.msra.gmra.mxu3 %vm228_vm2, %v8362_v37  ;;  %4995 = vst [vmem:[#allocation1 + $0x30] ss:$2 sm:$0xff] %v4982_v5  ;;  %v5223_v5 = vld [vmem:[%s7371_s17 + $0xc] sm:$0x77] }
 0x1ca   : > { %4771 = vrot.lane.b32.xlu1 %v4757_v30, %s7328_s18  ;;  %5004 = vst [vmem:[#allocation1] ss:$2 sm:$0xff] %v4983_v40  ;;  %v8411_v40 = vpop.f32.mrf.mxu3 }
 0x1cb   : > { %4769 = vrot.lane.b32.xlu0 %v4756_v4, %s7328_s18  ;;  %9458 = vst [vmem:[#allocation19_spill] sm:$0xff] %v8411_v40  ;;  %v4999_v40 = vld.sshfl [vmem:[#allocation1 + $0x18] sm:$0xff pattern:$0x75316420] }
 0x1cc   : > { %v3549_v48 = vpop.permute.xlu1 %3548 }
 0x1cd   : > { %v3551_v60 = vpop.permute.xlu0 %3550  ;;  %4767 = vrot.lane.b32.xlu2 %v4755_v56, %s7328_s18  ;;  %v8409_v56 = vld.sshfl [vmem:[#allocation1 + $0x28] sm:$0xff pattern:$0x75316420] }
 0x1ce   : > { %v3568_v30 = vsel %vm3566_vm15, %v3551_v60, %v8284_v1  ;;  %v3567_v4 = vsel %vm3566_vm15, %v3549_v48, %v3551_v60  ;;  %v8406_v1 = vpop.f32.mrf.mxu2  ;;  %v5000_v60 = vld.sshfl [vmem:[#allocation1 + $0x20] sm:$0xff pattern:$0x75316420] }
 0x1cf   : > { %7042 = vmatpush.msk.msra.mxu0 %vm232_vm0, %v3567_v4  ;;  %7044 = vmatpush.msk.msra.mxu1 %vm232_vm0, %v3568_v30  ;;  %v8399_v6 = vpop.permute.xlu2 %3805  ;;  %9457 = vst [vmem:[#allocation18_spill] sm:$0xff] %v8406_v1  ;;  %v4998_v1 = vld.sshfl [vmem:[#allocation1 + $0x10] sm:$0xff pattern:$0x75316420]  ;;  %v8423_v31 = vpop.f32.mrf.mxu0 }
 0x1d0   : > { %7043 = vmatmul.msk.f32.vlgmr.msra.gmra.mxu0 %vm228_vm2, %v8362_v37  ;;  %7045 = vmatmul.msk.f32.vlgmr.msra.gmra.mxu1 %vm228_vm2, %v8362_v37  ;;  %5236 = vst [vmem:[#allocation1 + $0x20] ss:$2 sm:$0xff] %v5224_v24  ;;  %v5222_v24 = vld [vmem:[%s7371_s17 + $0x4] sm:$0x77] }
 0x1d1   : > { %7050 = vmatpush.msk.msrb.mxu0 %vm232_vm0, %v3571_v22  ;;  %9459 = vst [vmem:[#allocation20_spill] sm:$0xff] %v8423_v31 }
 0x1d2   : > { %4763 = vrot.lane.b32.xlu1 %v8299_v36, %s7328_s18  ;;  %5234 = vst [vmem:[#allocation1 + $0x10] ss:$2 sm:$0xff] %v5223_v5  ;;  %v8448_v5 = vpop.f32.mrf.mxu3 }
 0x1d3   : > { %4765 = vrot.lane.b32.xlu0 %v8297_v32, %s7328_s18  ;;  %v8429_v32 = vpop.f32.mrf.mxu1  ;;  %9462 = vst [vmem:[#allocation23_spill] sm:$0xff] %v8448_v5  ;;  %v5225_v5 = vld [vmem:[%s7371_s17 + $0x1c] sm:$0x77] }
 0x1d4   : > { %v3561_v48 = vpop.permute.xlu1 %3560  ;;  %9460 = vst [vmem:[#allocation21_spill] sm:$0xff] %v8429_v32 }
 0x1d5   : > { %v3572_v30 = vsel %vm3566_vm15, %v3559_v14, %v3561_v48  ;;  %v3573_v22 = vsel %vm3566_vm15, %v3561_v48, %v8308_v8  ;;  %v3565_v4 = vpop.permute.xlu0 %3564  ;;  %4777 = vrot.lane.b32.xlu2 %v4760_v26, %s7328_s18  ;;  %v8445_v26 = vld.sshfl [vmem:[#allocation1] sm:$0xff pattern:$0x75316420] }
 0x1d6   : > { %v3574_v36 = vsel %vm3566_vm15, %v8308_v8, %v3565_v4  ;;  %7052 = vmatpush.msk.msrb.mxu1 %vm232_vm0, %v3572_v30  ;;  %7054 = vmatpush.msk.msrb.mxu2 %vm232_vm0, %v3573_v22  ;;  %v8441_v8 = vpop.f32.mrf.mxu2  ;;  %5232 = vst [vmem:[#allocation1] ss:$2 sm:$0xff] %v5222_v24 }
 0x1d7   : > { %7056 = vmatpush.msk.msrb.mxu3 %vm232_vm0, %v3574_v36  ;;  %7055 = vmatmul.msk.f32.vlgmr.msrb.gmra.mxu2 %vm228_vm2, %v8362_v37  ;;  %v3802_v14 = vpop.permute.xlu2 %3801  ;;  %9461 = vst [vmem:[#allocation22_spill] sm:$0xff] %v8441_v8  ;;  %v8464_v4 = vpop.f32.mrf.mxu0 }
 0x1d8   : > { %7051 = vmatmul.msk.f32.vlgmr.msrb.gmra.mxu0 %vm228_vm2, %v8362_v37  ;;  %7053 = vmatmul.msk.f32.vlgmr.msrb.gmra.mxu1 %vm228_vm2, %v8362_v37  ;;  %9463 = vst [vmem:[#allocation24_spill] sm:$0xff] %v8464_v4 }
 0x1d9   : > { %7057 = vmatmul.msk.f32.vlgmr.msrb.gmra.mxu3 %vm228_vm2, %v8362_v37  ;;  %v8453_v37 = vld [vmem:[%s9437_s0 + $0x3c] sm:$0xf] }
 0x1da   : > { %4775 = vrot.lane.b32.xlu1 %v4759_v12, %s7328_s18  ;;  %v8483_v31 = vpop.f32.mrf.mxu3 }
 0x1db   : > { %4779 = vrot.lane.b32.xlu0 %v8357_v44, %s7328_s18  ;;  %v8468_v36 = vpop.f32.mrf.mxu1  ;;  %9466 = vst [vmem:[#allocation27_spill] sm:$0xff] %v8483_v31 }
 0x1dc   : > { %v3800_v48 = vpop.permute.xlu1 %3799  ;;  %9464 = vst [vmem:[#allocation25_spill] sm:$0xff] %v8468_v36  ;;  %v5226_v36 = vld [vmem:[%s7371_s17 + $0x24] sm:$0x7] }
 0x1dd   : > { %v3798_v30 = vpop.permute.xlu0 %3797  ;;  %4773 = vrot.lane.b32.xlu2 %v8322_v0, %s7328_s18  ;;  %v5002_v0 = vld.sshfl [vmem:[#allocation1 + $0x30] sm:$0xff pattern:$0x75316420]  ;;  %v8474_v24 = vld.sshfl [vmem:[#allocation1 + $0x8] sm:$0xff pattern:$0x75316420] }
 0x1de   : > { %v3812_v44 = vsel %vm3809_vm1, %v8373_v63, %v3798_v30  ;;  %v3813_v12 = vsel %vm3809_vm1, %v3798_v30, %v3800_v48  ;;  %v8476_v30 = vld.sshfl [vmem:[#allocation1] sm:$0xff pattern:$0x75316420]  ;;  %v8479_v8 = vpop.f32.mrf.mxu2 }
 0x1df   : > { %7063 = vmatpush.msk.msra.mxu2 %vm232_vm0, %v3812_v44  ;;  %7065 = vmatpush.msk.msra.mxu3 %vm232_vm0, %v3813_v12  ;;  %v8462_v22 = vpop.permute.xlu2 %4038  ;;  %v5003_v12 = vld.sshfl [vmem:[#allocation1 + $0x38] sm:$0xff pattern:$0x75316420]  ;;  %9465 = vst [vmem:[#allocation26_spill] sm:$0xff] %v8479_v8 }
 0x1e0   : > { %7064 = vmatmul.msk.f32.vlgmr.msra.gmra.mxu2 %vm228_vm2, %v8453_v37  ;;  %5238 = vst [vmem:[#allocation1 + $0x30] ss:$2 sm:$0xff] %v5225_v5  ;;  %v8502_v5 = vld.sshfl [vmem:[#allocation1 + $0x28] sm:$0xff pattern:$0x75316420] }
 0x1e1   : > { %7066 = vmatmul.msk.f32.vlgmr.msra.gmra.mxu3 %vm228_vm2, %v8453_v37  ;;  %5247 = vst [vmem:[#allocation1] ss:$2 sm:$0xff] %v5226_v36  ;;  %v5466_v36 = vld [vmem:[%s7371_s17 + $0xc] sm:$0x77] }
 0x1e2   : > { %5014 = vrot.lane.b32.xlu1 %v5000_v60, %s7329_s21 }
 0x1e3   : > { %5012 = vrot.lane.b32.xlu0 %v4999_v40, %s7329_s21 }
 0x1e4   : > { %v3792_v44 = vpop.permute.xlu1 %3791 }
 0x1e5   : > { %v3794_v4 = vpop.permute.xlu0 %3793  ;;  %5010 = vrot.lane.b32.xlu2 %v4998_v1, %s7329_s21  ;;  %v3814_v1 = vsel %vm3809_vm1, %v3800_v48, %v3802_v14  ;;  %v5467_v48 = vld [vmem:[%s7371_s17 + $0x14] sm:$0x77] }
 0x1e6   : > { %v3811_v40 = vsel %vm3809_vm1, %v3794_v4, %v8373_v63  ;;  %v3810_v60 = vsel %vm3809_vm1, %v3792_v44, %v3794_v4  ;;  %v8498_v63 = vpop.f32.mrf.mxu0  ;;  %v8504_v4 = vpop.f32.mrf.mxu1 }
 0x1e7   : > { %7059 = vmatpush.msk.msra.mxu0 %vm232_vm0, %v3810_v60  ;;  %7061 = vmatpush.msk.msra.mxu1 %vm232_vm0, %v3811_v40  ;;  %v8490_v8 = vpop.permute.xlu2 %4048  ;;  %9467 = vst [vmem:[#allocation28_spill] sm:$0xff] %v8498_v63  ;;  %v5243_v40 = vld.sshfl [vmem:[#allocation1 + $0x20] sm:$0xff pattern:$0x75316420] }
 0x1e8   : > { %7060 = vmatmul.msk.f32.vlgmr.msra.gmra.mxu0 %vm228_vm2, %v8453_v37  ;;  %7062 = vmatmul.msk.f32.vlgmr.msra.gmra.mxu1 %vm228_vm2, %v8453_v37  ;;  %9468 = vst [vmem:[#allocation29_spill] sm:$0xff] %v8504_v4  ;;  %v5242_v60 = vld.sshfl [vmem:[#allocation1 + $0x18] sm:$0xff pattern:$0x75316420] }
 0x1e9   : > { %7067 = vmatpush.msk.msrb.mxu0 %vm232_vm0, %v3814_v1  ;;  %5479 = vst [vmem:[#allocation1 + $0x20] ss:$2 sm:$0xff] %v5467_v48 }
 0x1ea   : > { %5006 = vrot.lane.b32.xlu1 %v8388_v55, %s7329_s21  ;;  %v5241_v55 = vld.sshfl [vmem:[#allocation1 + $0x10] sm:$0xff pattern:$0x75316420] }
 0x1eb   : > { %5008 = vrot.lane.b32.xlu0 %v8386_v27, %s7329_s21  ;;  %5477 = vst [vmem:[#allocation1 + $0x10] ss:$2 sm:$0xff] %v5466_v36  ;;  %v8518_v27 = vpop.f32.mrf.mxu2 }
 0x1ec   : > { %v3804_v44 = vpop.permute.xlu1 %3803  ;;  %9469 = vst [vmem:[#allocation30_spill] sm:$0xff] %v8518_v27 }
 0x1ed   : > { %v3815_v31 = vsel %vm3809_vm1, %v3802_v14, %v3804_v44  ;;  %v3816_v1 = vsel %vm3809_vm1, %v3804_v44, %v8399_v6  ;;  %v3808_v63 = vpop.permute.xlu0 %3807  ;;  %5020 = vrot.lane.b32.xlu2 %v5003_v12, %s7329_s21  ;;  %v8523_v12 = vpop.f32.mrf.mxu3  ;;  %v8544_v44 = vld [vmem:[%s9437_s0 + $0x40] sm:$0xf] }
 0x1ee   : > { %v3817_v4 = vsel %vm3809_vm1, %v8399_v6, %v3808_v63  ;;  %7069 = vmatpush.msk.msrb.mxu1 %vm232_vm0, %v3815_v31  ;;  %7071 = vmatpush.msk.msrb.mxu2 %vm232_vm0, %v3816_v1  ;;  %9470 = vst [vmem:[#allocation31_spill] sm:$0xff] %v8523_v12  ;;  %v5465_v31 = vld [vmem:[%s7371_s17 + $0x4] sm:$0x77]  ;;  %v8535_v6 = vpop.f32.mrf.mxu0  ;;  %v8539_v48 = vpop.f32.mrf.mxu1  ;;  %vm6728_vm1 = vcmask 1043456  }
 0x1ef   : > { %7073 = vmatpush.msk.msrb.mxu3 %vm232_vm0, %v3817_v4  ;;  %7072 = vmatmul.msk.f32.vlgmr.msrb.gmra.mxu2 %vm228_vm2, %v8453_v37  ;;  %v4045_v14 = vpop.permute.xlu2 %4044  ;;  %9471 = vst [vmem:[#allocation32_spill] sm:$0xff] %v8535_v6  ;;  %v8537_v4 = vld.sshfl [vmem:[#allocation1] sm:$0xff pattern:$0x75316420] }
 0x1f0   : > { %7068 = vmatmul.msk.f32.vlgmr.msrb.gmra.mxu0 %vm228_vm2, %v8453_v37  ;;  %7070 = vmatmul.msk.f32.vlgmr.msrb.gmra.mxu1 %vm228_vm2, %v8453_v37  ;;  %9472 = vst [vmem:[#allocation33_spill] sm:$0xff] %v8539_v48 }
 0x1f1   : > { %7074 = vmatmul.msk.f32.vlgmr.msrb.gmra.mxu3 %vm228_vm2, %v8453_v37  ;;  %5475 = vst [vmem:[#allocation1] ss:$2 sm:$0xff] %v5465_v31  ;;  %v5245_v31 = vld.sshfl [vmem:[#allocation1 + $0x30] sm:$0xff pattern:$0x75316420] }
 0x1f2   : > { %5018 = vrot.lane.b32.xlu1 %v5002_v0, %s7329_s21 }
 0x1f3   : > { %5022 = vrot.lane.b32.xlu0 %v8445_v26, %s7329_s21  ;;  %v8557_v1 = vpop.f32.mrf.mxu2 }
 0x1f4   : > { %v4043_v63 = vpop.permute.xlu1 %4042  ;;  %9473 = vst [vmem:[#allocation34_spill] sm:$0xff] %v8557_v1 }
 0x1f5   : > { %v4041_v36 = vpop.permute.xlu0 %4040  ;;  %5016 = vrot.lane.b32.xlu2 %v8409_v56, %s7329_s21  ;;  %v8561_v56 = vpop.f32.mrf.mxu3 }
 0x1f6   : > { %v4055_v26 = vsel %vm4052_vm3, %v8462_v22, %v4041_v36  ;;  %v4056_v37 = vsel %vm4052_vm3, %v4041_v36, %v4043_v63  ;;  %9474 = vst [vmem:[#allocation35_spill] sm:$0xff] %v8561_v56  ;;  %v5246_v36 = vld.sshfl [vmem:[#allocation1 + $0x38] sm:$0xff pattern:$0x75316420]  ;;  %v8572_v1 = vpop.f32.mrf.mxu0  ;;  %v8577_v56 = vpop.f32.mrf.mxu1 }
 0x1f7   : > { %7080 = vmatpush.msk.msra.mxu2 %vm232_vm0, %v4055_v26  ;;  %7082 = vmatpush.msk.msra.mxu3 %vm232_vm0, %v4056_v37  ;;  %v8553_v0 = vpop.permute.xlu2 %4281  ;;  %v5468_v26 = vld [vmem:[%s7371_s17 + $0x1c] sm:$0x77]  ;;  %v5469_v37 = vld [vmem:[%s7371_s17 + $0x24] sm:$0x7]  ;;  %9475 = vst [vmem:[#allocation36_spill] sm:$0xff] %v8572_v1 }
 0x1f8   : > { %7081 = vmatmul.msk.f32.vlgmr.msra.gmra.mxu2 %vm228_vm2, %v8544_v44  ;;  %v8567_v27 = vld.sshfl [vmem:[#allocation1 + $0x8] sm:$0xff pattern:$0x75316420]  ;;  %v8569_v48 = vld.sshfl [vmem:[#allocation1] sm:$0xff pattern:$0x75316420] }
 0x1f9   : > { %7083 = vmatmul.msk.f32.vlgmr.msra.gmra.mxu3 %vm228_vm2, %v8544_v44  ;;  %5481 = vst [vmem:[#allocation1 + $0x30] ss:$2 sm:$0xff] %v5468_v26 }
 0x1fa   : > { %5257 = vrot.lane.b32.xlu1 %v5243_v40, %s7330_s24  ;;  %5490 = vst [vmem:[#allocation1] ss:$2 sm:$0xff] %v5469_v37 }
 0x1fb   : > { %5255 = vrot.lane.b32.xlu0 %v5242_v60, %s7330_s24  ;;  %9476 = vst [vmem:[#allocation37_spill] sm:$0xff] %v8577_v56  ;;  %v5484_v56 = vld.sshfl [vmem:[#allocation1 + $0x10] sm:$0xff pattern:$0x75316420] }
 0x1fc   : > { %v4035_v12 = vpop.permute.xlu1 %4034 }
 0x1fd   : > { %v4037_v6 = vpop.permute.xlu0 %4036  ;;  %5253 = vrot.lane.b32.xlu2 %v5241_v55, %s7330_s24  ;;  %v4057_v55 = vsel %vm4052_vm3, %v4043_v63, %v4045_v14  ;;  %v5709_v63 = vld [vmem:[%s7371_s17 + $0xc] sm:$0x77]  ;;  %v8599_v26 = vpop.f32.mrf.mxu3 }
 0x1fe   : > { %v4054_v40 = vsel %vm4052_vm3, %v4037_v6, %v8462_v22  ;;  %v4053_v60 = vsel %vm4052_vm3, %v4035_v12, %v4037_v6  ;;  %v8591_v22 = vld.sshfl [vmem:[#allocation1 + $0x28] sm:$0xff pattern:$0x75316420]  ;;  %v8593_v12 = vpop.f32.mrf.mxu2  ;;  %v5710_v6 = vld [vmem:[%s7371_s17 + $0x14] sm:$0x77]  ;;  %9478 = vst [vmem:[#allocation39_spill] sm:$0xff] %v8599_v26 }
 0x1ff   : > { %7076 = vmatpush.msk.msra.mxu0 %vm232_vm0, %v4053_v60  ;;  %7078 = vmatpush.msk.msra.mxu1 %vm232_vm0, %v4054_v40  ;;  %v8581_v32 = vpop.permute.xlu2 %4291  ;;  %9477 = vst [vmem:[#allocation38_spill] sm:$0xff] %v8593_v12  ;;  %v5486_v40 = vld.sshfl [vmem:[#allocation1 + $0x20] sm:$0xff pattern:$0x75316420] }
 0x200   : > { %7077 = vmatmul.msk.f32.vlgmr.msra.gmra.mxu0 %vm228_vm2, %v8544_v44  ;;  %7079 = vmatmul.msk.f32.vlgmr.msra.gmra.mxu1 %vm228_vm2, %v8544_v44  ;;  %v5485_v60 = vld.sshfl [vmem:[#allocation1 + $0x18] sm:$0xff pattern:$0x75316420]  ;;  %5722 = vst [vmem:[#allocation1 + $0x20] ss:$2 sm:$0xff] %v5710_v6 }
 0x201   : > { %7084 = vmatpush.msk.msrb.mxu0 %vm232_vm0, %v4057_v55  ;;  %5720 = vst [vmem:[#allocation1 + $0x10] ss:$2 sm:$0xff] %v5709_v63 }
 0x202   : > { %5249 = vrot.lane.b32.xlu1 %v8476_v30, %s7330_s24 }
 0x203   : > { %5251 = vrot.lane.b32.xlu0 %v8474_v24, %s7330_s24 }
 0x204   : > { %v4047_v37 = vpop.permute.xlu1 %4046 }
 0x205   : > { %v4058_v1 = vsel %vm4052_vm3, %v4045_v14, %v4047_v37  ;;  %v4059_v55 = vsel %vm4052_vm3, %v4047_v37, %v8490_v8  ;;  %v4051_v30 = vpop.permute.xlu0 %4050  ;;  %5263 = vrot.lane.b32.xlu2 %v5246_v36, %s7330_s24  ;;  %v8614_v37 = vpop.f32.mrf.mxu0  ;;  %v5708_v36 = vld [vmem:[%s7371_s17 + $0x4] sm:$0x77] }
 0x206   : > { %v4060_v24 = vsel %vm4052_vm3, %v8490_v8, %v4051_v30  ;;  %7086 = vmatpush.msk.msrb.mxu1 %vm232_vm0, %v4058_v1  ;;  %7088 = vmatpush.msk.msrb.mxu2 %vm232_vm0, %v4059_v55  ;;  %9479 = vst [vmem:[#allocation40_spill] sm:$0xff] %v8614_v37  ;;  %v8620_v8 = vpop.f32.mrf.mxu1  ;;  %v8627_v1 = vld.sshfl [vmem:[#allocation1] sm:$0xff pattern:$0x75316420]  ;;  %v8630_v63 = vpop.f32.mrf.mxu2 }
 0x207   : > { %7090 = vmatpush.msk.msrb.mxu3 %vm232_vm0, %v4060_v24  ;;  %7089 = vmatmul.msk.f32.vlgmr.msrb.gmra.mxu2 %vm228_vm2, %v8544_v44  ;;  %v8612_v14 = vpop.permute.xlu2 %4287  ;;  %9480 = vst [vmem:[#allocation41_spill] sm:$0xff] %v8620_v8  ;;  %v8635_v30 = vld [vmem:[%s9437_s0 + $0x44] sm:$0xf]  ;;  %v5711_v8 = vld [vmem:[%s7371_s17 + $0x1c] sm:$0x77] }
 0x208   : > { %7085 = vmatmul.msk.f32.vlgmr.msrb.gmra.mxu0 %vm228_vm2, %v8544_v44  ;;  %7087 = vmatmul.msk.f32.vlgmr.msrb.gmra.mxu1 %vm228_vm2, %v8544_v44  ;;  %5718 = vst [vmem:[#allocation1] ss:$2 sm:$0xff] %v5708_v36  ;;  %v5488_v36 = vld.sshfl [vmem:[#allocation1 + $0x30] sm:$0xff pattern:$0x75316420] }
 0x209   : > { %7091 = vmatmul.msk.f32.vlgmr.msrb.gmra.mxu3 %vm228_vm2, %v8544_v44  ;;  %9481 = vst [vmem:[#allocation42_spill] sm:$0xff] %v8630_v63  ;;  %v8639_v44 = vpop.f32.mrf.mxu3  ;;  %v5712_v37 = vld [vmem:[%s7371_s17 + $0x24] sm:$0x7] }
 0x20a   : > { %5261 = vrot.lane.b32.xlu1 %v5245_v31, %s7330_s24  ;;  %9482 = vst [vmem:[#allocation43_spill] sm:$0xff] %v8639_v44 }
 0x20b   : > { %5265 = vrot.lane.b32.xlu0 %v8537_v4, %s7330_s24 }
 0x20c   : > { %v4286_v6 = vpop.permute.xlu1 %4285 }
 0x20d   : > { %v4284_v55 = vpop.permute.xlu0 %4283  ;;  %5259 = vrot.lane.b32.xlu2 %v8502_v5, %s7330_s24  ;;  %v8652_v5 = vpop.f32.mrf.mxu0 }
 0x20e   : > { %v4298_v4 = vsel %vm4295_vm4, %v8553_v0, %v4284_v55  ;;  %v4299_v31 = vsel %vm4295_vm4, %v4284_v55, %v4286_v6  ;;  %9483 = vst [vmem:[#allocation44_spill] sm:$0xff] %v8652_v5  ;;  %v5489_v55 = vld.sshfl [vmem:[#allocation1 + $0x38] sm:$0xff pattern:$0x75316420]  ;;  %v8655_v26 = vpop.f32.mrf.mxu1 }
 0x20f   : > { %7097 = vmatpush.msk.msra.mxu2 %vm232_vm0, %v4298_v4  ;;  %7099 = vmatpush.msk.msra.mxu3 %vm232_vm0, %v4299_v31  ;;  %v8646_v24 = vpop.permute.xlu2 %4524  ;;  %9484 = vst [vmem:[#allocation45_spill] sm:$0xff] %v8655_v26  ;;  %v8658_v4 = vld.sshfl [vmem:[#allocation1 + $0x8] sm:$0xff pattern:$0x75316420] }
 0x210   : > { %7098 = vmatmul.msk.f32.vlgmr.msra.gmra.mxu2 %vm228_vm2, %v8635_v30  ;;  %v8660_v31 = vld.sshfl [vmem:[#allocation1] sm:$0xff pattern:$0x75316420]  ;;  %5724 = vst [vmem:[#allocation1 + $0x30] ss:$2 sm:$0xff] %v5711_v8 }
 0x211   : > { %7100 = vmatmul.msk.f32.vlgmr.msra.gmra.mxu3 %vm228_vm2, %v8635_v30  ;;  %5733 = vst [vmem:[#allocation1] ss:$2 sm:$0xff] %v5712_v37  ;;  %v8674_v63 = vpop.f32.mrf.mxu3  ;;  %v5953_v37 = vld [vmem:[%s7371_s17 + $0x14] sm:$0x77]  ;;  %v5952_v8 = vld [vmem:[%s7371_s17 + $0xc] sm:$0x77] }
 0x212   : > { %5500 = vrot.lane.b32.xlu1 %v5486_v40, %s7331_s27  ;;  %9486 = vst [vmem:[#allocation47_spill] sm:$0xff] %v8674_v63 }
 0x213   : > { %5498 = vrot.lane.b32.xlu0 %v5485_v60, %s7331_s27  ;;  %v8668_v60 = vpop.f32.mrf.mxu2 }
 0x214   : > { %v4278_v12 = vpop.permute.xlu1 %4277  ;;  %9485 = vst [vmem:[#allocation46_spill] sm:$0xff] %v8668_v60  ;;  %v5727_v60 = vld.sshfl [vmem:[#allocation1 + $0x10] sm:$0xff pattern:$0x75316420] }
 0x215   : > { %v4280_v44 = vpop.permute.xlu0 %4279  ;;  %5496 = vrot.lane.b32.xlu2 %v5484_v56, %s7331_s27  ;;  %v4300_v56 = vsel %vm4295_vm4, %v4286_v6, %v8612_v14  ;;  %v8693_v6 = vpop.f32.mrf.mxu0 }
 0x216   : > { %v4297_v40 = vsel %vm4295_vm4, %v4280_v44, %v8553_v0  ;;  %v4296_v5 = vsel %vm4295_vm4, %v4278_v12, %v4280_v44  ;;  %v8685_v0 = vld.sshfl [vmem:[#allocation1 + $0x28] sm:$0xff pattern:$0x75316420]  ;;  %v8687_v12 = vpop.f32.mrf.mxu1  ;;  %9488 = vst [vmem:[#allocation49_spill] sm:$0xff] %v8693_v6 }
 0x217   : > { %7093 = vmatpush.msk.msra.mxu0 %vm232_vm0, %v4296_v5  ;;  %7095 = vmatpush.msk.msra.mxu1 %vm232_vm0, %v4297_v40  ;;  %v8672_v26 = vpop.permute.xlu2 %4534  ;;  %9487 = vst [vmem:[#allocation48_spill] sm:$0xff] %v8687_v12  ;;  %v5729_v5 = vld.sshfl [vmem:[#allocation1 + $0x20] sm:$0xff pattern:$0x75316420] }
 0x218   : > { %7094 = vmatmul.msk.f32.vlgmr.msra.gmra.mxu0 %vm228_vm2, %v8635_v30  ;;  %7096 = vmatmul.msk.f32.vlgmr.msra.gmra.mxu1 %vm228_vm2, %v8635_v30  ;;  %v5728_v40 = vld.sshfl [vmem:[#allocation1 + $0x18] sm:$0xff pattern:$0x75316420]  ;;  %5965 = vst [vmem:[#allocation1 + $0x20] ss:$2 sm:$0xff] %v5953_v37 }
 0x219   : > { %7101 = vmatpush.msk.msrb.mxu0 %vm232_vm0, %v4300_v56  ;;  %5963 = vst [vmem:[#allocation1 + $0x10] ss:$2 sm:$0xff] %v5952_v8 }
 0x21a   : > { %5492 = vrot.lane.b32.xlu1 %v8569_v48, %s7331_s27 }
 0x21b   : > { %5494 = vrot.lane.b32.xlu0 %v8567_v27, %s7331_s27  ;;  %v8704_v6 = vpop.f32.mrf.mxu2 }
 0x21c   : > { %v4290_v44 = vpop.permute.xlu1 %4289  ;;  %9489 = vst [vmem:[#allocation50_spill] sm:$0xff] %v8704_v6 }
 0x21d   : > { %v4301_v56 = vsel %vm4295_vm4, %v8612_v14, %v4290_v44  ;;  %v4302_v48 = vsel %vm4295_vm4, %v4290_v44, %v8581_v32  ;;  %v4294_v63 = vpop.permute.xlu0 %4293  ;;  %5506 = vrot.lane.b32.xlu2 %v5489_v55, %s7331_s27  ;;  %v8711_v55 = vpop.f32.mrf.mxu3 }
 0x21e   : > { %v4303_v27 = vsel %vm4295_vm4, %v8581_v32, %v4294_v63  ;;  %7103 = vmatpush.msk.msrb.mxu1 %vm232_vm0, %v4301_v56  ;;  %7105 = vmatpush.msk.msrb.mxu2 %vm232_vm0, %v4302_v48  ;;  %9490 = vst [vmem:[#allocation51_spill] sm:$0xff] %v8711_v55  ;;  %v8722_v32 = vld.sshfl [vmem:[#allocation1] sm:$0xff pattern:$0x75316420]  ;;  %v8725_v37 = vpop.f32.mrf.mxu0  ;;  %v8727_v44 = vpop.f32.mrf.mxu1 }
 0x21f   : > { %7107 = vmatpush.msk.msrb.mxu3 %vm232_vm0, %v4303_v27  ;;  %7106 = vmatmul.msk.f32.vlgmr.msrb.gmra.mxu2 %vm228_vm2, %v8635_v30  ;;  %v8709_v14 = vpop.permute.xlu2 %4530  ;;  %v5951_v63 = vld [vmem:[%s7371_s17 + $0x4] sm:$0x77]  ;;  %9491 = vst [vmem:[#allocation52_spill] sm:$0xff] %v8725_v37  ;;  %v5954_v37 = vld [vmem:[%s7371_s17 + $0x1c] sm:$0x77] }
 0x220   : > { %7102 = vmatmul.msk.f32.vlgmr.msrb.gmra.mxu0 %vm228_vm2, %v8635_v30  ;;  %7104 = vmatmul.msk.f32.vlgmr.msrb.gmra.mxu1 %vm228_vm2, %v8635_v30  ;;  %5961 = vst [vmem:[#allocation1] ss:$2 sm:$0xff] %v5951_v63  ;;  %v5731_v63 = vld.sshfl [vmem:[#allocation1 + $0x30] sm:$0xff pattern:$0x75316420] }
 0x221   : > { %7108 = vmatmul.msk.f32.vlgmr.msrb.gmra.mxu3 %vm228_vm2, %v8635_v30  ;;  %9492 = vst [vmem:[#allocation53_spill] sm:$0xff] %v8727_v44  ;;  %v8732_v30 = vld [vmem:[%s9437_s0 + $0x48] sm:$0xf]  ;;  %v5955_v44 = vld [vmem:[%s7371_s17 + $0x24] sm:$0x7] }
 0x222   : > { %5504 = vrot.lane.b32.xlu1 %v5488_v36, %s7331_s27 }
 0x223   : > { %5508 = vrot.lane.b32.xlu0 %v8627_v1, %s7331_s27  ;;  %v8745_v27 = vpop.f32.mrf.mxu2 }
 0x224   : > { %v4529_v8 = vpop.permute.xlu1 %4528  ;;  %9493 = vst [vmem:[#allocation54_spill] sm:$0xff] %v8745_v27 }
 0x225   : > { %v4527_v56 = vpop.permute.xlu0 %4526  ;;  %5502 = vrot.lane.b32.xlu2 %v8591_v22, %s7331_s27  ;;  %v8749_v22 = vpop.f32.mrf.mxu3  ;;  %s7264_s27 = sshll.u32 %s9578_s13, 5 }
 0x226   : > { %v4541_v1 = vsel %vm4538_vm5, %v8646_v24, %v4527_v56  ;;  %v4542_v36 = vsel %vm4538_vm5, %v4527_v56, %v4529_v8  ;;  %9494 = vst [vmem:[#allocation55_spill] sm:$0xff] %v8749_v22  ;;  %v5732_v56 = vld.sshfl [vmem:[#allocation1 + $0x38] sm:$0xff pattern:$0x75316420]  ;;  %v8759_v27 = vpop.f32.mrf.mxu1  ;;  %v8762_v22 = vpop.f32.mrf.mxu0 }
 0x227   : > { %7114 = vmatpush.msk.msra.mxu2 %vm232_vm0, %v4541_v1  ;;  %7116 = vmatpush.msk.msra.mxu3 %vm232_vm0, %v4542_v36  ;;  %v8741_v48 = vpop.permute.xlu2 %4767  ;;  %v8753_v1 = vld.sshfl [vmem:[#allocation1 + $0x8] sm:$0xff pattern:$0x75316420]  ;;  %v8755_v36 = vld.sshfl [vmem:[#allocation1] sm:$0xff pattern:$0x75316420] }
 0x228   : > { %7115 = vmatmul.msk.f32.vlgmr.msra.gmra.mxu2 %vm228_vm2, %v8732_v30  ;;  %9495 = vst [vmem:[#allocation56_spill] sm:$0xff] %v8759_v27 }
 0x229   : > { %7117 = vmatmul.msk.f32.vlgmr.msra.gmra.mxu3 %vm228_vm2, %v8732_v30  ;;  %5967 = vst [vmem:[#allocation1 + $0x30] ss:$2 sm:$0xff] %v5954_v37  ;;  %v6195_v37 = vld [vmem:[%s7371_s17 + $0xc] sm:$0x77] }
 0x22a   : > { %5743 = vrot.lane.b32.xlu1 %v5729_v5, %s7332_s30  ;;  %9496 = vst [vmem:[#allocation57_spill] sm:$0xff] %v8762_v22 }
 0x22b   : > { %5741 = vrot.lane.b32.xlu0 %v5728_v40, %s7332_s30  ;;  %5976 = vst [vmem:[#allocation1] ss:$2 sm:$0xff] %v5955_v44 }
 0x22c   : > { %v4521_v12 = vpop.permute.xlu1 %4520 }
 0x22d   : > { %v4523_v55 = vpop.permute.xlu0 %4522  ;;  %5739 = vrot.lane.b32.xlu2 %v5727_v60, %s7332_s30  ;;  %v4543_v60 = vsel %vm4538_vm5, %v4529_v8, %v8709_v14  ;;  %v8788_v8 = vpop.f32.mrf.mxu3 }
 0x22e   : > { %v4540_v5 = vsel %vm4538_vm5, %v4523_v55, %v8646_v24  ;;  %v4539_v40 = vsel %vm4538_vm5, %v4521_v12, %v4523_v55  ;;  %v8780_v24 = vld.sshfl [vmem:[#allocation1 + $0x28] sm:$0xff pattern:$0x75316420]  ;;  %v8782_v12 = vpop.f32.mrf.mxu2  ;;  %v6196_v55 = vld [vmem:[%s7371_s17 + $0x14] sm:$0x77]  ;;  %9498 = vst [vmem:[#allocation59_spill] sm:$0xff] %v8788_v8  ;;  %v8790_v27 = vpop.f32.mrf.mxu1 }
 0x22f   : > { %7110 = vmatpush.msk.msra.mxu0 %vm232_vm0, %v4539_v40  ;;  %7112 = vmatpush.msk.msra.mxu1 %vm232_vm0, %v4540_v5  ;;  %v8769_v6 = vpop.permute.xlu2 %4777  ;;  %9497 = vst [vmem:[#allocation58_spill] sm:$0xff] %v8782_v12  ;;  %v5972_v5 = vld.sshfl [vmem:[#allocation1 + $0x20] sm:$0xff pattern:$0x75316420] }
 0x230   : > { %7111 = vmatmul.msk.f32.vlgmr.msra.gmra.mxu0 %vm228_vm2, %v8732_v30  ;;  %7113 = vmatmul.msk.f32.vlgmr.msra.gmra.mxu1 %vm228_vm2, %v8732_v30  ;;  %v5971_v40 = vld.sshfl [vmem:[#allocation1 + $0x18] sm:$0xff pattern:$0x75316420]  ;;  %9499 = vst [vmem:[#allocation60_spill] sm:$0xff] %v8790_v27 }
 0x231   : > { %7118 = vmatpush.msk.msrb.mxu0 %vm232_vm0, %v4543_v60  ;;  %v5970_v12 = vld.sshfl [vmem:[#allocation1 + $0x10] sm:$0xff pattern:$0x75316420]  ;;  %6208 = vst [vmem:[#allocation1 + $0x20] ss:$2 sm:$0xff] %v6196_v55 }
 0x232   : > { %5735 = vrot.lane.b32.xlu1 %v8660_v31, %s7332_s30  ;;  %6206 = vst [vmem:[#allocation1 + $0x10] ss:$2 sm:$0xff] %v6195_v37 }
 0x233   : > { %5737 = vrot.lane.b32.xlu0 %v8658_v4, %s7332_s30  ;;  %v8797_v4 = vpop.f32.mrf.mxu0 }
 0x234   : > { %v4533_v44 = vpop.permute.xlu1 %4532  ;;  %9500 = vst [vmem:[#allocation61_spill] sm:$0xff] %v8797_v4 }
 0x235   : > { %v4544_v60 = vsel %vm4538_vm5, %v8709_v14, %v4533_v44  ;;  %v4545_v31 = vsel %vm4538_vm5, %v4533_v44, %v8672_v26  ;;  %v4537_v22 = vpop.permute.xlu0 %4536  ;;  %5749 = vrot.lane.b32.xlu2 %v5732_v56, %s7332_s30  ;;  %v6194_v56 = vld [vmem:[%s7371_s17 + $0x4] sm:$0x77]  ;;  %v8820_v55 = vpop.f32.mrf.mxu3 }
 0x236   : > { %v4546_v8 = vsel %vm4538_vm5, %v8672_v26, %v4537_v22  ;;  %7120 = vmatpush.msk.msrb.mxu1 %vm232_vm0, %v4544_v60  ;;  %7122 = vmatpush.msk.msrb.mxu2 %vm232_vm0, %v4545_v31  ;;  %v8813_v26 = vpop.f32.mrf.mxu2  ;;  %v8817_v22 = vld.sshfl [vmem:[#allocation1] sm:$0xff pattern:$0x75316420]  ;;  %9502 = vst [vmem:[#allocation63_spill] sm:$0xff] %v8820_v55  ;;  %v8832_v44 = vpop.f32.mrf.mxu1 }
 0x237   : > { %7124 = vmatpush.msk.msrb.mxu3 %vm232_vm0, %v4546_v8  ;;  %7123 = vmatmul.msk.f32.vlgmr.msrb.gmra.mxu2 %vm228_vm2, %v8732_v30  ;;  %v4774_v14 = vpop.permute.xlu2 %4773  ;;  %9501 = vst [vmem:[#allocation62_spill] sm:$0xff] %v8813_v26  ;;  %v6197_v55 = vld [vmem:[%s7371_s17 + $0x1c] sm:$0x77]  ;;  %v6198_v26 = vld [vmem:[%s7371_s17 + $0x24] sm:$0x7] }
 0x238   : > { %7119 = vmatmul.msk.f32.vlgmr.msrb.gmra.mxu0 %vm228_vm2, %v8732_v30  ;;  %7121 = vmatmul.msk.f32.vlgmr.msrb.gmra.mxu1 %vm228_vm2, %v8732_v30  ;;  %6204 = vst [vmem:[#allocation1] ss:$2 sm:$0xff] %v6194_v56  ;;  %v5975_v56 = vld.sshfl [vmem:[#allocation1 + $0x38] sm:$0xff pattern:$0x75316420] }
 0x239   : > { %7125 = vmatmul.msk.f32.vlgmr.msrb.gmra.mxu3 %vm228_vm2, %v8732_v30  ;;  %v8825_v30 = vld [vmem:[%s9437_s0 + $0x4c] sm:$0xf]  ;;  %9503 = vst [vmem:[#allocation64_spill] sm:$0xff] %v8832_v44 }
 0x23a   : > { %5747 = vrot.lane.b32.xlu1 %v5731_v63, %s7332_s30 }
 0x23b   : > { %5751 = vrot.lane.b32.xlu0 %v8722_v32, %s7332_s30  ;;  %v8838_v31 = vpop.f32.mrf.mxu0 }
 0x23c   : > { %v4772_v37 = vpop.permute.xlu1 %4771  ;;  %9504 = vst [vmem:[#allocation65_spill] sm:$0xff] %v8838_v31 }
 0x23d   : > { %v4770_v8 = vpop.permute.xlu0 %4769  ;;  %5745 = vrot.lane.b32.xlu2 %v8685_v0, %s7332_s30  ;;  %v5974_v0 = vld.sshfl [vmem:[#allocation1 + $0x30] sm:$0xff pattern:$0x75316420]  ;;  %v8855_v4 = vpop.f32.mrf.mxu3  ;;  %s9412_s30 = scalar_lea.vmem %s9440_s3, %s7264_s27 }
 0x23e   : > { %v4784_v32 = vsel %vm4781_vm6, %v8741_v48, %v4770_v8  ;;  %v4785_v63 = vsel %vm4781_vm6, %v4770_v8, %v4772_v37  ;;  %6210 = vst [vmem:[#allocation1 + $0x30] ss:$2 sm:$0xff] %v6197_v55  ;;  %v8853_v44 = vpop.f32.mrf.mxu2  ;;  %v8860_v27 = vpop.f32.mrf.mxu1 }
 0x23f   : > { %7131 = vmatpush.msk.msra.mxu2 %vm232_vm0, %v4784_v32  ;;  %7133 = vmatpush.msk.msra.mxu3 %vm232_vm0, %v4785_v63  ;;  %v8836_v60 = vpop.permute.xlu2 %5010  ;;  %v8846_v8 = vld.sshfl [vmem:[#allocation1 + $0x8] sm:$0xff pattern:$0x75316420]  ;;  %v8848_v32 = vld.sshfl [vmem:[#allocation1] sm:$0xff pattern:$0x75316420] }
 0x240   : > { %7132 = vmatmul.msk.f32.vlgmr.msra.gmra.mxu2 %vm228_vm2, %v8825_v30  ;;  %9505 = vst [vmem:[#allocation66_spill] sm:$0xff] %v8853_v44 }
 0x241   : > { %7134 = vmatmul.msk.f32.vlgmr.msra.gmra.mxu3 %vm228_vm2, %v8825_v30  ;;  %9506 = vst [vmem:[#allocation67_spill] sm:$0xff] %v8855_v4  ;;  %v4786_v4 = vsel %vm4781_vm6, %v4772_v37, %v4774_v14  ;;  %v6215_v37 = vld.sshfl [vmem:[#allocation1 + $0x20] sm:$0xff pattern:$0x75316420] }
 0x242   : > { %5986 = vrot.lane.b32.xlu1 %v5972_v5, %s7333_s6  ;;  %6219 = vst [vmem:[#allocation1] ss:$2 sm:$0xff] %v6198_v26  ;;  %v6439_v26 = vld [vmem:[%s7371_s17 + $0x14] sm:$0x77] }
 0x243   : > { %5984 = vrot.lane.b32.xlu0 %v5971_v40, %s7333_s6  ;;  %9507 = vst [vmem:[#allocation68_spill] sm:$0xff] %v8860_v27  ;;  %v8866_v55 = vpop.f32.mrf.mxu0  ;;  %v501_v27 = vadd.f32 %v7977_v2, %v7911_v34 }
 0x244   : > { %v4764_v63 = vpop.permute.xlu1 %4763  ;;  %9508 = vst [vmem:[#allocation69_spill] sm:$0xff] %v8866_v55 }
 0x245   : > { %v4766_v31 = vpop.permute.xlu0 %4765  ;;  %5982 = vrot.lane.b32.xlu2 %v5970_v12, %s7333_s6  ;;  %v840_v2 = vadd.f32 %v8042_v43, %v501_v27  ;;  %v541_v43 = vadd.f32 %v8027_v28, %v7956_v57  ;;  %v8936_v27 = vld [vmem:[%s9437_s0 + $0x50] sm:$0xf]  ;;  %v561_v57 = vadd.f32 %v8031_v25, %v7962_v61  ;;  %v601_v61 = vadd.f32 %v8011_v16, %v7948_v52  ;;  %v6218_v16 = vld.sshfl [vmem:[#allocation1 + $0x38] sm:$0xff pattern:$0x75316420] }
 0x246   : > { %v4783_v5 = vsel %vm4781_vm6, %v4766_v31, %v8741_v48  ;;  %v4782_v40 = vsel %vm4781_vm6, %v4764_v63, %v4766_v31  ;;  %v8876_v48 = vld.sshfl [vmem:[#allocation1 + $0x28] sm:$0xff pattern:$0x75316420]  ;;  %v8894_v44 = vpop.f32.mrf.mxu2  ;;  %v8973_v52 = vld.sshfl [vmem:[#allocation1 + $0x30] sm:$0xff pattern:$0x75316420] }
 0x247   : > { %7127 = vmatpush.msk.msra.mxu0 %vm232_vm0, %v4782_v40  ;;  %7129 = vmatpush.msk.msra.mxu1 %vm232_vm0, %v4783_v5  ;;  %v8864_v12 = vpop.permute.xlu2 %5020  ;;  %v6438_v31 = vld [vmem:[%s7371_s17 + $0xc] sm:$0x77]  ;;  %v8882_v5 = vld.sshfl [vmem:[#allocation1 + $0x18] sm:$0xff pattern:$0x75316420]  ;;  %v842_v25 = vadd.f32 %v8092_v18, %v541_v43  ;;  %v843_v18 = vadd.f32 %v8096_v7, %v561_v57  ;;  %v9512_v43 = vld [vmem:[#allocation5_spill] sm:$0xff] }
 0x248   : > { %7128 = vmatmul.msk.f32.vlgmr.msra.gmra.mxu0 %vm228_vm2, %v8825_v30  ;;  %7130 = vmatmul.msk.f32.vlgmr.msra.gmra.mxu1 %vm228_vm2, %v8825_v30  ;;  %6451 = vst [vmem:[#allocation1 + $0x20] ss:$2 sm:$0xff] %v6439_v26  ;;  %v521_v26 = vadd.f32 %v7982_v3, %v7917_v39  ;;  %v9515_v57 = vld [vmem:[#allocation2_spill] sm:$0xff] }
 0x249   : > { %7135 = vmatpush.msk.msrb.mxu0 %vm232_vm0, %v4786_v4  ;;  %v1085_v7 = vadd.f32 %v8165_v29, %v842_v25 }
 0x24a   : > { %5978 = vrot.lane.b32.xlu1 %v8755_v36, %s7333_s6  ;;  %v8888_v36 = vld.sshfl [vmem:[#allocation1 + $0x10] sm:$0xff pattern:$0x75316420] }
 0x24b   : > { %5980 = vrot.lane.b32.xlu0 %v8753_v1, %s7333_s6  ;;  %v481_v1 = vadd.f32 %v7998_v9, %v7929_v42  ;;  %6449 = vst [vmem:[#allocation1 + $0x10] ss:$2 sm:$0xff] %v6438_v31  ;;  %v8904_v42 = vpop.f32.mrf.mxu3  ;;  %v8921_v3 = vpop.f32.mrf.mxu0  ;;  %v841_v9 = vadd.f32 %v8050_v47, %v521_v26  ;;  %v845_v26 = vadd.f32 %v8085_v15, %v601_v61  ;;  %v9516_v61 = vld [vmem:[#allocation3_spill] sm:$0xff] }
 0x24c   : > { %v4776_v63 = vpop.permute.xlu1 %4775 }
 0x24d   : > { %v4787_v40 = vsel %vm4781_vm6, %v4774_v14, %v4776_v63  ;;  %v4788_v55 = vsel %vm4781_vm6, %v4776_v63, %v8769_v6  ;;  %v4780_v4 = vpop.permute.xlu0 %4779  ;;  %5992 = vrot.lane.b32.xlu2 %v5975_v56, %s7333_s6  ;;  %v461_v56 = vadd.f32 %v7995_v21, %v7925_v41  ;;  %v8915_v41 = vpop.f32.mrf.mxu1  ;;  %v839_v39 = vadd.f32 %v8065_v53, %v481_v1 }
 0x24e   : > { %v4789_v14 = vsel %vm4781_vm6, %v8769_v6, %v4780_v4  ;;  %7137 = vmatpush.msk.msrb.mxu1 %vm232_vm0, %v4787_v40  ;;  %7139 = vmatpush.msk.msrb.mxu2 %vm232_vm0, %v4788_v55  ;;  %v8928_v6 = vld.sshfl [vmem:[#allocation1] sm:$0xff pattern:$0x75316420]  ;;  %v1084_v31 = vadd.f32 %v8114_v17, %v841_v9 }
 0x24f   : > { %7141 = vmatpush.msk.msrb.mxu3 %vm232_vm0, %v4789_v14  ;;  %7140 = vmatmul.msk.f32.vlgmr.msrb.gmra.mxu2 %vm228_vm2, %v8825_v30  ;;  %v8909_v34 = vpop.permute.xlu2 %5016  ;;  %v838_v21 = vadd.f32 %v8059_v49, %v461_v56  ;;  %v6437_v55 = vld [vmem:[%s7371_s17 + $0x4] sm:$0x77]  ;;  %v1082_v47 = vadd.f32 %v8133_v45, %v839_v39  ;;  %v1083_v49 = vadd.f32 %v8112_v13, %v840_v2  ;;  %v8955_v45 = vpop.f32.mrf.mxu2 }
 0x250   : > { %7136 = vmatmul.msk.f32.vlgmr.msrb.gmra.mxu0 %vm228_vm2, %v8825_v30  ;;  %7138 = vmatmul.msk.f32.vlgmr.msrb.gmra.mxu1 %vm228_vm2, %v8825_v30  ;;  %6447 = vst [vmem:[#allocation1] ss:$2 sm:$0xff] %v6437_v55  ;;  %v581_v13 = vadd.f32 %v8008_v11, %v7946_v51  ;;  %v1327_v4 = vadd.f32 %v8186_v20, %v1084_v31  ;;  %v6441_v56 = vld [vmem:[%s7371_s17 + $0x24] sm:$0x7]  ;;  %v9511_v55 = vld [vmem:[#allocation10_spill] sm:$0xff] }
 0x251   : > { %7142 = vmatmul.msk.f32.vlgmr.msrb.gmra.mxu3 %vm228_vm2, %v8825_v30  ;;  %v1081_v28 = vadd.f32 %v8127_v38, %v838_v21  ;;  %v1325_v51 = vadd.f32 %v8202_v33, %v1082_v47  ;;  %v1326_v11 = vadd.f32 %v8177_v10, %v1083_v49  ;;  %v1086_v2 = vadd.f32 %v8169_v19, %v843_v18  ;;  %v9513_v47 = vld [vmem:[#allocation12_spill] sm:$0xff] }
 0x252   : > { %5990 = vrot.lane.b32.xlu1 %v5974_v0, %s7333_s6  ;;  %v844_v1 = vadd.f32 %v8079_v59, %v581_v13  ;;  %v1570_v29 = vadd.f32 %v8260_v46, %v1327_v4  ;;  %v1088_v19 = vadd.f32 %v8152_v58, %v845_v26  ;;  %v9509_v46 = vld [vmem:[#allocation4_spill] sm:$0xff]  ;;  %v9518_v4 = vld [vmem:[#allocation21_spill] sm:$0xff] }
 0x253   : > { %5994 = vrot.lane.b32.xlu0 %v8817_v22, %s7333_s6  ;;  %v8962_v17 = vpop.f32.mrf.mxu3  ;;  %v8970_v63 = vpop.f32.mrf.mxu0  ;;  %v1324_v40 = vadd.f32 %v8199_v50, %v1081_v28  ;;  %v1568_v20 = vadd.f32 %v8280_v62, %v1325_v51  ;;  %v1569_v50 = vadd.f32 %v8256_v35, %v1326_v11  ;;  %v9517_v51 = vld [vmem:[#allocation8_spill] sm:$0xff] }
 0x254   : > { %v5015_v30 = vpop.permute.xlu1 %5014  ;;  %v1087_v35 = vadd.f32 %v8146_v54, %v844_v1  ;;  %v9510_v54 = vld [vmem:[#allocation13_spill] sm:$0xff]  ;;  %v1331_v25 = vadd.f32 %v9516_v61, %v1088_v19  ;;  %v9519_v1 = vld [vmem:[#allocation18_spill] sm:$0xff] }
 0x255   : > { %v5013_v53 = vpop.permute.xlu0 %5012  ;;  %5988 = vrot.lane.b32.xlu2 %v8780_v24, %s7333_s6  ;;  %v8964_v38 = vpop.f32.mrf.mxu1  ;;  %v1567_v15 = vadd.f32 %v8275_v23, %v1324_v40  ;;  %v5029_v62 = vsel %vm5024_vm7, %v5015_v30, %v8909_v34  ;;  %v1328_v23 = vadd.f32 %v9509_v46, %v1085_v7  ;;  %v1811_v9 = vadd.f32 %v9510_v54, %v1568_v20 }
 0x256   : > { %v5027_v22 = vsel %vm5024_vm7, %v8836_v60, %v5013_v53  ;;  %v5028_v0 = vsel %vm5024_vm7, %v5013_v53, %v5015_v30  ;;  %v1812_v30 = vadd.f32 %v9511_v55, %v1569_v50  ;;  %v1329_v53 = vadd.f32 %v9512_v43, %v1086_v2  ;;  %v9523_v50 = vld [vmem:[#allocation6_spill] sm:$0xff]  ;;  %v9525_v2 = vld [vmem:[#allocation16_spill] sm:$0xff] }
 0x257   : > { %7148 = vmatpush.msk.msra.mxu2 %vm232_vm0, %v5027_v22  ;;  %7150 = vmatpush.msk.msra.mxu3 %vm232_vm0, %v5028_v0  ;;  %v8951_v24 = vpop.permute.xlu2 %5253  ;;  %v8980_v33 = vld.sshfl [vmem:[#allocation1 + $0x8] sm:$0xff pattern:$0x75316420]  ;;  %v8982_v10 = vld.sshfl [vmem:[#allocation1] sm:$0xff pattern:$0x75316420]  ;;  %v1810_v49 = vadd.f32 %v9513_v47, %v1567_v15  ;;  %v1330_v28 = vadd.f32 %v9515_v57, %v1087_v35 }
 0x258   : > { %7149 = vmatmul.msk.f32.vlgmr.msra.gmra.mxu2 %vm228_vm2, %v8936_v27  ;;  %6462 = vst [vmem:[#allocation1] ss:$2 sm:$0xff] %v6441_v56  ;;  %v9514_v22 = vld [vmem:[#allocation11_spill] sm:$0xff]  ;;  %v9520_v56 = vld [vmem:[#allocation9_spill] sm:$0xff] }
 0x259   : > { %7151 = vmatmul.msk.f32.vlgmr.msra.gmra.mxu3 %vm228_vm2, %v8936_v27  ;;  %v1813_v0 = vadd.f32 %v9514_v22, %v1570_v29  ;;  %v1572_v26 = vadd.f32 %v9520_v56, %v1329_v53  ;;  %v9526_v29 = vld [vmem:[#allocation29_spill] sm:$0xff] }
 0x25a   : > { %6229 = vrot.lane.b32.xlu1 %v6215_v37, %s7334_s9  ;;  %v6440_v37 = vld [vmem:[%s7371_s17 + $0x1c] sm:$0x77] }
 0x25b   : > { %6227 = vrot.lane.b32.xlu0 %v8882_v5, %s7334_s9  ;;  %6453 = vst [vmem:[#allocation1 + $0x30] ss:$2 sm:$0xff] %v6440_v37  ;;  %v9029_v31 = vpop.f32.mrf.mxu0 }
 0x25c   : > { %v5007_v14 = vpop.permute.xlu1 %5006  ;;  %v9014_v21 = vpop.f32.mrf.mxu3 }
 0x25d   : > { %v5009_v39 = vpop.permute.xlu0 %5008  ;;  %6225 = vrot.lane.b32.xlu2 %v8888_v36, %s7334_s9  ;;  %v9024_v58 = vpop.f32.mrf.mxu1 }
 0x25e   : > { %v5026_v5 = vsel %vm5024_vm7, %v5009_v39, %v8836_v60  ;;  %v5025_v59 = vsel %vm5024_vm7, %v5007_v14, %v5009_v39  ;;  %v9006_v60 = vpop.f32.mrf.mxu2  ;;  %v2055_v14 = vadd.f32 %v9519_v1, %v1812_v30  ;;  %v9522_v39 = vld [vmem:[#allocation19_spill] sm:$0xff]  ;;  %v9537_v1 = vld [vmem:[#allocation36_spill] sm:$0xff] }
 0x25f   : > { %7144 = vmatpush.msk.msra.mxu0 %vm232_vm0, %v5025_v59  ;;  %7146 = vmatpush.msk.msra.mxu1 %vm232_vm0, %v5026_v5  ;;  %v9001_v36 = vpop.permute.xlu2 %5263  ;;  %v2056_v20 = vadd.f32 %v9522_v39, %v1813_v0  ;;  %v1573_v5 = vadd.f32 %v9523_v50, %v1330_v28  ;;  %v9530_v30 = vld [vmem:[#allocation27_spill] sm:$0xff]  ;;  %v9533_v28 = vld [vmem:[#allocation24_spill] sm:$0xff]  ;;  %v9540_v39 = vld [vmem:[#allocation42_spill] sm:$0xff] }
 0x260   : > { %7145 = vmatmul.msk.f32.vlgmr.msra.gmra.mxu0 %vm228_vm2, %v8936_v27  ;;  %7147 = vmatmul.msk.f32.vlgmr.msra.gmra.mxu1 %vm228_vm2, %v8936_v27  ;;  %v6457_v50 = vld.sshfl [vmem:[#allocation1 + $0x18] sm:$0xff pattern:$0x75316420] }
 0x261   : > { %7152 = vmatpush.msk.msrb.mxu0 %vm232_vm0, %v5029_v62  ;;  %v9527_v62 = vld [vmem:[#allocation26_spill] sm:$0xff]  ;;  %v2299_v43 = vadd.f32 %v9530_v30, %v2056_v20 }
 0x262   : > { %6221 = vrot.lane.b32.xlu1 %v8848_v32, %s7334_s9  ;;  %v1571_v32 = vadd.f32 %v9517_v51, %v1328_v23  ;;  %v2298_v19 = vadd.f32 %v9527_v62, %v2055_v14  ;;  %v9528_v23 = vld [vmem:[#allocation17_spill] sm:$0xff] }
 0x263   : > { %6223 = vrot.lane.b32.xlu0 %v8846_v8, %s7334_s9  ;;  %v2054_v8 = vadd.f32 %v9518_v4, %v1811_v9  ;;  %v1815_v54 = vadd.f32 %v9528_v23, %v1572_v26  ;;  %v9529_v9 = vld [vmem:[#allocation28_spill] sm:$0xff]  ;;  %v9536_v4 = vld [vmem:[#allocation25_spill] sm:$0xff] }
 0x264   : > { %v5019_v13 = vpop.permute.xlu1 %5018  ;;  %v1814_v15 = vadd.f32 %v9525_v2, %v1571_v32  ;;  %v9070_v53 = vpop.f32.mrf.mxu3  ;;  %v9535_v32 = vld [vmem:[#allocation34_spill] sm:$0xff] }
 0x265   : > { %v5030_v11 = vsel %vm5024_vm7, %v8909_v34, %v5019_v13  ;;  %v5031_v18 = vsel %vm5024_vm7, %v5019_v13, %v8864_v12  ;;  %v5023_v40 = vpop.permute.xlu0 %5022  ;;  %6235 = vrot.lane.b32.xlu2 %v6218_v16, %s7334_s9  ;;  %v9521_v34 = vld [vmem:[#allocation20_spill] sm:$0xff]  ;;  %v2297_v35 = vadd.f32 %v9526_v29, %v2054_v8  ;;  %v9072_v47 = vpop.f32.mrf.mxu1  ;;  %v2058_v8 = vadd.f32 %v9536_v4, %v1815_v54 }
 0x266   : > { %v5032_v37 = vsel %vm5024_vm7, %v8864_v12, %v5023_v40  ;;  %7154 = vmatpush.msk.msrb.mxu1 %vm232_vm0, %v5030_v11  ;;  %7156 = vmatpush.msk.msrb.mxu2 %vm232_vm0, %v5031_v18  ;;  %v2053_v7 = vadd.f32 %v9521_v34, %v1810_v49  ;;  %v9524_v12 = vld [vmem:[#allocation7_spill] sm:$0xff]  ;;  %v9063_v46 = vpop.f32.mrf.mxu2  ;;  %v9077_v22 = vpop.f32.mrf.mxu0  ;;  %v2057_v13 = vadd.f32 %v9533_v28, %v1814_v15  ;;  %v9539_v34 = vld [vmem:[#allocation22_spill] sm:$0xff]  ;;  %v9553_v4 = vld [vmem:[#allocation40_spill] sm:$0xff] }
 0x267   : > { %7158 = vmatpush.msk.msrb.mxu3 %vm232_vm0, %v5032_v37  ;;  %7157 = vmatmul.msk.f32.vlgmr.msrb.gmra.mxu2 %vm228_vm2, %v8936_v27  ;;  %v9050_v16 = vpop.permute.xlu2 %5259  ;;  %v1574_v59 = vadd.f32 %v9524_v12, %v1331_v25  ;;  %v9084_v25 = vld [vmem:[%s9437_s0 + $0x54] sm:$0xf]  ;;  %v2541_v11 = vadd.f32 %v9535_v32, %v2298_v19  ;;  %v9545_v19 = vld [vmem:[#allocation50_spill] sm:$0xff] }
 0x268   : > { %7153 = vmatmul.msk.f32.vlgmr.msrb.gmra.mxu0 %vm228_vm2, %v8936_v27  ;;  %7155 = vmatmul.msk.f32.vlgmr.msrb.gmra.mxu1 %vm228_vm2, %v8936_v27  ;;  %v2296_v55 = vadd.f32 %v9529_v9, %v2053_v7  ;;  %v9538_v37 = vld [vmem:[#allocation35_spill] sm:$0xff] }
 0x269   : > { %7159 = vmatmul.msk.f32.vlgmr.msrb.gmra.mxu3 %vm228_vm2, %v8936_v27  ;;  %v9531_v27 = vld [vmem:[#allocation14_spill] sm:$0xff]  ;;  %v2542_v56 = vadd.f32 %v9538_v37, %v2299_v43  ;;  %v2784_v20 = vadd.f32 %v9540_v39, %v2541_v11  ;;  %v9543_v15 = vld [vmem:[#allocation43_spill] sm:$0xff]  ;;  %v9547_v43 = vld [vmem:[#allocation44_spill] sm:$0xff] }
 0x26a   : > { %6233 = vrot.lane.b32.xlu1 %v8973_v52, %s7334_s9  ;;  %v1816_v49 = vadd.f32 %v9531_v27, %v1573_v5  ;;  %v9532_v52 = vld [vmem:[#allocation15_spill] sm:$0xff]  ;;  %v2539_v14 = vadd.f32 %v9537_v1, %v2296_v55  ;;  %v9546_v55 = vld [vmem:[#allocation33_spill] sm:$0xff] }
 0x26b   : > { %6237 = vrot.lane.b32.xlu0 %v8928_v6, %s7334_s9  ;;  %v1817_v57 = vadd.f32 %v9532_v52, %v1574_v59  ;;  %v9534_v6 = vld [vmem:[#allocation37_spill] sm:$0xff]  ;;  %v9541_v5 = vld [vmem:[#allocation23_spill] sm:$0xff]  ;;  %v9542_v59 = vld [vmem:[#allocation32_spill] sm:$0xff]  ;;  %v2785_v29 = vadd.f32 %v9543_v15, %v2542_v56  ;;  %v3027_v23 = vadd.f32 %v9545_v19, %v2784_v20  ;;  %v2301_v30 = vadd.f32 %v9546_v55, %v2058_v8 }
 0x26c   : > { %v5258_v0 = vpop.permute.xlu1 %5257  ;;  %v2540_v51 = vadd.f32 %v9534_v6, %v2297_v35  ;;  %v2059_v7 = vadd.f32 %v9539_v34, %v1816_v49  ;;  %v2300_v2 = vadd.f32 %v9542_v59, %v2057_v13  ;;  %v9544_v35 = vld [vmem:[#allocation45_spill] sm:$0xff]  ;;  %v6456_v9 = vld.sshfl [vmem:[#allocation1 + $0x10] sm:$0xff pattern:$0x75316420]  ;;  %v2782_v27 = vadd.f32 %v9547_v43, %v2539_v14  ;;  %v9551_v6 = vld [vmem:[#allocation58_spill] sm:$0xff] }
 0x26d   : > { %v5256_v61 = vpop.permute.xlu0 %5255  ;;  %6231 = vrot.lane.b32.xlu2 %v8876_v48, %s7334_s9  ;;  %v6458_v48 = vld.sshfl [vmem:[#allocation1 + $0x20] sm:$0xff pattern:$0x75316420]  ;;  %v2060_v12 = vadd.f32 %v9541_v5, %v1817_v57  ;;  %v9548_v49 = vld [vmem:[#allocation51_spill] sm:$0xff]  ;;  %v9549_v57 = vld [vmem:[#allocation30_spill] sm:$0xff] }
 0x26e   : > { %v5270_v18 = vsel %vm5267_vm8, %v8951_v24, %v5256_v61  ;;  %v5271_v40 = vsel %vm5267_vm8, %v5256_v61, %v5258_v0  ;;  %v2783_v62 = vadd.f32 %v9544_v35, %v2540_v51  ;;  %v3028_v52 = vadd.f32 %v9548_v49, %v2785_v29  ;;  %v9550_v13 = vld [vmem:[#allocation53_spill] sm:$0xff]  ;;  %v9554_v8 = vld [vmem:[#allocation52_spill] sm:$0xff]  ;;  %v9555_v14 = vld [vmem:[#allocation59_spill] sm:$0xff]  ;;  %v9132_v5 = vpop.f32.mrf.mxu0 }
 0x26f   : > { %7165 = vmatpush.msk.msra.mxu2 %vm232_vm0, %v5270_v18  ;;  %7167 = vmatpush.msk.msra.mxu3 %vm232_vm0, %v5271_v40  ;;  %v9098_v26 = vpop.permute.xlu2 %5496  ;;  %v2302_v28 = vadd.f32 %v9549_v57, %v2059_v7  ;;  %v3270_v51 = vadd.f32 %v9551_v6, %v3027_v23  ;;  %v9552_v18 = vld [vmem:[#allocation31_spill] sm:$0xff]  ;;  %v2543_v1 = vadd.f32 %v9553_v4, %v2300_v2  ;;  %v9556_v7 = vld [vmem:[#allocation60_spill] sm:$0xff]  ;;  %v9557_v20 = vld [vmem:[#allocation66_spill] sm:$0xff] }
 0x270   : > { %7166 = vmatmul.msk.f32.vlgmr.msra.gmra.mxu2 %vm228_vm2, %v9084_v25  ;;  %v3026_v61 = vadd.f32 %v9550_v13, %v2783_v62  ;;  %v2303_v40 = vadd.f32 %v9552_v18, %v2060_v12  ;;  %v3025_v37 = vadd.f32 %v9554_v8, %v2782_v27  ;;  %v3271_v56 = vadd.f32 %v9555_v14, %v3028_v52  ;;  %v9558_v2 = vld [vmem:[#allocation41_spill] sm:$0xff]  ;;  %v9560_v62 = vld [vmem:[#allocation67_spill] sm:$0xff]  ;;  %v9563_v52 = vld [vmem:[#allocation48_spill] sm:$0xff] }
 0x271   : > { %7168 = vmatmul.msk.f32.vlgmr.msra.gmra.mxu3 %vm228_vm2, %v9084_v25  ;;  %v2544_v15 = vadd.f32 %v9558_v2, %v2301_v30  ;;  %v9559_v29 = vld [vmem:[#allocation61_spill] sm:$0xff]  ;;  %v6461_v6 = vld.sshfl [vmem:[#allocation1 + $0x38] sm:$0xff pattern:$0x75316420]  ;;  %v9566_v18 = vld [vmem:[#allocation39_spill] sm:$0xff] }
 0x272   : > { %v9111_v54 = vpop.f32.mrf.mxu2  ;;  %6472 = vrot.lane.b32.xlu1 %v6458_v48, %s7335_s11  ;;  %v9127_v48 = vpop.f32.mrf.mxu1  ;;  %v3269_v39 = vadd.f32 %v9556_v7, %v3026_v61  ;;  %v3268_v35 = vadd.f32 %v9559_v29, %v3025_v37  ;;  %v3514_v19 = vadd.f32 %v9560_v62, %v3271_v56  ;;  %v9562_v30 = vld [vmem:[#allocation69_spill] sm:$0xff]  ;;  %v2546_v4 = vadd.f32 %v9566_v18, %v2303_v40  ;;  %v9568_v14 = vld [vmem:[#allocation56_spill] sm:$0xff] }
 0x273   : > { %6470 = vrot.lane.b32.xlu0 %v6457_v50, %s7335_s11  ;;  %v3513_v50 = vadd.f32 %v9557_v20, %v3270_v51  ;;  %v2787_v57 = vadd.f32 %v9563_v52, %v2544_v15  ;;  %v9564_v13 = vld [vmem:[#allocation49_spill] sm:$0xff]  ;;  %v9565_v51 = vld [vmem:[#allocation38_spill] sm:$0xff]  ;;  %v9569_v20 = vld [vmem:[#allocation64_spill] sm:$0xff] }
 0x274   : > { %v9121_v32 = vpop.f32.mrf.mxu3  ;;  %v5250_v11 = vpop.permute.xlu1 %5249  ;;  %v3511_v27 = vadd.f32 %v9562_v30, %v3268_v35  ;;  %v3757_v49 = vadd.f32 %v8962_v17, %v3514_v19  ;;  %v2786_v61 = vadd.f32 %v9564_v13, %v2543_v1  ;;  %v9567_v1 = vld [vmem:[#allocation57_spill] sm:$0xff]  ;;  %v6460_v35 = vld.sshfl [vmem:[#allocation1 + $0x30] sm:$0xff pattern:$0x75316420]  ;;  %v7177_v18 = vld [vmem:[%s9437_s0 + $0x58] sm:$0xf] }
 0x275   : > { %v5252_v34 = vpop.permute.xlu0 %5251  ;;  %6468 = vrot.lane.b32.xlu2 %v6456_v9, %s7335_s11  ;;  %v9561_v9 = vld [vmem:[#allocation68_spill] sm:$0xff]  ;;  %v3756_v43 = vadd.f32 %v8955_v45, %v3513_v50  ;;  %v9571_v2 = vld [vmem:[#allocation65_spill] sm:$0xff] }
 0x276   : > { %v5269_v12 = vsel %vm5267_vm8, %v5252_v34, %v8951_v24  ;;  %v5268_v59 = vsel %vm5267_vm8, %v5250_v11, %v5252_v34  ;;  %v3512_v55 = vadd.f32 %v9561_v9, %v3269_v39  ;;  %v5272_v24 = vsel %vm5267_vm8, %v5258_v0, %v9050_v16  ;;  %v6463_v19 = vld.sshfl [vmem:[#allocation1] sm:$0xff pattern:$0x75316420]  ;;  %v9572_v9 = vld [vmem:[#allocation47_spill] sm:$0xff] }
 0x277   : > { %7161 = vmatpush.msk.msra.mxu0 %vm232_vm0, %v5268_v59  ;;  %7163 = vmatpush.msk.msra.mxu1 %vm232_vm0, %v5269_v12  ;;  %v9142_v23 = vpop.permute.xlu2 %5506  ;;  %v3999_v0 = vadd.f32 %v9063_v46, %v3756_v43  ;;  %v2545_v11 = vadd.f32 %v9565_v51, %v2302_v28  ;;  %v3754_v17 = vadd.f32 %v8970_v63, %v3511_v27  ;;  %v9570_v59 = vld [vmem:[#allocation46_spill] sm:$0xff] }
 0x278   : > { %7162 = vmatmul.msk.f32.vlgmr.msra.gmra.mxu0 %vm228_vm2, %v9084_v25  ;;  %7164 = vmatmul.msk.f32.vlgmr.msra.gmra.mxu1 %vm228_vm2, %v9084_v25  ;;  %v3755_v45 = vadd.f32 %v8964_v38, %v3512_v55  ;;  %v4000_v8 = vadd.f32 %v9070_v53, %v3757_v49  ;;  %v3029_v38 = vadd.f32 %v9567_v1, %v2786_v61  ;;  %v9573_v43 = vld [vmem:[#allocation54_spill] sm:$0xff]  ;;  %v9574_v49 = vld [vmem:[#allocation55_spill] sm:$0xff] }
 0x279   : > { %7169 = vmatpush.msk.msrb.mxu0 %vm232_vm0, %v5272_v24  ;;  %v3030_v46 = vadd.f32 %v9568_v14, %v2787_v57  ;;  %v3997_v40 = vadd.f32 %v9077_v22, %v3754_v17  ;;  %v2789_v55 = vadd.f32 %v9572_v9, %v2546_v4  ;;  %v9575_v57 = vld [vmem:[#allocation62_spill] sm:$0xff] }
 0x27a   : > { %6464 = vrot.lane.b32.xlu1 %v8982_v10, %s7335_s11  ;;  %v3998_v56 = vadd.f32 %v9072_v47, %v3755_v45  ;;  %v3272_v15 = vadd.f32 %v9571_v2, %v3029_v38 }
 0x27b   : > { %v4137_v37 = vpop.f32.mrf.mxu2  ;;  %6466 = vrot.lane.b32.xlu0 %v8980_v33, %s7335_s11  ;;  %v3273_v47 = vadd.f32 %v9569_v20, %v3030_v46  ;;  %v3032_v52 = vadd.f32 %v9574_v49, %v2789_v55 }
 0x27c   : > { %v9170_v10 = vadd.f32 %v4137_v37, %v3999_v0  ;;  %v4157_v34 = vpop.f32.mrf.mxu3  ;;  %v5262_v28 = vpop.permute.xlu1 %5261  ;;  %v3515_v30 = vadd.f32 %v8921_v3, %v3272_v15  ;;  %v9576_v0 = vld [vmem:[#allocation63_spill] sm:$0xff] }
 0x27d   : > { %v9173_v7 = vadd.f32 %v4157_v34, %v4000_v8  ;;  %v4117_v63 = vpop.f32.mrf.mxu1  ;;  %v5273_v53 = vsel %vm5267_vm8, %v9050_v16, %v5262_v28  ;;  %v5274_v33 = vsel %vm5267_vm8, %v5262_v28, %v9001_v36  ;;  %v5266_v39 = vpop.permute.xlu0 %5265  ;;  %6478 = vrot.lane.b32.xlu2 %v6461_v6, %s7335_s11  ;;  %v2788_v16 = vadd.f32 %v9570_v59, %v2545_v11 }
 0x27e   : > { %v9181_v50 = vadd.f32 %v4117_v63, %v3998_v56  ;;  %v5275_v12 = vsel %vm5267_vm8, %v9001_v36, %v5266_v39  ;;  %v4097_v22 = vpop.f32.mrf.mxu0  ;;  %7171 = vmatpush.msk.msrb.mxu1 %vm232_vm0, %v5273_v53  ;;  %7173 = vmatpush.msk.msrb.mxu2 %vm232_vm0, %v5274_v33  ;;  %v3516_v36 = vadd.f32 %v8915_v41, %v3273_v47  ;;  %v6459_v41 = vld.sshfl [vmem:[#allocation1 + $0x28] sm:$0xff pattern:$0x75316420] }
 0x27f   : > { %v9189_v29 = vadd.f32 %v4097_v22, %v3997_v40  ;;  %7175 = vmatpush.msk.msrb.mxu3 %vm232_vm0, %v5275_v12  ;;  %7174 = vmatmul.msk.f32.vlgmr.msrb.gmra.mxu2 %vm228_vm2, %v9084_v25  ;;  %v9194_v62 = vpop.permute.xlu2 %5502  ;;  %v3031_v24 = vadd.f32 %v9573_v43, %v2788_v16  ;;  %v3758_v61 = vadd.f32 %v9029_v31, %v3515_v30 }
 0x280   : > { %7170 = vmatmul.msk.f32.vlgmr.msrb.gmra.mxu0 %vm228_vm2, %v9084_v25  ;;  %7172 = vmatmul.msk.f32.vlgmr.msrb.gmra.mxu1 %vm228_vm2, %v9084_v25  ;;  %v3759_v27 = vadd.f32 %v9024_v58, %v3516_v36  ;;  %v3275_v6 = vadd.f32 %v9576_v0, %v3032_v52 }
 0x281   : > { %7176 = vmatmul.msk.f32.vlgmr.msrb.gmra.mxu3 %vm228_vm2, %v9084_v25  ;;  %v3274_v13 = vadd.f32 %v9575_v57, %v3031_v24  ;;  %v4001_v58 = vadd.f32 %v9132_v5, %v3758_v61 }
 0x282   : > { %6476 = vrot.lane.b32.xlu1 %v6460_v35, %s7335_s11  ;;  %v4002_v45 = vadd.f32 %v9127_v48, %v3759_v27  ;;  %v3518_v8 = vadd.f32 %v8904_v42, %v3275_v6  ;;  %v7194_v35 = vld [vmem:[%s9437_s0 + $0x5c] sm:$0xf] }
 0x283   : > { %6480 = vrot.lane.b32.xlu0 %v6463_v19, %s7335_s11  ;;  %v3517_v25 = vadd.f32 %v8894_v44, %v3274_v13 }
 0x284   : > { %v5501_v3 = vpop.permute.xlu1 %5500  ;;  %v3761_v1 = vadd.f32 %v9014_v21, %v3518_v8 }
 0x285   : > { %v4197_v51 = vpop.f32.mrf.mxu1  ;;  %v5499_v11 = vpop.permute.xlu0 %5498  ;;  %6474 = vrot.lane.b32.xlu2 %v6459_v41, %s7335_s11  ;;  %v3760_v44 = vadd.f32 %v9006_v60, %v3517_v25 }
 0x286   : > { %v4245_v31 = vadd.f32 %v4197_v51, %v4002_v45  ;;  %v5513_v4 = vsel %vm5510_vm9, %v9098_v26, %v5499_v11  ;;  %v5514_v48 = vsel %vm5510_vm9, %v5499_v11, %v5501_v3  ;;  %v4177_v17 = vpop.f32.mrf.mxu0  ;;  %v4004_v42 = vadd.f32 %v9121_v32, %v3761_v1  ;;  %v7211_v1 = vld [vmem:[%s9437_s0 + $0x60] sm:$0xf] }
 0x287   : > { %v4244_v5 = vadd.f32 %v4177_v17, %v4001_v58  ;;  %7182 = vmatpush.msk.msra.mxu2 %vm232_vm0, %v5513_v4  ;;  %7184 = vmatpush.msk.msra.mxu3 %vm232_vm0, %v5514_v48  ;;  %v9227_v37 = vpop.permute.xlu2 %5739  ;;  %v4003_v38 = vadd.f32 %v9111_v54, %v3760_v44  ;;  %v5515_v54 = vsel %vm5510_vm9, %v5501_v3, %v9194_v62 }
 0x288   : > { %7183 = vmatmul.msk.f32.vlgmr.msra.gmra.mxu2 %vm228_vm2, %v7177_v18 }
 0x289   : > { %7185 = vmatmul.msk.f32.vlgmr.msra.gmra.mxu3 %vm228_vm2, %v7177_v18 }
 0x28a   : > { %v4217_v14 = vpop.f32.mrf.mxu2 }
 0x28b   : > { %v4246_v46 = vadd.f32 %v4217_v14, %v4003_v38 }
 0x28c   : > { %v4237_v60 = vpop.f32.mrf.mxu3  ;;  %v5493_v56 = vpop.permute.xlu1 %5492 }
 0x28d   : > { %v4247_v34 = vadd.f32 %v4237_v60, %v4004_v42  ;;  %v5495_v28 = vpop.permute.xlu0 %5494 }
 0x28e   : > { %v5512_v40 = vsel %vm5510_vm9, %v5495_v28, %v9098_v26  ;;  %v5511_v63 = vsel %vm5510_vm9, %v5493_v56, %v5495_v28 }
 0x28f   : > { %7178 = vmatpush.msk.msra.mxu0 %vm232_vm0, %v5511_v63  ;;  %7180 = vmatpush.msk.msra.mxu1 %vm232_vm0, %v5512_v40  ;;  %v9239_v21 = vpop.permute.xlu2 %5749 }
 0x290   : > { %7179 = vmatmul.msk.f32.vlgmr.msra.gmra.mxu0 %vm228_vm2, %v7177_v18  ;;  %7181 = vmatmul.msk.f32.vlgmr.msra.gmra.mxu1 %vm228_vm2, %v7177_v18 }
 0x291   : > { %7186 = vmatpush.msk.msrb.mxu0 %vm232_vm0, %v5515_v54 }
 0x293   : > { %v4380_v32 = vpop.f32.mrf.mxu2 }
 0x294   : > { %v4485_v26 = vadd.f32 %v4380_v32, %v9170_v10  ;;  %v4400_v53 = vpop.f32.mrf.mxu3  ;;  %v5505_v33 = vpop.permute.xlu1 %5504 }
 0x295   : > { %v4486_v39 = vadd.f32 %v4400_v53, %v9173_v7  ;;  %v4360_v20 = vpop.f32.mrf.mxu1  ;;  %v5516_v47 = vsel %vm5510_vm9, %v9194_v62, %v5505_v33  ;;  %v5517_v12 = vsel %vm5510_vm9, %v5505_v33, %v9142_v23  ;;  %v5509_v22 = vpop.permute.xlu0 %5508 }
 0x296   : > { %v4484_v59 = vadd.f32 %v4360_v20, %v9181_v50  ;;  %v5518_v16 = vsel %vm5510_vm9, %v9142_v23, %v5509_v22  ;;  %v4340_v2 = vpop.f32.mrf.mxu0  ;;  %7188 = vmatpush.msk.msrb.mxu1 %vm232_vm0, %v5516_v47  ;;  %7190 = vmatpush.msk.msrb.mxu2 %vm232_vm0, %v5517_v12 }
 0x297   : > { %v4483_v10 = vadd.f32 %v4340_v2, %v9189_v29  ;;  %7192 = vmatpush.msk.msrb.mxu3 %vm232_vm0, %v5518_v16  ;;  %7191 = vmatmul.msk.f32.vlgmr.msrb.gmra.mxu2 %vm228_vm2, %v7177_v18  ;;  %v5746_v7 = vpop.permute.xlu2 %5745 }
 0x298   : > { %7187 = vmatmul.msk.f32.vlgmr.msrb.gmra.mxu0 %vm228_vm2, %v7177_v18  ;;  %7189 = vmatmul.msk.f32.vlgmr.msrb.gmra.mxu1 %vm228_vm2, %v7177_v18 }
 0x299   : > { %7193 = vmatmul.msk.f32.vlgmr.msrb.gmra.mxu3 %vm228_vm2, %v7177_v18 }
 0x29c   : > { %v5744_v23 = vpop.permute.xlu1 %5743 }
 0x29d   : > { %v4440_v50 = vpop.f32.mrf.mxu1  ;;  %v5742_v15 = vpop.permute.xlu0 %5741  ;;  %v5758_v61 = vsel %vm5753_vm10, %v5744_v23, %v5746_v7 }
 0x29e   : > { %v4488_v29 = vadd.f32 %v4440_v50, %v4245_v31  ;;  %v5756_v62 = vsel %vm5753_vm10, %v9227_v37, %v5742_v15  ;;  %v5757_v36 = vsel %vm5753_vm10, %v5742_v15, %v5744_v23  ;;  %v4420_v19 = vpop.f32.mrf.mxu0 }
 0x29f   : > { %v4487_v9 = vadd.f32 %v4420_v19, %v4244_v5  ;;  %7199 = vmatpush.msk.msra.mxu2 %vm232_vm0, %v5756_v62  ;;  %7201 = vmatpush.msk.msra.mxu3 %vm232_vm0, %v5757_v36  ;;  %v5983_v55 = vpop.permute.xlu2 %5982  ;;  %v7228_v36 = vld [vmem:[%s9437_s0 + $0x64] sm:$0xf] }
 0x2a0   : > { %7200 = vmatmul.msk.f32.vlgmr.msra.gmra.mxu2 %vm228_vm2, %v7194_v35 }
 0x2a1   : > { %7202 = vmatmul.msk.f32.vlgmr.msra.gmra.mxu3 %vm228_vm2, %v7194_v35 }
 0x2a2   : > { %v4460_v43 = vpop.f32.mrf.mxu2 }
 0x2a3   : > { %v4489_v24 = vadd.f32 %v4460_v43, %v4246_v46 }
 0x2a4   : > { %v4480_v30 = vpop.f32.mrf.mxu3  ;;  %v5736_v27 = vpop.permute.xlu1 %5735 }
 0x2a5   : > { %v4490_v41 = vadd.f32 %v4480_v30, %v4247_v34  ;;  %v5738_v49 = vpop.permute.xlu0 %5737 }
 0x2a6   : > { %v5755_v52 = vsel %vm5753_vm10, %v5738_v49, %v9227_v37  ;;  %v5754_v57 = vsel %vm5753_vm10, %v5736_v27, %v5738_v49 }
 0x2a7   : > { %7195 = vmatpush.msk.msra.mxu0 %vm232_vm0, %v5754_v57  ;;  %7197 = vmatpush.msk.msra.mxu1 %vm232_vm0, %v5755_v52  ;;  %v9278_v13 = vpop.permute.xlu2 %5992 }
 0x2a8   : > { %7196 = vmatmul.msk.f32.vlgmr.msra.gmra.mxu0 %vm228_vm2, %v7194_v35  ;;  %7198 = vmatmul.msk.f32.vlgmr.msra.gmra.mxu1 %vm228_vm2, %v7194_v35 }
 0x2a9   : > { %7203 = vmatpush.msk.msrb.mxu0 %vm232_vm0, %v5758_v61 }
 0x2ab   : > { %v4623_v45 = vpop.f32.mrf.mxu2 }
 0x2ac   : > { %v4728_v3 = vadd.f32 %v4623_v45, %v4485_v26  ;;  %v4643_v0 = vpop.f32.mrf.mxu3  ;;  %v5748_v6 = vpop.permute.xlu1 %5747 }
 0x2ad   : > { %v4729_v25 = vadd.f32 %v4643_v0, %v4486_v39  ;;  %v4603_v58 = vpop.f32.mrf.mxu1  ;;  %v5759_v51 = vsel %vm5753_vm10, %v5746_v7, %v5748_v6  ;;  %v5760_v11 = vsel %vm5753_vm10, %v5748_v6, %v9239_v21  ;;  %v5752_v18 = vpop.permute.xlu0 %5751  ;;  %v6678_v6 = vld [vmem:[%s9438_s1] sm:$0xf] }
 0x2ae   : > { %v4727_v31 = vadd.f32 %v4603_v58, %v4484_v59  ;;  %v5761_v4 = vsel %vm5753_vm10, %v9239_v21, %v5752_v18  ;;  %v4583_v48 = vpop.f32.mrf.mxu0  ;;  %7205 = vmatpush.msk.msrb.mxu1 %vm232_vm0, %v5759_v51  ;;  %7207 = vmatpush.msk.msrb.mxu2 %vm232_vm0, %v5760_v11 }
 0x2af   : > { %v4726_v17 = vadd.f32 %v4583_v48, %v4483_v10  ;;  %7209 = vmatpush.msk.msrb.mxu3 %vm232_vm0, %v5761_v4  ;;  %7208 = vmatmul.msk.f32.vlgmr.msrb.gmra.mxu2 %vm228_vm2, %v7194_v35  ;;  %v5989_v8 = vpop.permute.xlu2 %5988 }
 0x2b0   : > { %7204 = vmatmul.msk.f32.vlgmr.msrb.gmra.mxu0 %vm228_vm2, %v7194_v35  ;;  %7206 = vmatmul.msk.f32.vlgmr.msrb.gmra.mxu1 %vm228_vm2, %v7194_v35 }
 0x2b1   : > { %7210 = vmatmul.msk.f32.vlgmr.msrb.gmra.mxu3 %vm228_vm2, %v7194_v35 }
 0x2b4   : > { %v5987_v44 = vpop.permute.xlu1 %5986 }
 0x2b5   : > { %v4683_v5 = vpop.f32.mrf.mxu1  ;;  %v5985_v37 = vpop.permute.xlu0 %5984  ;;  %v6001_v53 = vsel %vm5996_vm11, %v5987_v44, %v5989_v8 }
 0x2b6   : > { %v4731_v38 = vadd.f32 %v4683_v5, %v4488_v29  ;;  %v5999_v14 = vsel %vm5996_vm11, %v5983_v55, %v5985_v37  ;;  %v6000_v42 = vsel %vm5996_vm11, %v5985_v37, %v5987_v44  ;;  %v4663_v46 = vpop.f32.mrf.mxu0 }
 0x2b7   : > { %v4730_v60 = vadd.f32 %v4663_v46, %v4487_v9  ;;  %7216 = vmatpush.msk.msra.mxu2 %vm232_vm0, %v5999_v14  ;;  %7218 = vmatpush.msk.msra.mxu3 %vm232_vm0, %v6000_v42  ;;  %v6226_v56 = vpop.permute.xlu2 %6225 }
 0x2b8   : > { %7217 = vmatmul.msk.f32.vlgmr.msra.gmra.mxu2 %vm228_vm2, %v7211_v1 }
 0x2b9   : > { %7219 = vmatmul.msk.f32.vlgmr.msra.gmra.mxu3 %vm228_vm2, %v7211_v1 }
 0x2ba   : > { %v4703_v34 = vpop.f32.mrf.mxu2 }
 0x2bb   : > { %v4732_v28 = vadd.f32 %v4703_v34, %v4489_v24 }
 0x2bc   : > { %v4723_v40 = vpop.f32.mrf.mxu3  ;;  %v5979_v63 = vpop.permute.xlu1 %5978 }
 0x2bd   : > { %v4733_v21 = vadd.f32 %v4723_v40, %v4490_v41  ;;  %v5981_v54 = vpop.permute.xlu0 %5980 }
 0x2be   : > { %v5998_v32 = vsel %vm5996_vm11, %v5981_v54, %v5983_v55  ;;  %v5997_v26 = vsel %vm5996_vm11, %v5979_v63, %v5981_v54 }
 0x2bf   : > { %7212 = vmatpush.msk.msra.mxu0 %vm232_vm0, %v5997_v26  ;;  %7214 = vmatpush.msk.msra.mxu1 %vm232_vm0, %v5998_v32  ;;  %v9313_v39 = vpop.permute.xlu2 %6235 }
 0x2c0   : > { %7213 = vmatmul.msk.f32.vlgmr.msra.gmra.mxu0 %vm228_vm2, %v7211_v1  ;;  %7215 = vmatmul.msk.f32.vlgmr.msra.gmra.mxu1 %vm228_vm2, %v7211_v1 }
 0x2c1   : > { %7220 = vmatpush.msk.msrb.mxu0 %vm232_vm0, %v6001_v53 }
 0x2c3   : > { %v4866_v33 = vpop.f32.mrf.mxu2 }
 0x2c4   : > { %v4971_v20 = vadd.f32 %v4866_v33, %v4728_v3  ;;  %v4886_v47 = vpop.f32.mrf.mxu3  ;;  %v5991_v12 = vpop.permute.xlu1 %5990 }
 0x2c5   : > { %v4972_v22 = vadd.f32 %v4886_v47, %v4729_v25  ;;  %v4846_v59 = vpop.f32.mrf.mxu1  ;;  %v6002_v16 = vsel %vm5996_vm11, %v5989_v8, %v5991_v12  ;;  %v6003_v2 = vsel %vm5996_vm11, %v5991_v12, %v9278_v13  ;;  %v5995_v10 = vpop.permute.xlu0 %5994  ;;  %v7336_v25 = vmov 0  }
 0x2c6   : > { %v4970_v7 = vadd.f32 %v4846_v59, %v4727_v31  ;;  %v6004_v23 = vsel %vm5996_vm11, %v9278_v13, %v5995_v10  ;;  %v4826_v50 = vpop.f32.mrf.mxu0  ;;  %7222 = vmatpush.msk.msrb.mxu1 %vm232_vm0, %v6002_v16  ;;  %7224 = vmatpush.msk.msrb.mxu2 %vm232_vm0, %v6003_v2 }
 0x2c7   : > { %v4969_v15 = vadd.f32 %v4826_v50, %v4726_v17  ;;  %7226 = vmatpush.msk.msrb.mxu3 %vm232_vm0, %v6004_v23  ;;  %7225 = vmatmul.msk.f32.vlgmr.msrb.gmra.mxu2 %vm228_vm2, %v7211_v1  ;;  %v6232_v30 = vpop.permute.xlu2 %6231 }
 0x2c8   : > { %7221 = vmatmul.msk.f32.vlgmr.msrb.gmra.mxu0 %vm228_vm2, %v7211_v1  ;;  %7223 = vmatmul.msk.f32.vlgmr.msrb.gmra.mxu1 %vm228_vm2, %v7211_v1 }
 0x2c9   : > { %7227 = vmatmul.msk.f32.vlgmr.msrb.gmra.mxu3 %vm228_vm2, %v7211_v1  ;;  %7301 = vset.pattern.permute.xlu0 %v7336_v25 }
 0x2ca   : > { %6681 = vperm.xlu0 %7301, %v6678_v6  }
 0x2cc   : > { %v6230_v35 = vpop.permute.xlu1 %6229 }
 0x2cd   : > { %v4926_v29 = vpop.f32.mrf.mxu1  ;;  %v6228_v62 = vpop.permute.xlu0 %6227  ;;  %v6244_v3 = vsel %vm6239_vm12, %v6230_v35, %v6232_v30 }
 0x2ce   : > { %v4974_v19 = vadd.f32 %v4926_v29, %v4731_v38  ;;  %v6242_v9 = vsel %vm6239_vm12, %v6226_v56, %v6228_v62  ;;  %v6243_v55 = vsel %vm6239_vm12, %v6228_v62, %v6230_v35  ;;  %v4906_v43 = vpop.f32.mrf.mxu0 }
 0x2cf   : > { %v4973_v24 = vadd.f32 %v4906_v43, %v4730_v60  ;;  %7233 = vmatpush.msk.msra.mxu2 %vm232_vm0, %v6242_v9  ;;  %7235 = vmatpush.msk.msra.mxu3 %vm232_vm0, %v6243_v55  ;;  %v6469_v0 = vpop.permute.xlu2 %6468  ;;  %v7245_v60 = vld [vmem:[%s9437_s0 + $0x68] sm:$0xf] }
 0x2d0   : > { %7234 = vmatmul.msk.f32.vlgmr.msra.gmra.mxu2 %vm228_vm2, %v7228_v36 }
 0x2d1   : > { %7236 = vmatmul.msk.f32.vlgmr.msra.gmra.mxu3 %vm228_vm2, %v7228_v36 }
 0x2d2   : > { %v4946_v27 = vpop.f32.mrf.mxu2 }
 0x2d3   : > { %v4975_v41 = vadd.f32 %v4946_v27, %v4732_v28 }
 0x2d4   : > { %v4966_v49 = vpop.f32.mrf.mxu3  ;;  %v6222_v52 = vpop.permute.xlu1 %6221 }
 0x2d5   : > { %v4976_v57 = vadd.f32 %v4966_v49, %v4733_v21  ;;  %v6224_v13 = vpop.permute.xlu0 %6223 }
 0x2d6   : > { %v6241_v61 = vsel %vm6239_vm12, %v6224_v13, %v6226_v56  ;;  %v6240_v45 = vsel %vm6239_vm12, %v6222_v52, %v6224_v13 }
 0x2d7   : > { %7229 = vmatpush.msk.msra.mxu0 %vm232_vm0, %v6240_v45  ;;  %7231 = vmatpush.msk.msra.mxu1 %vm232_vm0, %v6241_v61  ;;  %v6479_v38 = vpop.permute.xlu2 %6478 }
 0x2d8   : > { %7230 = vmatmul.msk.f32.vlgmr.msra.gmra.mxu0 %vm228_vm2, %v7228_v36  ;;  %7232 = vmatmul.msk.f32.vlgmr.msra.gmra.mxu1 %vm228_vm2, %v7228_v36 }
 0x2d9   : > { %7237 = vmatpush.msk.msrb.mxu0 %vm232_vm0, %v6244_v3 }
 0x2db   : > { %v5109_v58 = vpop.f32.mrf.mxu2 }
 0x2dc   : > { %v5214_v51 = vadd.f32 %v5109_v58, %v4971_v20  ;;  %v5129_v11 = vpop.f32.mrf.mxu3  ;;  %v6234_v18 = vpop.permute.xlu1 %6233 }
 0x2dd   : > { %v5215_v31 = vadd.f32 %v5129_v11, %v4972_v22  ;;  %v5089_v4 = vpop.f32.mrf.mxu1  ;;  %v6245_v48 = vsel %vm6239_vm12, %v6232_v30, %v6234_v18  ;;  %v6246_v17 = vsel %vm6239_vm12, %v6234_v18, %v9313_v39  ;;  %v6238_v8 = vpop.permute.xlu0 %6237 }
 0x2de   : > { %v5213_v44 = vadd.f32 %v5089_v4, %v4970_v7  ;;  %v6247_v5 = vsel %vm6239_vm12, %v9313_v39, %v6238_v8  ;;  %v5069_v37 = vpop.f32.mrf.mxu0  ;;  %7239 = vmatpush.msk.msrb.mxu1 %vm232_vm0, %v6245_v48  ;;  %7241 = vmatpush.msk.msrb.mxu2 %vm232_vm0, %v6246_v17 }
 0x2df   : > { %v5212_v1 = vadd.f32 %v5069_v37, %v4969_v15  ;;  %7243 = vmatpush.msk.msrb.mxu3 %vm232_vm0, %v6247_v5  ;;  %7242 = vmatmul.msk.f32.vlgmr.msrb.gmra.mxu2 %vm228_vm2, %v7228_v36  ;;  %v6475_v53 = vpop.permute.xlu2 %6474 }
 0x2e0   : > { %7238 = vmatmul.msk.f32.vlgmr.msrb.gmra.mxu0 %vm228_vm2, %v7228_v36  ;;  %7240 = vmatmul.msk.f32.vlgmr.msrb.gmra.mxu1 %vm228_vm2, %v7228_v36 }
 0x2e1   : > { %7244 = vmatmul.msk.f32.vlgmr.msrb.gmra.mxu3 %vm228_vm2, %v7228_v36 }
 0x2e4   : > { %v6473_v14 = vpop.permute.xlu1 %6472 }
 0x2e5   : > { %v5169_v42 = vpop.f32.mrf.mxu1  ;;  %v6471_v46 = vpop.permute.xlu0 %6470  ;;  %v6487_v12 = vsel %vm6482_vm13, %v6473_v14, %v6475_v53 }
 0x2e6   : > { %v5217_v56 = vadd.f32 %v5169_v42, %v4974_v19  ;;  %v6485_v34 = vsel %vm6482_vm13, %v6469_v0, %v6471_v46  ;;  %v6486_v28 = vsel %vm6482_vm13, %v6471_v46, %v6473_v14  ;;  %v5149_v40 = vpop.f32.mrf.mxu0 }
 0x2e7   : > { %v5216_v63 = vadd.f32 %v5149_v40, %v4973_v24  ;;  %7250 = vmatpush.msk.msra.mxu2 %vm232_vm0, %v6485_v34  ;;  %7252 = vmatpush.msk.msra.mxu3 %vm232_vm0, %v6486_v28 }
 0x2e8   : > { %7251 = vmatmul.msk.f32.vlgmr.msra.gmra.mxu2 %vm228_vm2, %v7245_v60 }
 0x2e9   : > { %7253 = vmatmul.msk.f32.vlgmr.msra.gmra.mxu3 %vm228_vm2, %v7245_v60 }
 0x2ea   : > { %v5189_v21 = vpop.f32.mrf.mxu2 }
 0x2eb   : > { %v5218_v54 = vadd.f32 %v5189_v21, %v4975_v41 }
 0x2ec   : > { %v5209_v32 = vpop.f32.mrf.mxu3  ;;  %v6465_v26 = vpop.permute.xlu1 %6464 }
 0x2ed   : > { %v5219_v33 = vadd.f32 %v5209_v32, %v4976_v57  ;;  %v6467_v39 = vpop.permute.xlu0 %6466 }
 0x2ee   : > { %v6484_v20 = vsel %vm6482_vm13, %v6467_v39, %v6469_v0  ;;  %v6483_v47 = vsel %vm6482_vm13, %v6465_v26, %v6467_v39 }
 0x2ef   : > { %7246 = vmatpush.msk.msra.mxu0 %vm232_vm0, %v6483_v47  ;;  %7248 = vmatpush.msk.msra.mxu1 %vm232_vm0, %v6484_v20 }
 0x2f0   : > { %7247 = vmatmul.msk.f32.vlgmr.msra.gmra.mxu0 %vm228_vm2, %v7245_v60  ;;  %7249 = vmatmul.msk.f32.vlgmr.msra.gmra.mxu1 %vm228_vm2, %v7245_v60 }
 0x2f1   : > { %7254 = vmatpush.msk.msrb.mxu0 %vm232_vm0, %v6487_v12 }
 0x2f3   : > { %v5352_v22 = vpop.f32.mrf.mxu2 }
 0x2f4   : > { %v5457_v59 = vadd.f32 %v5352_v22, %v5214_v51  ;;  %v5372_v16 = vpop.f32.mrf.mxu3  ;;  %v6477_v2 = vpop.permute.xlu1 %6476 }
 0x2f5   : > { %v5458_v10 = vadd.f32 %v5372_v16, %v5215_v31  ;;  %v5332_v7 = vpop.f32.mrf.mxu1  ;;  %v6488_v23 = vsel %vm6482_vm13, %v6475_v53, %v6477_v2  ;;  %v6489_v50 = vsel %vm6482_vm13, %v6477_v2, %v6479_v38  ;;  %v6481_v15 = vpop.permute.xlu0 %6480 }
 0x2f6   : > { %v5456_v35 = vadd.f32 %v5332_v7, %v5213_v44  ;;  %v6490_v29 = vsel %vm6482_vm13, %v6479_v38, %v6481_v15  ;;  %v5312_v62 = vpop.f32.mrf.mxu0  ;;  %7256 = vmatpush.msk.msrb.mxu1 %vm232_vm0, %v6488_v23  ;;  %7258 = vmatpush.msk.msrb.mxu2 %vm232_vm0, %v6489_v50 }
 0x2f7   : > { %v5455_v36 = vadd.f32 %v5312_v62, %v5212_v1  ;;  %7260 = vmatpush.msk.msrb.mxu3 %vm232_vm0, %v6490_v29  ;;  %7259 = vmatmul.msk.f32.vlgmr.msrb.gmra.mxu2 %vm228_vm2, %v7245_v60 }
 0x2f8   : > { %7255 = vmatmul.msk.f32.vlgmr.msrb.gmra.mxu0 %vm228_vm2, %v7245_v60  ;;  %7257 = vmatmul.msk.f32.vlgmr.msrb.gmra.mxu1 %vm228_vm2, %v7245_v60 }
 0x2f9   : > { %7261 = vmatmul.msk.f32.vlgmr.msrb.gmra.mxu3 %vm228_vm2, %v7245_v60 }
 0x2fd   : > { %v5412_v19 = vpop.f32.mrf.mxu1 }
 0x2fe   : > { %v5392_v9 = vpop.f32.mrf.mxu0  ;;  %v5460_v55 = vadd.f32 %v5412_v19, %v5217_v56 }
 0x2ff   : > { %v5459_v43 = vadd.f32 %v5392_v9, %v5216_v63 }
 0x302   : > { %v5432_v24 = vpop.f32.mrf.mxu2 }
 0x303   : > { %v5461_v30 = vadd.f32 %v5432_v24, %v5218_v54 }
 0x304   : > { %v5452_v27 = vpop.f32.mrf.mxu3 }
 0x305   : > { %v5462_v41 = vadd.f32 %v5452_v27, %v5219_v33 }
 0x30b   : > { %v5595_v49 = vpop.f32.mrf.mxu2 }
 0x30c   : > { %v5615_v52 = vpop.f32.mrf.mxu3  ;;  %v5700_v40 = vadd.f32 %v5595_v49, %v5457_v59 }
 0x30d   : > { %v5555_v3 = vpop.f32.mrf.mxu0  ;;  %v5575_v0 = vpop.f32.mrf.mxu1  ;;  %v5701_v21 = vadd.f32 %v5615_v52, %v5458_v10 }
 0x30e   : > { %v5698_v26 = vadd.f32 %v5555_v3, %v5455_v36  ;;  %v5699_v53 = vadd.f32 %v5575_v0, %v5456_v35 }
 0x315   : > { %v5635_v6 = vpop.f32.mrf.mxu0  ;;  %v5655_v25 = vpop.f32.mrf.mxu1 }
 0x316   : > { %v5702_v59 = vadd.f32 %v5635_v6, %v5459_v43  ;;  %v5703_v36 = vadd.f32 %v5655_v25, %v5460_v55 }
 0x31a   : > { %v5675_v57 = vpop.f32.mrf.mxu2 }
 0x31b   : > { %v9386_v13 = vadd.f32 %v5675_v57, %v5461_v30 }
 0x31c   : > { %v5695_v61 = vpop.f32.mrf.mxu3 }
 0x31d   : > { %v9388_v45 = vadd.f32 %v5695_v61, %v5462_v41 }
 0x323   : > { %v5838_v58 = vpop.f32.mrf.mxu2 }
 0x324   : > { %v5858_v18 = vpop.f32.mrf.mxu3  ;;  %v5943_v33 = vadd.f32 %v5838_v58, %v5700_v40 }
 0x325   : > { %v5798_v51 = vpop.f32.mrf.mxu0  ;;  %v5818_v11 = vpop.f32.mrf.mxu1  ;;  %v5944_v39 = vadd.f32 %v5858_v18, %v5701_v21 }
 0x326   : > { %v5941_v20 = vadd.f32 %v5798_v51, %v5698_v26  ;;  %v5942_v47 = vadd.f32 %v5818_v11, %v5699_v53 }
 0x32d   : > { %v5878_v48 = vpop.f32.mrf.mxu0  ;;  %v5898_v17 = vpop.f32.mrf.mxu1 }
 0x32e   : > { %v5945_v30 = vadd.f32 %v5878_v48, %v5702_v59  ;;  %v5946_v52 = vadd.f32 %v5898_v17, %v5703_v36 }
 0x332   : > { %v9390_v31 = vpop.f32.mrf.mxu2 }
 0x334   : > { %v9392_v4 = vpop.f32.mrf.mxu3 }
 0x33b   : > { %v6081_v8 = vpop.f32.mrf.mxu2 }
 0x33c   : > { %v6101_v37 = vpop.f32.mrf.mxu3  ;;  %v6186_v12 = vadd.f32 %v6081_v8, %v5943_v33  ;;  %v9402_v15 = vpop.permute.xlu0 %6681  ;;  %v5947_v8 = vadd.f32 %v9390_v31, %v9386_v13 }
 0x33d   : > { %v6041_v44 = vpop.f32.mrf.mxu0  ;;  %v6061_v5 = vpop.f32.mrf.mxu1  ;;  %v6187_v22 = vadd.f32 %v6101_v37, %v5944_v39 }
 0x33e   : > { %v6184_v16 = vadd.f32 %v6041_v44, %v5941_v20  ;;  %v6185_v2 = vadd.f32 %v6061_v5, %v5942_v47 }
 0x345   : > { %v6121_v14 = vpop.f32.mrf.mxu0  ;;  %v6141_v42 = vpop.f32.mrf.mxu1 }
 0x346   : > { %v6188_v61 = vadd.f32 %v6121_v14, %v5945_v30  ;;  %v6189_v0 = vadd.f32 %v6141_v42, %v5946_v52 }
 0x34a   : > { %v9394_v1 = vpop.f32.mrf.mxu2 }
 0x34b   : > { %v6190_v40 = vadd.f32 %v9394_v1, %v5947_v8 }
 0x34c   : > { %v9396_v38 = vpop.f32.mrf.mxu3 }
 0x353   : > { %v6324_v46 = vpop.f32.mrf.mxu2 }
 0x354   : > { %v6344_v34 = vpop.f32.mrf.mxu3  ;;  %v6429_v7 = vadd.f32 %v6324_v46, %v6186_v12 }
 0x355   : > { %v6284_v60 = vpop.f32.mrf.mxu0  ;;  %v6304_v56 = vpop.f32.mrf.mxu1  ;;  %v6430_v23 = vadd.f32 %v6344_v34, %v6187_v22  ;;  %v5948_v34 = vadd.f32 %v9392_v4, %v9388_v45 }
 0x356   : > { %v6427_v29 = vadd.f32 %v6284_v60, %v6184_v16  ;;  %v6428_v10 = vadd.f32 %v6304_v56, %v6185_v2 }
 0x35d   : > { %v6364_v54 = vpop.f32.mrf.mxu0  ;;  %v6384_v32 = vpop.f32.mrf.mxu1 }
 0x35e   : > { %v6431_v11 = vadd.f32 %v6364_v54, %v6188_v61  ;;  %v6432_v18 = vadd.f32 %v6384_v32, %v6189_v0  ;;  %v6191_v54 = vadd.f32 %v9396_v38, %v5948_v34 }
 0x362   : > { %v9398_v28 = vpop.f32.mrf.mxu2 }
 0x363   : > { %v6433_v32 = vadd.f32 %v9398_v28, %v6190_v40 }
 0x364   : > { %v9400_v63 = vpop.f32.mrf.mxu3 }
 0x365   : > { %v6434_v45 = vadd.f32 %v9400_v63, %v6191_v54 }
 0x36b   : > { %v6567_v50 = vpop.f32.mrf.mxu2 }
 0x36c   : > { %v6672_v62 = vadd.f32 %v6567_v50, %v6429_v7  ;;  %v6587_v19 = vpop.f32.mrf.mxu3 }
 0x36d   : > { %v6673_v35 = vadd.f32 %v6587_v19, %v6430_v23  ;;  %v6547_v9 = vpop.f32.mrf.mxu1  ;;  %v6527_v24 = vpop.f32.mrf.mxu0 }
 0x36e   : > { %v6671_v27 = vadd.f32 %v6547_v9, %v6428_v10  ;;  %v6686_v41 = vadd.f32 %v9402_v15, %v6672_v62  ;;  %v6670_v49 = vadd.f32 %v6527_v24, %v6427_v29 }
 0x36f   : > { %v6687_v57 = vadd.f32 %v9402_v15, %v6673_v35 }
 0x370   : > { %v6685_v43 = vadd.f32 %v9402_v15, %v6671_v27  ;;  %v6684_v3 = vadd.f32 %v9402_v15, %v6670_v49  ;;  %v6702_v55 = vmul.f32 0.01, %v6686_v41  ;;  %vm6694_vm2 = vcmp.gt.f32.partialorder %v6686_v41, 0.0 }
 0x371   : > { %vm6695_vm0 = vcmp.gt.f32.partialorder %v6687_v57, 0.0  ;;  %v6703_v6 = vmul.f32 0.01, %v6687_v57 }
 0x372   : > { %vm6693_vm14 = vcmp.gt.f32.partialorder %v6685_v43, 0.0  ;;  %v6700_v25 = vmul.f32 0.01, %v6684_v3  ;;  %v6701_v58 = vmul.f32 0.01, %v6685_v43  ;;  %vm6692_vm15 = vcmp.gt.f32.partialorder %v6684_v3, 0.0 }
 0x373   : > { %v6711_v51 = vsel %vm6695_vm0, %v6687_v57, %v6703_v6  ;;  %v6710_v44 = vsel %vm6694_vm2, %v6686_v41, %v6702_v55 }
 0x374   : > { %v6725_v48 = vrot.slane %v6711_v51, 4  ;;  %v6709_v17 = vsel %vm6693_vm14, %v6685_v43, %v6701_v58  ;;  %v6708_v42 = vsel %vm6692_vm15, %v6684_v3, %v6700_v25 }
 0x375   : > { %v6724_v5 = vrot.slane %v6709_v17, 4  ;;  %v6607_v37 = vpop.f32.mrf.mxu0  ;;  %v6627_v14 = vpop.f32.mrf.mxu1 }
 0x376   : > { %v6730_v46 = vsel %vm6728_vm1, %v6710_v44, %v6725_v48  ;;  %v6674_v60 = vadd.f32 %v6607_v37, %v6431_v11  ;;  %v6675_v56 = vadd.f32 %v6627_v14, %v6432_v18 }
 0x377   : > { %v6729_v21 = vsel %vm6728_vm1, %v6708_v42, %v6724_v5  ;;  %6738 = vst [vmem:[%s9412_s30 + $0x8] sm:$0xff] %v6730_v46 }
 0x378   : > { %6737 = vst [vmem:[%s9412_s30] sm:$0xff] %v6729_v21  ;;  %v6688_v13 = vadd.f32 %v9402_v15, %v6674_v60  ;;  %v6689_v31 = vadd.f32 %v9402_v15, %v6675_v56 }
 0x37a   : > { %v6704_v26 = vmul.f32 0.01, %v6688_v13  ;;  %vm6697_vm3 = vcmp.gt.f32.partialorder %v6689_v31, 0.0  ;;  %v6705_v53 = vmul.f32 0.01, %v6689_v31  ;;  %v6647_v33 = vpop.f32.mrf.mxu2  ;;  %vm6696_vm4 = vcmp.gt.f32.partialorder %v6688_v13, 0.0 }
 0x37b   : > { %v6676_v4 = vadd.f32 %v6647_v33, %v6433_v32 }
 0x37c   : > { %v6713_v1 = vsel %vm6697_vm3, %v6689_v31, %v6705_v53  ;;  %v6667_v39 = vpop.f32.mrf.mxu3  ;;  %v6712_v22 = vsel %vm6696_vm4, %v6688_v13, %v6704_v26 }
 0x37d   : > { %v6726_v20 = vrot.slane %v6713_v1, 4  ;;  %v6690_v47 = vadd.f32 %v9402_v15, %v6676_v4  ;;  %v6677_v12 = vadd.f32 %v6667_v39, %v6434_v45 }
 0x37f   : > { %v6731_v38 = vsel %vm6728_vm1, %v6712_v22, %v6726_v20  ;;  %v6691_v28 = vadd.f32 %v9402_v15, %v6677_v12  ;;  %v6706_v16 = vmul.f32 0.01, %v6690_v47  ;;  %vm6698_vm6 = vcmp.gt.f32.partialorder %v6690_v47, 0.0 }
 0x380   : > { %6739 = vst [vmem:[%s9412_s30 + $0x10] sm:$0xff] %v6731_v38 }
 0x381   : > { %vm6699_vm5 = vcmp.gt.f32.partialorder %v6691_v28, 0.0  ;;  %v6707_v2 = vmul.f32 0.01, %v6691_v28  ;;  %v6714_v23 = vsel %vm6698_vm6, %v6690_v47, %v6706_v16 }
 0x383   : > { %v6715_v63 = vsel %vm6699_vm5, %v6691_v28, %v6707_v2 }
 0x384   : > { %v6727_v7 = vrot.slane %v6715_v63, 4 }
 0x386   : > { %v6732_v50 = vsel %vm6728_vm1, %v6714_v23, %v6727_v7 }
 0x387   : > { %6740 = vst [vmem:[%s9412_s30 + $0x18] sm:$0xff] %v6732_v50 }
 0x388 PF: > { %s13_s12 = sadd.s32 1, %s7308_s12  }
 0x389   : > { %p10_p4 = scmp.ge.s32.totalorder %s13_s12, 4  }
 0x38b   :  { %12 = sbr.rel (!%p10_p4) target bundleno = 1 (0x1), region = 169 }

</bundles_post_ra>
